<compile_context>
chip_gen: v7x
topology: tpu7x:2x2x1
jax: 0.10.0
libtpu: 0.0.40
codegen_flags: <defaults>
</compile_context>

<pallas_src>
import math

import jax
import jax.numpy as jnp
from jax import lax
from jax.experimental import pallas as pl
from jax.experimental.pallas import tpu as pltpu

# ---------------- model dimensions (small, synthetic) ----------------
B, T, S = 2, 8, 8          # batch, target length, source length
D, H = 32, 4               # model size, number of heads
DH = D // H                # head dim
INNER = 64                 # feed-forward inner size
EPS = 1e-5                 # LayerNorm eps (PyTorch default)
NEG = -1e30                # additive stand-in for masked_fill(-inf)

# rows of the packed [NVEC, D] bias / LayerNorm slab
(LN1_G, LN1_B, LN2_G, LN2_B, LN3_G, LN3_B,
 RWB, RRB,
 BQ1, BK1, BV1, BR1, BO1,
 BQ2, BK2, BV2, BO2,
 B2_ROW) = range(18)
NVEC = 18


# ---------------- in-kernel helpers ----------------
def _row(slab_ref, r):
    """Static [1, D] row of the packed bias/LayerNorm slab."""
    return slab_ref[r:r + 1, :]


def _layernorm(x, g, b):
    mu = jnp.mean(x, axis=-1, keepdims=True)
    var = jnp.mean((x - mu) ** 2, axis=-1, keepdims=True)
    return (x - mu) * lax.rsqrt(var + EPS) * g + b


def _softmax_approx(s):
    m = jnp.max(s, axis=-1, keepdims=True)
    e = jnp.exp(s - m)
    return e * pl.reciprocal(jnp.sum(e, axis=-1, keepdims=True), approx=True)


def _softmax_exact(s):
    m = jnp.max(s, axis=-1, keepdims=True)
    e = jnp.exp(s - m)
    return e / jnp.sum(e, axis=-1, keepdims=True)


# ---------------- single fused decoder-layer kernel ----------------
def _decoder_layer_kernel(x_ref, ctx_ref, pos_ref, tpad_ref, spad_ref,
                          wqkv1_ref, wr1_ref, wo1_ref,
                          wq2_ref, wkv2_ref, wo2_ref,
                          w1_ref, w2_ref,
                          dvec_ref, b1_ref,
                          out_ref, cov_ref):
    f32 = jnp.float32
    bf16 = jnp.bfloat16
    scale = 1.0 / math.sqrt(DH)
    dv = dvec_ref

    x = x_ref[...]                       # [B*T, D]  f32 (row b*T + t)
    ctx = ctx_ref[...]                   # [B*S, D]  f32 (row b*S + s)

    # ---- data-independent masks / rel-shift selectors (iota, no DMA) ----
    ii = lax.broadcasted_iota(jnp.int32, (T, T), 0)          # query index i
    jj = lax.broadcasted_iota(jnp.int32, (T, T), 1)          # key index j
    causal_add = jnp.where(jj > ii, NEG, 0.0).astype(f32)    # [T, T]
    # pos_emb row m encodes relative distance (T-1-m); valid column of the raw
    # BD matrix for (i, j<=i) is m = j - i + T - 1.  Non-causal (j>i) entries
    # match no selector -> BD = 0 there (then killed by the causal mask).
    rel = jj - ii + (T - 1)                                  # [T, T]
    shift_sel = [(rel == c).astype(f32) for c in range(T)]   # T x [T, T]

    mask_tgt_add = causal_add[None, :, :] + tpad_ref[...][:, None, :]   # [B,T,T]
    mask_src_add = spad_ref[...][:, None, :]                            # [B,1,S]

    # ============ block 1: relative self-attention (Transformer-XL) ============
    xn = _layernorm(x, _row(dv, LN1_G), _row(dv, LN1_B))
    qkv = jnp.dot(xn.astype(bf16), wqkv1_ref[...],
                  preferred_element_type=f32)                 # [B*T, 3D]
    q = qkv[:, 0 * D:1 * D] + _row(dv, BQ1)
    k = qkv[:, 1 * D:2 * D] + _row(dv, BK1)
    v = qkv[:, 2 * D:3 * D] + _row(dv, BV1)
    r = jnp.dot(pos_ref[...].astype(bf16), wr1_ref[...],
                preferred_element_type=f32) + _row(dv, BR1)   # [T, D]

    q_rw = q + _row(dv, RWB)             # AC term bias (all heads at once)
    q_rr = q + _row(dv, RRB)             # BD term bias

    attn = jnp.zeros((B * T, D), f32)
    for h in range(H):                   # static head loop (per-head lane slices)
        sl = slice(h * DH, (h + 1) * DH)
        q_rw_h = q_rw[:, sl].reshape(B, T, DH).astype(bf16)
        k_h = k[:, sl].reshape(B, T, DH).astype(bf16)
        v_h = v[:, sl].reshape(B, T, DH).astype(bf16)
        r_h = r[:, sl].astype(bf16)                            # [T, DH]

        # AC term: batched over B on the MXU
        ac = jnp.einsum('bqd,bkd->bqk', q_rw_h, k_h,
                        preferred_element_type=f32)            # [B, T, T]
        # BD term: one MXU matmul against r, then the rel-shift on the scores
        bd_raw = lax.dot_general(q_rr[:, sl].astype(bf16), r_h,
                                 (((1,), (1,)), ((), ())),
                                 preferred_element_type=f32).reshape(B, T, T)
        bd = jnp.zeros((B, T, T), f32)
        for c in range(T):               # TODO(synk): strided pltpu.roll at production T
            bd = bd + bd_raw[:, :, c:c + 1] * shift_sel[c]

        p = _softmax_approx((ac + bd) * scale + mask_tgt_add)  # [B, T, T]
        pv = jnp.einsum('bqk,bkd->bqd', p.astype(bf16), v_h,
                        preferred_element_type=f32)            # [B, T, DH]
        # head-concat folded into the output projection (no concatenate)
        attn = attn + jnp.dot(pv.reshape(B * T, DH).astype(bf16),
                              wo1_ref[sl, :], preferred_element_type=f32)
    x = x + attn + _row(dv, BO1)         # residual (post-process 'da', eval)

    # ============ block 2: encoder-decoder attention ============
    xn = _layernorm(x, _row(dv, LN2_G), _row(dv, LN2_B))
    q2 = jnp.dot(xn.astype(bf16), wq2_ref[...],
                 preferred_element_type=f32) + _row(dv, BQ2)   # [B*T, D]
    kv2 = jnp.dot(ctx.astype(bf16), wkv2_ref[...],
                  preferred_element_type=f32)                  # [B*S, 2D]
    k2 = kv2[:, 0 * D:1 * D] + _row(dv, BK2)
    v2 = kv2[:, 1 * D:2 * D] + _row(dv, BV2)

    attn = jnp.zeros((B * T, D), f32)
    for h in range(H):
        sl = slice(h * DH, (h + 1) * DH)
        q2_h = q2[:, sl].reshape(B, T, DH).astype(bf16)
        k2_h = k2[:, sl].reshape(B, S, DH).astype(bf16)
        v2_h = v2[:, sl].reshape(B, S, DH).astype(bf16)

        s = jnp.einsum('bqd,bkd->bqk', q2_h, k2_h,
                       preferred_element_type=f32) * scale + mask_src_add
        p = _softmax_exact(s)            # exported as coverage -> exact reciprocal
        for b in range(B):               # leading-dim int stores only (tiny, store-only loop)
            cov_ref[b, h, :, :] = p[b]
        pv = jnp.einsum('bqk,bkd->bqd', p.astype(bf16), v2_h,
                        preferred_element_type=f32)            # [B, T, DH]
        attn = attn + jnp.dot(pv.reshape(B * T, DH).astype(bf16),
                              wo2_ref[sl, :], preferred_element_type=f32)
    x = x + attn + _row(dv, BO2)

    # ============ block 3: position-wise feed-forward ============
    xn = _layernorm(x, _row(dv, LN3_G), _row(dv, LN3_B))
    hid = jnp.dot(xn.astype(bf16), w1_ref[...],
                  preferred_element_type=f32) + b1_ref[...]
    hid = jnp.maximum(hid, 0.0)          # activation='relu'
    ffn = jnp.dot(hid.astype(bf16), w2_ref[...],
                  preferred_element_type=f32) + _row(dv, B2_ROW)
    out_ref[...] = x + ffn


# ---------------- wrapper ----------------
def relative_transformer_decoder_layer(params, inp_tbd, ctx_sbd, pos_emb,
                                        mask_tgt, mask_src):
    """Mirror of RelativeTransformerDecoderLayer.forward (eval mode).

    inp_tbd: [T, B, D], ctx_sbd: [S, B, D], pos_emb: [T, D] (row m = rel. pos T-1-m),
    mask_tgt: [B, T, T] (1 = masked, assumed causal | key-padding),
    mask_src: [B, 1, S] (1 = masked).
    Returns (output [T, B, D], coverage [B, H, T, S], incremental_cache {}).
    """
    # TODO(synk): at production sizes fold these transposes into BlockSpec
    # index_maps of a gridded kernel instead of extra HBM passes here.
    x = jnp.transpose(inp_tbd, (1, 0, 2)).reshape(B * T, D).astype(jnp.float32)
    ctx = jnp.transpose(ctx_sbd, (1, 0, 2)).reshape(B * S, D).astype(jnp.float32)

    # only padding VECTORS are DMA'd; the causal triangle is rebuilt in-kernel.
    # (key-padding taken from the last query row of the supplied causal|pad mask)
    tgt_pad_add = mask_tgt[:, -1, :].astype(jnp.float32) * NEG      # [B, T]
    src_pad_add = mask_src.astype(jnp.float32).reshape(B, S) * NEG  # [B, S]

    args = (x, ctx, pos_emb.astype(jnp.float32), tgt_pad_add, src_pad_add,
            params["wqkv1"], params["wr1"], params["wo1"],
            params["wq2"], params["wkv2"], params["wo2"],
            params["w1"], params["w2"],
            params["dvec"], params["b1"])

    out_flat, coverage = pl.pallas_call(
        _decoder_layer_kernel,
        out_shape=(jax.ShapeDtypeStruct((B * T, D), jnp.float32),
                   jax.ShapeDtypeStruct((B, H, T, S), jnp.float32)),
        compiler_params=pltpu.CompilerParams(vmem_limit_bytes=32 * 1024 * 1024),
    )(*args)

    out = jnp.transpose(out_flat.reshape(B, T, D), (1, 0, 2))       # [T, B, D]
    return out, coverage, {}


# ---------------- deterministic parameter init (packed layout) ----------------
def init_params(key):
    ks = iter(jax.random.split(key, 32))

    def nrm(shape, scale):
        return scale * jax.random.normal(next(ks), shape, jnp.float32)

    bf16 = jnp.bfloat16
    sc_in = 1.0 / math.sqrt(D)
    sc_ff = 1.0 / math.sqrt(INNER)

    p = {
        # matmul weights stored bf16 (MXU inputs); biases / LN params stay f32
        "wqkv1": nrm((D, 3 * D), sc_in).astype(bf16),
        "wr1":   nrm((D, D), sc_in).astype(bf16),
        "wo1":   nrm((D, D), sc_in).astype(bf16),
        "wq2":   nrm((D, D), sc_in).astype(bf16),
        "wkv2":  nrm((D, 2 * D), sc_in).astype(bf16),
        "wo2":   nrm((D, D), sc_in).astype(bf16),
        "w1":    nrm((D, INNER), sc_in).astype(bf16),
        "w2":    nrm((INNER, D), sc_ff).astype(bf16),
        "b1":    nrm((1, INNER), 0.02),
    }

    rows = [None] * NVEC
    rows[LN1_G] = 1.0 + nrm((D,), 0.1)
    rows[LN1_B] = nrm((D,), 0.1)
    rows[LN2_G] = 1.0 + nrm((D,), 0.1)
    rows[LN2_B] = nrm((D,), 0.1)
    rows[LN3_G] = 1.0 + nrm((D,), 0.1)
    rows[LN3_B] = nrm((D,), 0.1)
    rows[RWB] = nrm((D,), 0.1)     # r_w_bias (heads flattened)
    rows[RRB] = nrm((D,), 0.1)     # r_r_bias
    rows[BQ1] = nrm((D,), 0.02)
    rows[BK1] = nrm((D,), 0.02)
    rows[BV1] = nrm((D,), 0.02)
    rows[BR1] = nrm((D,), 0.02)
    rows[BO1] = nrm((D,), 0.02)
    rows[BQ2] = nrm((D,), 0.02)
    rows[BK2] = nrm((D,), 0.02)
    rows[BV2] = nrm((D,), 0.02)
    rows[BO2] = nrm((D,), 0.02)
    rows[B2_ROW] = nrm((D,), 0.02)
    p["dvec"] = jnp.stack(rows, axis=0)          # [NVEC, D] single f32 slab
    return p


# ---------------- demo ----------------
if __name__ == "__main__":
    key = jax.random.PRNGKey(0)
    kp, kx, kc, kpos = jax.random.split(key, 4)
    params = init_params(kp)

    inp = jax.random.normal(kx, (T, B, D), jnp.float32)       # decoder input [T, B, D]
    ctx = jax.random.normal(kc, (S, B, D), jnp.float32)       # encoder context [S, B, D]
    pos_emb = jax.random.normal(kpos, (T, D), jnp.float32)    # rel. positions T-1..0

    causal = jnp.triu(jnp.ones((T, T), jnp.float32), k=1)     # 1 = masked (future)
    mask_tgt = jnp.broadcast_to(causal, (B, T, T))
    mask_src = jnp.zeros((B, 1, S), jnp.float32).at[1, 0, S - 2:].set(1.0)

    out, cov, cache = relative_transformer_decoder_layer(
        params, inp, ctx, pos_emb, mask_tgt, mask_src)
    out, cov = jax.block_until_ready((out, cov))

    assert out.shape == (T, B, D) and cov.shape == (B, H, T, S)
    assert bool(jnp.all(jnp.isfinite(out))) and bool(jnp.all(jnp.isfinite(cov)))
    print("KERNEL_OK")
</pallas_src>

<mosaic_0001>
module attributes {stable_mosaic.version = 11 : i64} {
  func.func @_decoder_layer_kernel(%arg0: memref<16x32xf32, #tpu.memory_space<vmem>>, %arg1: memref<16x32xf32, #tpu.memory_space<vmem>>, %arg2: memref<8x32xf32, #tpu.memory_space<vmem>>, %arg3: memref<2x8xf32, #tpu.memory_space<vmem>>, %arg4: memref<2x8xf32, #tpu.memory_space<vmem>>, %arg5: memref<32x96xbf16, #tpu.memory_space<vmem>>, %arg6: memref<32x32xbf16, #tpu.memory_space<vmem>>, %arg7: memref<32x32xbf16, #tpu.memory_space<vmem>>, %arg8: memref<32x32xbf16, #tpu.memory_space<vmem>>, %arg9: memref<32x64xbf16, #tpu.memory_space<vmem>>, %arg10: memref<32x32xbf16, #tpu.memory_space<vmem>>, %arg11: memref<32x64xbf16, #tpu.memory_space<vmem>>, %arg12: memref<64x32xbf16, #tpu.memory_space<vmem>>, %arg13: memref<18x32xf32, #tpu.memory_space<vmem>>, %arg14: memref<1x64xf32, #tpu.memory_space<vmem>>, %arg15: memref<16x32xf32, #tpu.memory_space<vmem>>, %arg16: memref<2x4x8x8xf32, #tpu.memory_space<vmem>>) attributes {dimension_semantics = [], scalar_prefetch = 0 : i64, scratch_operands = 0 : i64, tpu.core_type = #tpu.core_type<tc>} {
    %c0 = arith.constant 0 : index
    %c0_0 = arith.constant 0 : index
    %0 = vector.load %arg0[%c0, %c0_0] : memref<16x32xf32, #tpu.memory_space<vmem>>, vector<16x32xf32>
    %c0_1 = arith.constant 0 : index
    %c0_2 = arith.constant 0 : index
    %1 = vector.load %arg1[%c0_1, %c0_2] : memref<16x32xf32, #tpu.memory_space<vmem>>, vector<16x32xf32>
    %2 = tpu.iota {dimensions = array<i32: 0>} : vector<8x8xi32>
    %3 = tpu.iota {dimensions = array<i32: 1>} : vector<8x8xi32>
    %4 = arith.cmpi sgt, %3, %2 : vector<8x8xi32>
    %cst = arith.constant -1.000000e+30 : f32
    %cst_3 = arith.constant 0.000000e+00 : f32
    %5 = vector.broadcast %cst : f32 to vector<8x8xf32>
    %6 = vector.broadcast %cst_3 : f32 to vector<8x8xf32>
    %7 = arith.select %4, %5, %6 : vector<8x8xi1>, vector<8x8xf32>
    %8 = arith.subi %3, %2 : vector<8x8xi32>
    %c7_i32 = arith.constant 7 : i32
    %9 = vector.broadcast %c7_i32 : i32 to vector<8x8xi32>
    %10 = arith.addi %8, %9 : vector<8x8xi32>
    %c0_i32 = arith.constant 0 : i32
    %11 = vector.broadcast %c0_i32 : i32 to vector<8x8xi32>
    %12 = arith.cmpi eq, %10, %11 : vector<8x8xi32>
    %13 = arith.extui %12 : vector<8x8xi1> to vector<8x8xi32>
    %14 = arith.sitofp %13 : vector<8x8xi32> to vector<8x8xf32>
    %c1_i32 = arith.constant 1 : i32
    %15 = vector.broadcast %c1_i32 : i32 to vector<8x8xi32>
    %16 = arith.cmpi eq, %10, %15 : vector<8x8xi32>
    %17 = arith.extui %16 : vector<8x8xi1> to vector<8x8xi32>
    %18 = arith.sitofp %17 : vector<8x8xi32> to vector<8x8xf32>
    %c2_i32 = arith.constant 2 : i32
    %19 = vector.broadcast %c2_i32 : i32 to vector<8x8xi32>
    %20 = arith.cmpi eq, %10, %19 : vector<8x8xi32>
    %21 = arith.extui %20 : vector<8x8xi1> to vector<8x8xi32>
    %22 = arith.sitofp %21 : vector<8x8xi32> to vector<8x8xf32>
    %c3_i32 = arith.constant 3 : i32
    %23 = vector.broadcast %c3_i32 : i32 to vector<8x8xi32>
    %24 = arith.cmpi eq, %10, %23 : vector<8x8xi32>
    %25 = arith.extui %24 : vector<8x8xi1> to vector<8x8xi32>
    %26 = arith.sitofp %25 : vector<8x8xi32> to vector<8x8xf32>
    %c4_i32 = arith.constant 4 : i32
    %27 = vector.broadcast %c4_i32 : i32 to vector<8x8xi32>
    %28 = arith.cmpi eq, %10, %27 : vector<8x8xi32>
    %29 = arith.extui %28 : vector<8x8xi1> to vector<8x8xi32>
    %30 = arith.sitofp %29 : vector<8x8xi32> to vector<8x8xf32>
    %c5_i32 = arith.constant 5 : i32
    %31 = vector.broadcast %c5_i32 : i32 to vector<8x8xi32>
    %32 = arith.cmpi eq, %10, %31 : vector<8x8xi32>
    %33 = arith.extui %32 : vector<8x8xi1> to vector<8x8xi32>
    %34 = arith.sitofp %33 : vector<8x8xi32> to vector<8x8xf32>
    %c6_i32 = arith.constant 6 : i32
    %35 = vector.broadcast %c6_i32 : i32 to vector<8x8xi32>
    %36 = arith.cmpi eq, %10, %35 : vector<8x8xi32>
    %37 = arith.extui %36 : vector<8x8xi1> to vector<8x8xi32>
    %38 = arith.sitofp %37 : vector<8x8xi32> to vector<8x8xf32>
    %c7_i32_4 = arith.constant 7 : i32
    %39 = vector.broadcast %c7_i32_4 : i32 to vector<8x8xi32>
    %40 = arith.cmpi eq, %10, %39 : vector<8x8xi32>
    %41 = arith.extui %40 : vector<8x8xi1> to vector<8x8xi32>
    %42 = arith.sitofp %41 : vector<8x8xi32> to vector<8x8xf32>
    %43 = vector.shape_cast %7 : vector<8x8xf32> to vector<1x8x8xf32>
    %c0_5 = arith.constant 0 : index
    %c0_6 = arith.constant 0 : index
    %44 = vector.load %arg3[%c0_5, %c0_6] : memref<2x8xf32, #tpu.memory_space<vmem>>, vector<2x8xf32>
    %45 = vector.shape_cast %44 : vector<2x8xf32> to vector<2x1x8xf32>
    %46 = vector.broadcast %43 : vector<1x8x8xf32> to vector<2x8x8xf32>
    %47 = vector.broadcast %45 : vector<2x1x8xf32> to vector<2x8x8xf32>
    %48 = arith.addf %46, %47 : vector<2x8x8xf32>
    %c0_7 = arith.constant 0 : index
    %c0_8 = arith.constant 0 : index
    %49 = vector.load %arg4[%c0_7, %c0_8] : memref<2x8xf32, #tpu.memory_space<vmem>>, vector<2x8xf32>
    %50 = vector.shape_cast %49 : vector<2x8xf32> to vector<2x1x8xf32>
    %c0_9 = arith.constant 0 : index
    %c0_10 = arith.constant 0 : index
    %51 = vector.load %arg13[%c0_9, %c0_10] : memref<18x32xf32, #tpu.memory_space<vmem>>, vector<1x32xf32>
    %c1 = arith.constant 1 : index
    %c0_11 = arith.constant 0 : index
    %52 = vector.load %arg13[%c1, %c0_11] : memref<18x32xf32, #tpu.memory_space<vmem>>, vector<1x32xf32>
    %cst_12 = arith.constant dense<0.000000e+00> : vector<16xf32>
    %53 = vector.multi_reduction <add>, %0, %cst_12 [1] : vector<16x32xf32> to vector<16xf32>
    %54 = vector.shape_cast %53 : vector<16xf32> to vector<16x1xf32>
    %cst_13 = arith.constant 3.200000e+01 : f32
    %55 = vector.broadcast %cst_13 : f32 to vector<16x1xf32>
    %56 = arith.divf %54, %55 : vector<16x1xf32>
    %57 = vector.broadcast %56 : vector<16x1xf32> to vector<16x32xf32>
    %58 = arith.subf %0, %57 : vector<16x32xf32>
    %59 = arith.mulf %58, %58 : vector<16x32xf32>
    %cst_14 = arith.constant dense<0.000000e+00> : vector<16xf32>
    %60 = vector.multi_reduction <add>, %59, %cst_14 [1] : vector<16x32xf32> to vector<16xf32>
    %61 = vector.shape_cast %60 : vector<16xf32> to vector<16x1xf32>
    %cst_15 = arith.constant 3.200000e+01 : f32
    %62 = vector.broadcast %cst_15 : f32 to vector<16x1xf32>
    %63 = arith.divf %61, %62 : vector<16x1xf32>
    %64 = vector.broadcast %56 : vector<16x1xf32> to vector<16x32xf32>
    %65 = arith.subf %0, %64 : vector<16x32xf32>
    %cst_16 = arith.constant 9.99999974E-6 : f32
    %66 = vector.broadcast %cst_16 : f32 to vector<16x1xf32>
    %67 = arith.addf %63, %66 : vector<16x1xf32>
    %68 = math.rsqrt %67 : vector<16x1xf32>
    %69 = vector.broadcast %68 : vector<16x1xf32> to vector<16x32xf32>
    %70 = arith.mulf %65, %69 : vector<16x32xf32>
    %71 = vector.broadcast %51 : vector<1x32xf32> to vector<16x32xf32>
    %72 = arith.mulf %70, %71 : vector<16x32xf32>
    %73 = vector.broadcast %52 : vector<1x32xf32> to vector<16x32xf32>
    %74 = arith.addf %72, %73 : vector<16x32xf32>
    %75 = arith.truncf %74 : vector<16x32xf32> to vector<16x32xbf16>
    %c0_17 = arith.constant 0 : index
    %c0_18 = arith.constant 0 : index
    %76 = vector.load %arg5[%c0_17, %c0_18] : memref<32x96xbf16, #tpu.memory_space<vmem>>, vector<32x96xbf16>
    %cst_19 = arith.constant dense<0.000000e+00> : vector<16x96xf32>
    %77 = tpu.matmul %75, %76, %cst_19 {dimension_numbers = #tpu.dot_dimension_numbers<[1], [0], [0], [1], [0, 0, 1, 1], [], []>} : vector<16x32xbf16>, vector<32x96xbf16>, vector<16x96xf32> -> vector<16x96xf32>
    %78 = vector.extract_strided_slice %77 {offsets = [0, 0], sizes = [16, 32], strides = [1, 1]} : vector<16x96xf32> to vector<16x32xf32>
    %c8 = arith.constant 8 : index
    %c0_20 = arith.constant 0 : index
    %79 = vector.load %arg13[%c8, %c0_20] : memref<18x32xf32, #tpu.memory_space<vmem>>, vector<1x32xf32>
    %80 = vector.broadcast %79 : vector<1x32xf32> to vector<16x32xf32>
    %81 = arith.addf %78, %80 : vector<16x32xf32>
    %82 = vector.extract_strided_slice %77 {offsets = [0, 32], sizes = [16, 32], strides = [1, 1]} : vector<16x96xf32> to vector<16x32xf32>
    %c9 = arith.constant 9 : index
    %c0_21 = arith.constant 0 : index
    %83 = vector.load %arg13[%c9, %c0_21] : memref<18x32xf32, #tpu.memory_space<vmem>>, vector<1x32xf32>
    %84 = vector.broadcast %83 : vector<1x32xf32> to vector<16x32xf32>
    %85 = arith.addf %82, %84 : vector<16x32xf32>
    %86 = vector.extract_strided_slice %77 {offsets = [0, 64], sizes = [16, 32], strides = [1, 1]} : vector<16x96xf32> to vector<16x32xf32>
    %c10 = arith.constant 10 : index
    %c0_22 = arith.constant 0 : index
    %87 = vector.load %arg13[%c10, %c0_22] : memref<18x32xf32, #tpu.memory_space<vmem>>, vector<1x32xf32>
    %88 = vector.broadcast %87 : vector<1x32xf32> to vector<16x32xf32>
    %89 = arith.addf %86, %88 : vector<16x32xf32>
    %c0_23 = arith.constant 0 : index
    %c0_24 = arith.constant 0 : index
    %90 = vector.load %arg2[%c0_23, %c0_24] : memref<8x32xf32, #tpu.memory_space<vmem>>, vector<8x32xf32>
    %91 = arith.truncf %90 : vector<8x32xf32> to vector<8x32xbf16>
    %c0_25 = arith.constant 0 : index
    %c0_26 = arith.constant 0 : index
    %92 = vector.load %arg6[%c0_25, %c0_26] : memref<32x32xbf16, #tpu.memory_space<vmem>>, vector<32x32xbf16>
    %cst_27 = arith.constant dense<0.000000e+00> : vector<8x32xf32>
    %93 = tpu.matmul %91, %92, %cst_27 {dimension_numbers = #tpu.dot_dimension_numbers<[1], [0], [0], [1], [0, 0, 1, 1], [], []>} : vector<8x32xbf16>, vector<32x32xbf16>, vector<8x32xf32> -> vector<8x32xf32>
    %c11 = arith.constant 11 : index
    %c0_28 = arith.constant 0 : index
    %94 = vector.load %arg13[%c11, %c0_28] : memref<18x32xf32, #tpu.memory_space<vmem>>, vector<1x32xf32>
    %95 = vector.broadcast %94 : vector<1x32xf32> to vector<8x32xf32>
    %96 = arith.addf %93, %95 : vector<8x32xf32>
    %c6 = arith.constant 6 : index
    %c0_29 = arith.constant 0 : index
    %97 = vector.load %arg13[%c6, %c0_29] : memref<18x32xf32, #tpu.memory_space<vmem>>, vector<1x32xf32>
    %98 = vector.broadcast %97 : vector<1x32xf32> to vector<16x32xf32>
    %99 = arith.addf %81, %98 : vector<16x32xf32>
    %c7 = arith.constant 7 : index
    %c0_30 = arith.constant 0 : index
    %100 = vector.load %arg13[%c7, %c0_30] : memref<18x32xf32, #tpu.memory_space<vmem>>, vector<1x32xf32>
    %101 = vector.broadcast %100 : vector<1x32xf32> to vector<16x32xf32>
    %102 = arith.addf %81, %101 : vector<16x32xf32>
    %cst_31 = arith.constant 0.000000e+00 : f32
    %103 = vector.broadcast %cst_31 : f32 to vector<16x32xf32>
    %104 = vector.extract_strided_slice %99 {offsets = [0, 0], sizes = [16, 8], strides = [1, 1]} : vector<16x32xf32> to vector<16x8xf32>
    %105 = vector.shape_cast %104 : vector<16x8xf32> to vector<2x8x8xf32>
    %106 = arith.truncf %105 : vector<2x8x8xf32> to vector<2x8x8xbf16>
    %107 = vector.extract_strided_slice %85 {offsets = [0, 0], sizes = [16, 8], strides = [1, 1]} : vector<16x32xf32> to vector<16x8xf32>
    %108 = vector.shape_cast %107 : vector<16x8xf32> to vector<2x8x8xf32>
    %109 = arith.truncf %108 : vector<2x8x8xf32> to vector<2x8x8xbf16>
    %110 = vector.extract_strided_slice %89 {offsets = [0, 0], sizes = [16, 8], strides = [1, 1]} : vector<16x32xf32> to vector<16x8xf32>
    %111 = vector.shape_cast %110 : vector<16x8xf32> to vector<2x8x8xf32>
    %112 = arith.truncf %111 : vector<2x8x8xf32> to vector<2x8x8xbf16>
    %113 = vector.extract_strided_slice %96 {offsets = [0, 0], sizes = [8, 8], strides = [1, 1]} : vector<8x32xf32> to vector<8x8xf32>
    %114 = arith.truncf %113 : vector<8x8xf32> to vector<8x8xbf16>
    "tpu.trace_start"() <{level = 10 : i32, message = "bqd,bkd->bqk"}> : () -> ()
    %cst_32 = arith.constant dense<0.000000e+00> : vector<2x8x8xf32>
    %115 = tpu.matmul %106, %109, %cst_32 {dimension_numbers = #tpu.dot_dimension_numbers<[2], [2], [1], [1], [0, 0, 0, 1, 1, 1], [0], [0]>} : vector<2x8x8xbf16>, vector<2x8x8xbf16>, vector<2x8x8xf32> -> vector<2x8x8xf32>
    "tpu.trace_stop"() : () -> ()
    %116 = vector.extract_strided_slice %102 {offsets = [0, 0], sizes = [16, 8], strides = [1, 1]} : vector<16x32xf32> to vector<16x8xf32>
    %117 = arith.truncf %116 : vector<16x8xf32> to vector<16x8xbf16>
    %cst_33 = arith.constant dense<0.000000e+00> : vector<16x8xf32>
    %118 = tpu.matmul %117, %114, %cst_33 {dimension_numbers = #tpu.dot_dimension_numbers<[1], [1], [0], [0], [0, 0, 1, 0], [], []>} : vector<16x8xbf16>, vector<8x8xbf16>, vector<16x8xf32> -> vector<16x8xf32>
    %119 = vector.shape_cast %118 : vector<16x8xf32> to vector<2x8x8xf32>
    %cst_34 = arith.constant 0.000000e+00 : f32
    %120 = vector.broadcast %cst_34 : f32 to vector<2x8x8xf32>
    %121 = vector.extract_strided_slice %119 {offsets = [0, 0, 0], sizes = [2, 8, 1], strides = [1, 1, 1]} : vector<2x8x8xf32> to vector<2x8x1xf32>
    %122 = vector.shape_cast %14 : vector<8x8xf32> to vector<1x8x8xf32>
    %123 = vector.broadcast %121 : vector<2x8x1xf32> to vector<2x8x8xf32>
    %124 = vector.broadcast %122 : vector<1x8x8xf32> to vector<2x8x8xf32>
    %125 = arith.mulf %123, %124 : vector<2x8x8xf32>
    %126 = arith.addf %120, %125 : vector<2x8x8xf32>
    %127 = vector.extract_strided_slice %119 {offsets = [0, 0, 1], sizes = [2, 8, 1], strides = [1, 1, 1]} : vector<2x8x8xf32> to vector<2x8x1xf32>
    %128 = vector.shape_cast %18 : vector<8x8xf32> to vector<1x8x8xf32>
    %129 = vector.broadcast %127 : vector<2x8x1xf32> to vector<2x8x8xf32>
    %130 = vector.broadcast %128 : vector<1x8x8xf32> to vector<2x8x8xf32>
    %131 = arith.mulf %129, %130 : vector<2x8x8xf32>
    %132 = arith.addf %126, %131 : vector<2x8x8xf32>
    %133 = vector.extract_strided_slice %119 {offsets = [0, 0, 2], sizes = [2, 8, 1], strides = [1, 1, 1]} : vector<2x8x8xf32> to vector<2x8x1xf32>
    %134 = vector.shape_cast %22 : vector<8x8xf32> to vector<1x8x8xf32>
    %135 = vector.broadcast %133 : vector<2x8x1xf32> to vector<2x8x8xf32>
    %136 = vector.broadcast %134 : vector<1x8x8xf32> to vector<2x8x8xf32>
    %137 = arith.mulf %135, %136 : vector<2x8x8xf32>
    %138 = arith.addf %132, %137 : vector<2x8x8xf32>
    %139 = vector.extract_strided_slice %119 {offsets = [0, 0, 3], sizes = [2, 8, 1], strides = [1, 1, 1]} : vector<2x8x8xf32> to vector<2x8x1xf32>
    %140 = vector.shape_cast %26 : vector<8x8xf32> to vector<1x8x8xf32>
    %141 = vector.broadcast %139 : vector<2x8x1xf32> to vector<2x8x8xf32>
    %142 = vector.broadcast %140 : vector<1x8x8xf32> to vector<2x8x8xf32>
    %143 = arith.mulf %141, %142 : vector<2x8x8xf32>
    %144 = arith.addf %138, %143 : vector<2x8x8xf32>
    %145 = vector.extract_strided_slice %119 {offsets = [0, 0, 4], sizes = [2, 8, 1], strides = [1, 1, 1]} : vector<2x8x8xf32> to vector<2x8x1xf32>
    %146 = vector.shape_cast %30 : vector<8x8xf32> to vector<1x8x8xf32>
    %147 = vector.broadcast %145 : vector<2x8x1xf32> to vector<2x8x8xf32>
    %148 = vector.broadcast %146 : vector<1x8x8xf32> to vector<2x8x8xf32>
    %149 = arith.mulf %147, %148 : vector<2x8x8xf32>
    %150 = arith.addf %144, %149 : vector<2x8x8xf32>
    %151 = vector.extract_strided_slice %119 {offsets = [0, 0, 5], sizes = [2, 8, 1], strides = [1, 1, 1]} : vector<2x8x8xf32> to vector<2x8x1xf32>
    %152 = vector.shape_cast %34 : vector<8x8xf32> to vector<1x8x8xf32>
    %153 = vector.broadcast %151 : vector<2x8x1xf32> to vector<2x8x8xf32>
    %154 = vector.broadcast %152 : vector<1x8x8xf32> to vector<2x8x8xf32>
    %155 = arith.mulf %153, %154 : vector<2x8x8xf32>
    %156 = arith.addf %150, %155 : vector<2x8x8xf32>
    %157 = vector.extract_strided_slice %119 {offsets = [0, 0, 6], sizes = [2, 8, 1], strides = [1, 1, 1]} : vector<2x8x8xf32> to vector<2x8x1xf32>
    %158 = vector.shape_cast %38 : vector<8x8xf32> to vector<1x8x8xf32>
    %159 = vector.broadcast %157 : vector<2x8x1xf32> to vector<2x8x8xf32>
    %160 = vector.broadcast %158 : vector<1x8x8xf32> to vector<2x8x8xf32>
    %161 = arith.mulf %159, %160 : vector<2x8x8xf32>
    %162 = arith.addf %156, %161 : vector<2x8x8xf32>
    %163 = vector.extract_strided_slice %119 {offsets = [0, 0, 7], sizes = [2, 8, 1], strides = [1, 1, 1]} : vector<2x8x8xf32> to vector<2x8x1xf32>
    %164 = vector.shape_cast %42 : vector<8x8xf32> to vector<1x8x8xf32>
    %165 = vector.broadcast %163 : vector<2x8x1xf32> to vector<2x8x8xf32>
    %166 = vector.broadcast %164 : vector<1x8x8xf32> to vector<2x8x8xf32>
    %167 = arith.mulf %165, %166 : vector<2x8x8xf32>
    %168 = arith.addf %162, %167 : vector<2x8x8xf32>
    %169 = arith.addf %115, %168 : vector<2x8x8xf32>
    %cst_35 = arith.constant 0.353553385 : f32
    %170 = vector.broadcast %cst_35 : f32 to vector<2x8x8xf32>
    %171 = arith.mulf %169, %170 : vector<2x8x8xf32>
    %172 = arith.addf %171, %48 : vector<2x8x8xf32>
    %cst_36 = arith.constant dense<0xFF800000> : vector<2x8xf32>
    %173 = vector.multi_reduction <maximumf>, %172, %cst_36 [2] : vector<2x8x8xf32> to vector<2x8xf32>
    %174 = vector.shape_cast %173 : vector<2x8xf32> to vector<2x8x1xf32>
    %175 = vector.broadcast %174 : vector<2x8x1xf32> to vector<2x8x8xf32>
    %176 = arith.subf %172, %175 : vector<2x8x8xf32>
    %177 = math.exp %176 : vector<2x8x8xf32>
    %cst_37 = arith.constant dense<0.000000e+00> : vector<2x8xf32>
    %178 = vector.multi_reduction <add>, %177, %cst_37 [2] : vector<2x8x8xf32> to vector<2x8xf32>
    %179 = vector.shape_cast %178 : vector<2x8xf32> to vector<2x8x1xf32>
    %180 = tpu.reciprocal %179 {approx = true} : vector<2x8x1xf32> -> vector<2x8x1xf32>
    %181 = vector.broadcast %180 : vector<2x8x1xf32> to vector<2x8x8xf32>
    %182 = arith.mulf %177, %181 : vector<2x8x8xf32>
    %183 = arith.truncf %182 : vector<2x8x8xf32> to vector<2x8x8xbf16>
    "tpu.trace_start"() <{level = 10 : i32, message = "bqk,bkd->bqd"}> : () -> ()
    %cst_38 = arith.constant dense<0.000000e+00> : vector<2x8x8xf32>
    %184 = tpu.matmul %183, %112, %cst_38 {dimension_numbers = #tpu.dot_dimension_numbers<[2], [1], [1], [2], [0, 0, 0, 1, 1, 2], [0], [0]>} : vector<2x8x8xbf16>, vector<2x8x8xbf16>, vector<2x8x8xf32> -> vector<2x8x8xf32>
    "tpu.trace_stop"() : () -> ()
    %185 = vector.shape_cast %184 : vector<2x8x8xf32> to vector<16x8xf32>
    %186 = arith.truncf %185 : vector<16x8xf32> to vector<16x8xbf16>
    %c0_39 = arith.constant 0 : index
    %c0_40 = arith.constant 0 : index
    %187 = vector.load %arg7[%c0_39, %c0_40] : memref<32x32xbf16, #tpu.memory_space<vmem>>, vector<8x32xbf16>
    %cst_41 = arith.constant dense<0.000000e+00> : vector<16x32xf32>
    %188 = tpu.matmul %186, %187, %cst_41 {dimension_numbers = #tpu.dot_dimension_numbers<[1], [0], [0], [1], [0, 0, 1, 1], [], []>} : vector<16x8xbf16>, vector<8x32xbf16>, vector<16x32xf32> -> vector<16x32xf32>
    %189 = arith.addf %103, %188 : vector<16x32xf32>
    %190 = vector.extract_strided_slice %99 {offsets = [0, 8], sizes = [16, 8], strides = [1, 1]} : vector<16x32xf32> to vector<16x8xf32>
    %191 = vector.shape_cast %190 : vector<16x8xf32> to vector<2x8x8xf32>
    %192 = arith.truncf %191 : vector<2x8x8xf32> to vector<2x8x8xbf16>
    %193 = vector.extract_strided_slice %85 {offsets = [0, 8], sizes = [16, 8], strides = [1, 1]} : vector<16x32xf32> to vector<16x8xf32>
    %194 = vector.shape_cast %193 : vector<16x8xf32> to vector<2x8x8xf32>
    %195 = arith.truncf %194 : vector<2x8x8xf32> to vector<2x8x8xbf16>
    %196 = vector.extract_strided_slice %89 {offsets = [0, 8], sizes = [16, 8], strides = [1, 1]} : vector<16x32xf32> to vector<16x8xf32>
    %197 = vector.shape_cast %196 : vector<16x8xf32> to vector<2x8x8xf32>
    %198 = arith.truncf %197 : vector<2x8x8xf32> to vector<2x8x8xbf16>
    %199 = vector.extract_strided_slice %96 {offsets = [0, 8], sizes = [8, 8], strides = [1, 1]} : vector<8x32xf32> to vector<8x8xf32>
    %200 = arith.truncf %199 : vector<8x8xf32> to vector<8x8xbf16>
    "tpu.trace_start"() <{level = 10 : i32, message = "bqd,bkd->bqk"}> : () -> ()
    %cst_42 = arith.constant dense<0.000000e+00> : vector<2x8x8xf32>
    %201 = tpu.matmul %192, %195, %cst_42 {dimension_numbers = #tpu.dot_dimension_numbers<[2], [2], [1], [1], [0, 0, 0, 1, 1, 1], [0], [0]>} : vector<2x8x8xbf16>, vector<2x8x8xbf16>, vector<2x8x8xf32> -> vector<2x8x8xf32>
    "tpu.trace_stop"() : () -> ()
    %202 = vector.extract_strided_slice %102 {offsets = [0, 8], sizes = [16, 8], strides = [1, 1]} : vector<16x32xf32> to vector<16x8xf32>
    %203 = arith.truncf %202 : vector<16x8xf32> to vector<16x8xbf16>
    %cst_43 = arith.constant dense<0.000000e+00> : vector<16x8xf32>
    %204 = tpu.matmul %203, %200, %cst_43 {dimension_numbers = #tpu.dot_dimension_numbers<[1], [1], [0], [0], [0, 0, 1, 0], [], []>} : vector<16x8xbf16>, vector<8x8xbf16>, vector<16x8xf32> -> vector<16x8xf32>
    %205 = vector.shape_cast %204 : vector<16x8xf32> to vector<2x8x8xf32>
    %cst_44 = arith.constant 0.000000e+00 : f32
    %206 = vector.broadcast %cst_44 : f32 to vector<2x8x8xf32>
    %207 = vector.extract_strided_slice %205 {offsets = [0, 0, 0], sizes = [2, 8, 1], strides = [1, 1, 1]} : vector<2x8x8xf32> to vector<2x8x1xf32>
    %208 = vector.shape_cast %14 : vector<8x8xf32> to vector<1x8x8xf32>
    %209 = vector.broadcast %207 : vector<2x8x1xf32> to vector<2x8x8xf32>
    %210 = vector.broadcast %208 : vector<1x8x8xf32> to vector<2x8x8xf32>
    %211 = arith.mulf %209, %210 : vector<2x8x8xf32>
    %212 = arith.addf %206, %211 : vector<2x8x8xf32>
    %213 = vector.extract_strided_slice %205 {offsets = [0, 0, 1], sizes = [2, 8, 1], strides = [1, 1, 1]} : vector<2x8x8xf32> to vector<2x8x1xf32>
    %214 = vector.shape_cast %18 : vector<8x8xf32> to vector<1x8x8xf32>
    %215 = vector.broadcast %213 : vector<2x8x1xf32> to vector<2x8x8xf32>
    %216 = vector.broadcast %214 : vector<1x8x8xf32> to vector<2x8x8xf32>
    %217 = arith.mulf %215, %216 : vector<2x8x8xf32>
    %218 = arith.addf %212, %217 : vector<2x8x8xf32>
    %219 = vector.extract_strided_slice %205 {offsets = [0, 0, 2], sizes = [2, 8, 1], strides = [1, 1, 1]} : vector<2x8x8xf32> to vector<2x8x1xf32>
    %220 = vector.shape_cast %22 : vector<8x8xf32> to vector<1x8x8xf32>
    %221 = vector.broadcast %219 : vector<2x8x1xf32> to vector<2x8x8xf32>
    %222 = vector.broadcast %220 : vector<1x8x8xf32> to vector<2x8x8xf32>
    %223 = arith.mulf %221, %222 : vector<2x8x8xf32>
    %224 = arith.addf %218, %223 : vector<2x8x8xf32>
    %225 = vector.extract_strided_slice %205 {offsets = [0, 0, 3], sizes = [2, 8, 1], strides = [1, 1, 1]} : vector<2x8x8xf32> to vector<2x8x1xf32>
    %226 = vector.shape_cast %26 : vector<8x8xf32> to vector<1x8x8xf32>
    %227 = vector.broadcast %225 : vector<2x8x1xf32> to vector<2x8x8xf32>
    %228 = vector.broadcast %226 : vector<1x8x8xf32> to vector<2x8x8xf32>
    %229 = arith.mulf %227, %228 : vector<2x8x8xf32>
    %230 = arith.addf %224, %229 : vector<2x8x8xf32>
    %231 = vector.extract_strided_slice %205 {offsets = [0, 0, 4], sizes = [2, 8, 1], strides = [1, 1, 1]} : vector<2x8x8xf32> to vector<2x8x1xf32>
    %232 = vector.shape_cast %30 : vector<8x8xf32> to vector<1x8x8xf32>
    %233 = vector.broadcast %231 : vector<2x8x1xf32> to vector<2x8x8xf32>
    %234 = vector.broadcast %232 : vector<1x8x8xf32> to vector<2x8x8xf32>
    %235 = arith.mulf %233, %234 : vector<2x8x8xf32>
    %236 = arith.addf %230, %235 : vector<2x8x8xf32>
    %237 = vector.extract_strided_slice %205 {offsets = [0, 0, 5], sizes = [2, 8, 1], strides = [1, 1, 1]} : vector<2x8x8xf32> to vector<2x8x1xf32>
    %238 = vector.shape_cast %34 : vector<8x8xf32> to vector<1x8x8xf32>
    %239 = vector.broadcast %237 : vector<2x8x1xf32> to vector<2x8x8xf32>
    %240 = vector.broadcast %238 : vector<1x8x8xf32> to vector<2x8x8xf32>
    %241 = arith.mulf %239, %240 : vector<2x8x8xf32>
    %242 = arith.addf %236, %241 : vector<2x8x8xf32>
    %243 = vector.extract_strided_slice %205 {offsets = [0, 0, 6], sizes = [2, 8, 1], strides = [1, 1, 1]} : vector<2x8x8xf32> to vector<2x8x1xf32>
    %244 = vector.shape_cast %38 : vector<8x8xf32> to vector<1x8x8xf32>
    %245 = vector.broadcast %243 : vector<2x8x1xf32> to vector<2x8x8xf32>
    %246 = vector.broadcast %244 : vector<1x8x8xf32> to vector<2x8x8xf32>
    %247 = arith.mulf %245, %246 : vector<2x8x8xf32>
    %248 = arith.addf %242, %247 : vector<2x8x8xf32>
    %249 = vector.extract_strided_slice %205 {offsets = [0, 0, 7], sizes = [2, 8, 1], strides = [1, 1, 1]} : vector<2x8x8xf32> to vector<2x8x1xf32>
    %250 = vector.shape_cast %42 : vector<8x8xf32> to vector<1x8x8xf32>
    %251 = vector.broadcast %249 : vector<2x8x1xf32> to vector<2x8x8xf32>
    %252 = vector.broadcast %250 : vector<1x8x8xf32> to vector<2x8x8xf32>
    %253 = arith.mulf %251, %252 : vector<2x8x8xf32>
    %254 = arith.addf %248, %253 : vector<2x8x8xf32>
    %255 = arith.addf %201, %254 : vector<2x8x8xf32>
    %cst_45 = arith.constant 0.353553385 : f32
    %256 = vector.broadcast %cst_45 : f32 to vector<2x8x8xf32>
    %257 = arith.mulf %255, %256 : vector<2x8x8xf32>
    %258 = arith.addf %257, %48 : vector<2x8x8xf32>
    %cst_46 = arith.constant dense<0xFF800000> : vector<2x8xf32>
    %259 = vector.multi_reduction <maximumf>, %258, %cst_46 [2] : vector<2x8x8xf32> to vector<2x8xf32>
    %260 = vector.shape_cast %259 : vector<2x8xf32> to vector<2x8x1xf32>
    %261 = vector.broadcast %260 : vector<2x8x1xf32> to vector<2x8x8xf32>
    %262 = arith.subf %258, %261 : vector<2x8x8xf32>
    %263 = math.exp %262 : vector<2x8x8xf32>
    %cst_47 = arith.constant dense<0.000000e+00> : vector<2x8xf32>
    %264 = vector.multi_reduction <add>, %263, %cst_47 [2] : vector<2x8x8xf32> to vector<2x8xf32>
    %265 = vector.shape_cast %264 : vector<2x8xf32> to vector<2x8x1xf32>
    %266 = tpu.reciprocal %265 {approx = true} : vector<2x8x1xf32> -> vector<2x8x1xf32>
    %267 = vector.broadcast %266 : vector<2x8x1xf32> to vector<2x8x8xf32>
    %268 = arith.mulf %263, %267 : vector<2x8x8xf32>
    %269 = arith.truncf %268 : vector<2x8x8xf32> to vector<2x8x8xbf16>
    "tpu.trace_start"() <{level = 10 : i32, message = "bqk,bkd->bqd"}> : () -> ()
    %cst_48 = arith.constant dense<0.000000e+00> : vector<2x8x8xf32>
    %270 = tpu.matmul %269, %198, %cst_48 {dimension_numbers = #tpu.dot_dimension_numbers<[2], [1], [1], [2], [0, 0, 0, 1, 1, 2], [0], [0]>} : vector<2x8x8xbf16>, vector<2x8x8xbf16>, vector<2x8x8xf32> -> vector<2x8x8xf32>
    "tpu.trace_stop"() : () -> ()
    %271 = vector.shape_cast %270 : vector<2x8x8xf32> to vector<16x8xf32>
    %272 = arith.truncf %271 : vector<16x8xf32> to vector<16x8xbf16>
    %c8_49 = arith.constant 8 : index
    %c0_50 = arith.constant 0 : index
    %273 = vector.load %arg7[%c8_49, %c0_50] : memref<32x32xbf16, #tpu.memory_space<vmem>>, vector<8x32xbf16>
    %cst_51 = arith.constant dense<0.000000e+00> : vector<16x32xf32>
    %274 = tpu.matmul %272, %273, %cst_51 {dimension_numbers = #tpu.dot_dimension_numbers<[1], [0], [0], [1], [0, 0, 1, 1], [], []>} : vector<16x8xbf16>, vector<8x32xbf16>, vector<16x32xf32> -> vector<16x32xf32>
    %275 = arith.addf %189, %274 : vector<16x32xf32>
    %276 = vector.extract_strided_slice %99 {offsets = [0, 16], sizes = [16, 8], strides = [1, 1]} : vector<16x32xf32> to vector<16x8xf32>
    %277 = vector.shape_cast %276 : vector<16x8xf32> to vector<2x8x8xf32>
    %278 = arith.truncf %277 : vector<2x8x8xf32> to vector<2x8x8xbf16>
    %279 = vector.extract_strided_slice %85 {offsets = [0, 16], sizes = [16, 8], strides = [1, 1]} : vector<16x32xf32> to vector<16x8xf32>
    %280 = vector.shape_cast %279 : vector<16x8xf32> to vector<2x8x8xf32>
    %281 = arith.truncf %280 : vector<2x8x8xf32> to vector<2x8x8xbf16>
    %282 = vector.extract_strided_slice %89 {offsets = [0, 16], sizes = [16, 8], strides = [1, 1]} : vector<16x32xf32> to vector<16x8xf32>
    %283 = vector.shape_cast %282 : vector<16x8xf32> to vector<2x8x8xf32>
    %284 = arith.truncf %283 : vector<2x8x8xf32> to vector<2x8x8xbf16>
    %285 = vector.extract_strided_slice %96 {offsets = [0, 16], sizes = [8, 8], strides = [1, 1]} : vector<8x32xf32> to vector<8x8xf32>
    %286 = arith.truncf %285 : vector<8x8xf32> to vector<8x8xbf16>
    "tpu.trace_start"() <{level = 10 : i32, message = "bqd,bkd->bqk"}> : () -> ()
    %cst_52 = arith.constant dense<0.000000e+00> : vector<2x8x8xf32>
    %287 = tpu.matmul %278, %281, %cst_52 {dimension_numbers = #tpu.dot_dimension_numbers<[2], [2], [1], [1], [0, 0, 0, 1, 1, 1], [0], [0]>} : vector<2x8x8xbf16>, vector<2x8x8xbf16>, vector<2x8x8xf32> -> vector<2x8x8xf32>
    "tpu.trace_stop"() : () -> ()
    %288 = vector.extract_strided_slice %102 {offsets = [0, 16], sizes = [16, 8], strides = [1, 1]} : vector<16x32xf32> to vector<16x8xf32>
    %289 = arith.truncf %288 : vector<16x8xf32> to vector<16x8xbf16>
    %cst_53 = arith.constant dense<0.000000e+00> : vector<16x8xf32>
    %290 = tpu.matmul %289, %286, %cst_53 {dimension_numbers = #tpu.dot_dimension_numbers<[1], [1], [0], [0], [0, 0, 1, 0], [], []>} : vector<16x8xbf16>, vector<8x8xbf16>, vector<16x8xf32> -> vector<16x8xf32>
    %291 = vector.shape_cast %290 : vector<16x8xf32> to vector<2x8x8xf32>
    %cst_54 = arith.constant 0.000000e+00 : f32
    %292 = vector.broadcast %cst_54 : f32 to vector<2x8x8xf32>
    %293 = vector.extract_strided_slice %291 {offsets = [0, 0, 0], sizes = [2, 8, 1], strides = [1, 1, 1]} : vector<2x8x8xf32> to vector<2x8x1xf32>
    %294 = vector.shape_cast %14 : vector<8x8xf32> to vector<1x8x8xf32>
    %295 = vector.broadcast %293 : vector<2x8x1xf32> to vector<2x8x8xf32>
    %296 = vector.broadcast %294 : vector<1x8x8xf32> to vector<2x8x8xf32>
    %297 = arith.mulf %295, %296 : vector<2x8x8xf32>
    %298 = arith.addf %292, %297 : vector<2x8x8xf32>
    %299 = vector.extract_strided_slice %291 {offsets = [0, 0, 1], sizes = [2, 8, 1], strides = [1, 1, 1]} : vector<2x8x8xf32> to vector<2x8x1xf32>
    %300 = vector.shape_cast %18 : vector<8x8xf32> to vector<1x8x8xf32>
    %301 = vector.broadcast %299 : vector<2x8x1xf32> to vector<2x8x8xf32>
    %302 = vector.broadcast %300 : vector<1x8x8xf32> to vector<2x8x8xf32>
    %303 = arith.mulf %301, %302 : vector<2x8x8xf32>
    %304 = arith.addf %298, %303 : vector<2x8x8xf32>
    %305 = vector.extract_strided_slice %291 {offsets = [0, 0, 2], sizes = [2, 8, 1], strides = [1, 1, 1]} : vector<2x8x8xf32> to vector<2x8x1xf32>
    %306 = vector.shape_cast %22 : vector<8x8xf32> to vector<1x8x8xf32>
    %307 = vector.broadcast %305 : vector<2x8x1xf32> to vector<2x8x8xf32>
    %308 = vector.broadcast %306 : vector<1x8x8xf32> to vector<2x8x8xf32>
    %309 = arith.mulf %307, %308 : vector<2x8x8xf32>
    %310 = arith.addf %304, %309 : vector<2x8x8xf32>
    %311 = vector.extract_strided_slice %291 {offsets = [0, 0, 3], sizes = [2, 8, 1], strides = [1, 1, 1]} : vector<2x8x8xf32> to vector<2x8x1xf32>
    %312 = vector.shape_cast %26 : vector<8x8xf32> to vector<1x8x8xf32>
    %313 = vector.broadcast %311 : vector<2x8x1xf32> to vector<2x8x8xf32>
    %314 = vector.broadcast %312 : vector<1x8x8xf32> to vector<2x8x8xf32>
    %315 = arith.mulf %313, %314 : vector<2x8x8xf32>
    %316 = arith.addf %310, %315 : vector<2x8x8xf32>
    %317 = vector.extract_strided_slice %291 {offsets = [0, 0, 4], sizes = [2, 8, 1], strides = [1, 1, 1]} : vector<2x8x8xf32> to vector<2x8x1xf32>
    %318 = vector.shape_cast %30 : vector<8x8xf32> to vector<1x8x8xf32>
    %319 = vector.broadcast %317 : vector<2x8x1xf32> to vector<2x8x8xf32>
    %320 = vector.broadcast %318 : vector<1x8x8xf32> to vector<2x8x8xf32>
    %321 = arith.mulf %319, %320 : vector<2x8x8xf32>
    %322 = arith.addf %316, %321 : vector<2x8x8xf32>
    %323 = vector.extract_strided_slice %291 {offsets = [0, 0, 5], sizes = [2, 8, 1], strides = [1, 1, 1]} : vector<2x8x8xf32> to vector<2x8x1xf32>
    %324 = vector.shape_cast %34 : vector<8x8xf32> to vector<1x8x8xf32>
    %325 = vector.broadcast %323 : vector<2x8x1xf32> to vector<2x8x8xf32>
    %326 = vector.broadcast %324 : vector<1x8x8xf32> to vector<2x8x8xf32>
    %327 = arith.mulf %325, %326 : vector<2x8x8xf32>
    %328 = arith.addf %322, %327 : vector<2x8x8xf32>
    %329 = vector.extract_strided_slice %291 {offsets = [0, 0, 6], sizes = [2, 8, 1], strides = [1, 1, 1]} : vector<2x8x8xf32> to vector<2x8x1xf32>
    %330 = vector.shape_cast %38 : vector<8x8xf32> to vector<1x8x8xf32>
    %331 = vector.broadcast %329 : vector<2x8x1xf32> to vector<2x8x8xf32>
    %332 = vector.broadcast %330 : vector<1x8x8xf32> to vector<2x8x8xf32>
    %333 = arith.mulf %331, %332 : vector<2x8x8xf32>
    %334 = arith.addf %328, %333 : vector<2x8x8xf32>
    %335 = vector.extract_strided_slice %291 {offsets = [0, 0, 7], sizes = [2, 8, 1], strides = [1, 1, 1]} : vector<2x8x8xf32> to vector<2x8x1xf32>
    %336 = vector.shape_cast %42 : vector<8x8xf32> to vector<1x8x8xf32>
    %337 = vector.broadcast %335 : vector<2x8x1xf32> to vector<2x8x8xf32>
    %338 = vector.broadcast %336 : vector<1x8x8xf32> to vector<2x8x8xf32>
    %339 = arith.mulf %337, %338 : vector<2x8x8xf32>
    %340 = arith.addf %334, %339 : vector<2x8x8xf32>
    %341 = arith.addf %287, %340 : vector<2x8x8xf32>
    %cst_55 = arith.constant 0.353553385 : f32
    %342 = vector.broadcast %cst_55 : f32 to vector<2x8x8xf32>
    %343 = arith.mulf %341, %342 : vector<2x8x8xf32>
    %344 = arith.addf %343, %48 : vector<2x8x8xf32>
    %cst_56 = arith.constant dense<0xFF800000> : vector<2x8xf32>
    %345 = vector.multi_reduction <maximumf>, %344, %cst_56 [2] : vector<2x8x8xf32> to vector<2x8xf32>
    %346 = vector.shape_cast %345 : vector<2x8xf32> to vector<2x8x1xf32>
    %347 = vector.broadcast %346 : vector<2x8x1xf32> to vector<2x8x8xf32>
    %348 = arith.subf %344, %347 : vector<2x8x8xf32>
    %349 = math.exp %348 : vector<2x8x8xf32>
    %cst_57 = arith.constant dense<0.000000e+00> : vector<2x8xf32>
    %350 = vector.multi_reduction <add>, %349, %cst_57 [2] : vector<2x8x8xf32> to vector<2x8xf32>
    %351 = vector.shape_cast %350 : vector<2x8xf32> to vector<2x8x1xf32>
    %352 = tpu.reciprocal %351 {approx = true} : vector<2x8x1xf32> -> vector<2x8x1xf32>
    %353 = vector.broadcast %352 : vector<2x8x1xf32> to vector<2x8x8xf32>
    %354 = arith.mulf %349, %353 : vector<2x8x8xf32>
    %355 = arith.truncf %354 : vector<2x8x8xf32> to vector<2x8x8xbf16>
    "tpu.trace_start"() <{level = 10 : i32, message = "bqk,bkd->bqd"}> : () -> ()
    %cst_58 = arith.constant dense<0.000000e+00> : vector<2x8x8xf32>
    %356 = tpu.matmul %355, %284, %cst_58 {dimension_numbers = #tpu.dot_dimension_numbers<[2], [1], [1], [2], [0, 0, 0, 1, 1, 2], [0], [0]>} : vector<2x8x8xbf16>, vector<2x8x8xbf16>, vector<2x8x8xf32> -> vector<2x8x8xf32>
    "tpu.trace_stop"() : () -> ()
    %357 = vector.shape_cast %356 : vector<2x8x8xf32> to vector<16x8xf32>
    %358 = arith.truncf %357 : vector<16x8xf32> to vector<16x8xbf16>
    %c16 = arith.constant 16 : index
    %c0_59 = arith.constant 0 : index
    %359 = vector.load %arg7[%c16, %c0_59] : memref<32x32xbf16, #tpu.memory_space<vmem>>, vector<8x32xbf16>
    %cst_60 = arith.constant dense<0.000000e+00> : vector<16x32xf32>
    %360 = tpu.matmul %358, %359, %cst_60 {dimension_numbers = #tpu.dot_dimension_numbers<[1], [0], [0], [1], [0, 0, 1, 1], [], []>} : vector<16x8xbf16>, vector<8x32xbf16>, vector<16x32xf32> -> vector<16x32xf32>
    %361 = arith.addf %275, %360 : vector<16x32xf32>
    %362 = vector.extract_strided_slice %99 {offsets = [0, 24], sizes = [16, 8], strides = [1, 1]} : vector<16x32xf32> to vector<16x8xf32>
    %363 = vector.shape_cast %362 : vector<16x8xf32> to vector<2x8x8xf32>
    %364 = arith.truncf %363 : vector<2x8x8xf32> to vector<2x8x8xbf16>
    %365 = vector.extract_strided_slice %85 {offsets = [0, 24], sizes = [16, 8], strides = [1, 1]} : vector<16x32xf32> to vector<16x8xf32>
    %366 = vector.shape_cast %365 : vector<16x8xf32> to vector<2x8x8xf32>
    %367 = arith.truncf %366 : vector<2x8x8xf32> to vector<2x8x8xbf16>
    %368 = vector.extract_strided_slice %89 {offsets = [0, 24], sizes = [16, 8], strides = [1, 1]} : vector<16x32xf32> to vector<16x8xf32>
    %369 = vector.shape_cast %368 : vector<16x8xf32> to vector<2x8x8xf32>
    %370 = arith.truncf %369 : vector<2x8x8xf32> to vector<2x8x8xbf16>
    %371 = vector.extract_strided_slice %96 {offsets = [0, 24], sizes = [8, 8], strides = [1, 1]} : vector<8x32xf32> to vector<8x8xf32>
    %372 = arith.truncf %371 : vector<8x8xf32> to vector<8x8xbf16>
    "tpu.trace_start"() <{level = 10 : i32, message = "bqd,bkd->bqk"}> : () -> ()
    %cst_61 = arith.constant dense<0.000000e+00> : vector<2x8x8xf32>
    %373 = tpu.matmul %364, %367, %cst_61 {dimension_numbers = #tpu.dot_dimension_numbers<[2], [2], [1], [1], [0, 0, 0, 1, 1, 1], [0], [0]>} : vector<2x8x8xbf16>, vector<2x8x8xbf16>, vector<2x8x8xf32> -> vector<2x8x8xf32>
    "tpu.trace_stop"() : () -> ()
    %374 = vector.extract_strided_slice %102 {offsets = [0, 24], sizes = [16, 8], strides = [1, 1]} : vector<16x32xf32> to vector<16x8xf32>
    %375 = arith.truncf %374 : vector<16x8xf32> to vector<16x8xbf16>
    %cst_62 = arith.constant dense<0.000000e+00> : vector<16x8xf32>
    %376 = tpu.matmul %375, %372, %cst_62 {dimension_numbers = #tpu.dot_dimension_numbers<[1], [1], [0], [0], [0, 0, 1, 0], [], []>} : vector<16x8xbf16>, vector<8x8xbf16>, vector<16x8xf32> -> vector<16x8xf32>
    %377 = vector.shape_cast %376 : vector<16x8xf32> to vector<2x8x8xf32>
    %cst_63 = arith.constant 0.000000e+00 : f32
    %378 = vector.broadcast %cst_63 : f32 to vector<2x8x8xf32>
    %379 = vector.extract_strided_slice %377 {offsets = [0, 0, 0], sizes = [2, 8, 1], strides = [1, 1, 1]} : vector<2x8x8xf32> to vector<2x8x1xf32>
    %380 = vector.shape_cast %14 : vector<8x8xf32> to vector<1x8x8xf32>
    %381 = vector.broadcast %379 : vector<2x8x1xf32> to vector<2x8x8xf32>
    %382 = vector.broadcast %380 : vector<1x8x8xf32> to vector<2x8x8xf32>
    %383 = arith.mulf %381, %382 : vector<2x8x8xf32>
    %384 = arith.addf %378, %383 : vector<2x8x8xf32>
    %385 = vector.extract_strided_slice %377 {offsets = [0, 0, 1], sizes = [2, 8, 1], strides = [1, 1, 1]} : vector<2x8x8xf32> to vector<2x8x1xf32>
    %386 = vector.shape_cast %18 : vector<8x8xf32> to vector<1x8x8xf32>
    %387 = vector.broadcast %385 : vector<2x8x1xf32> to vector<2x8x8xf32>
    %388 = vector.broadcast %386 : vector<1x8x8xf32> to vector<2x8x8xf32>
    %389 = arith.mulf %387, %388 : vector<2x8x8xf32>
    %390 = arith.addf %384, %389 : vector<2x8x8xf32>
    %391 = vector.extract_strided_slice %377 {offsets = [0, 0, 2], sizes = [2, 8, 1], strides = [1, 1, 1]} : vector<2x8x8xf32> to vector<2x8x1xf32>
    %392 = vector.shape_cast %22 : vector<8x8xf32> to vector<1x8x8xf32>
    %393 = vector.broadcast %391 : vector<2x8x1xf32> to vector<2x8x8xf32>
    %394 = vector.broadcast %392 : vector<1x8x8xf32> to vector<2x8x8xf32>
    %395 = arith.mulf %393, %394 : vector<2x8x8xf32>
    %396 = arith.addf %390, %395 : vector<2x8x8xf32>
    %397 = vector.extract_strided_slice %377 {offsets = [0, 0, 3], sizes = [2, 8, 1], strides = [1, 1, 1]} : vector<2x8x8xf32> to vector<2x8x1xf32>
    %398 = vector.shape_cast %26 : vector<8x8xf32> to vector<1x8x8xf32>
    %399 = vector.broadcast %397 : vector<2x8x1xf32> to vector<2x8x8xf32>
    %400 = vector.broadcast %398 : vector<1x8x8xf32> to vector<2x8x8xf32>
    %401 = arith.mulf %399, %400 : vector<2x8x8xf32>
    %402 = arith.addf %396, %401 : vector<2x8x8xf32>
    %403 = vector.extract_strided_slice %377 {offsets = [0, 0, 4], sizes = [2, 8, 1], strides = [1, 1, 1]} : vector<2x8x8xf32> to vector<2x8x1xf32>
    %404 = vector.shape_cast %30 : vector<8x8xf32> to vector<1x8x8xf32>
    %405 = vector.broadcast %403 : vector<2x8x1xf32> to vector<2x8x8xf32>
    %406 = vector.broadcast %404 : vector<1x8x8xf32> to vector<2x8x8xf32>
    %407 = arith.mulf %405, %406 : vector<2x8x8xf32>
    %408 = arith.addf %402, %407 : vector<2x8x8xf32>
    %409 = vector.extract_strided_slice %377 {offsets = [0, 0, 5], sizes = [2, 8, 1], strides = [1, 1, 1]} : vector<2x8x8xf32> to vector<2x8x1xf32>
    %410 = vector.shape_cast %34 : vector<8x8xf32> to vector<1x8x8xf32>
    %411 = vector.broadcast %409 : vector<2x8x1xf32> to vector<2x8x8xf32>
    %412 = vector.broadcast %410 : vector<1x8x8xf32> to vector<2x8x8xf32>
    %413 = arith.mulf %411, %412 : vector<2x8x8xf32>
    %414 = arith.addf %408, %413 : vector<2x8x8xf32>
    %415 = vector.extract_strided_slice %377 {offsets = [0, 0, 6], sizes = [2, 8, 1], strides = [1, 1, 1]} : vector<2x8x8xf32> to vector<2x8x1xf32>
    %416 = vector.shape_cast %38 : vector<8x8xf32> to vector<1x8x8xf32>
    %417 = vector.broadcast %415 : vector<2x8x1xf32> to vector<2x8x8xf32>
    %418 = vector.broadcast %416 : vector<1x8x8xf32> to vector<2x8x8xf32>
    %419 = arith.mulf %417, %418 : vector<2x8x8xf32>
    %420 = arith.addf %414, %419 : vector<2x8x8xf32>
    %421 = vector.extract_strided_slice %377 {offsets = [0, 0, 7], sizes = [2, 8, 1], strides = [1, 1, 1]} : vector<2x8x8xf32> to vector<2x8x1xf32>
    %422 = vector.shape_cast %42 : vector<8x8xf32> to vector<1x8x8xf32>
    %423 = vector.broadcast %421 : vector<2x8x1xf32> to vector<2x8x8xf32>
    %424 = vector.broadcast %422 : vector<1x8x8xf32> to vector<2x8x8xf32>
    %425 = arith.mulf %423, %424 : vector<2x8x8xf32>
    %426 = arith.addf %420, %425 : vector<2x8x8xf32>
    %427 = arith.addf %373, %426 : vector<2x8x8xf32>
    %cst_64 = arith.constant 0.353553385 : f32
    %428 = vector.broadcast %cst_64 : f32 to vector<2x8x8xf32>
    %429 = arith.mulf %427, %428 : vector<2x8x8xf32>
    %430 = arith.addf %429, %48 : vector<2x8x8xf32>
    %cst_65 = arith.constant dense<0xFF800000> : vector<2x8xf32>
    %431 = vector.multi_reduction <maximumf>, %430, %cst_65 [2] : vector<2x8x8xf32> to vector<2x8xf32>
    %432 = vector.shape_cast %431 : vector<2x8xf32> to vector<2x8x1xf32>
    %433 = vector.broadcast %432 : vector<2x8x1xf32> to vector<2x8x8xf32>
    %434 = arith.subf %430, %433 : vector<2x8x8xf32>
    %435 = math.exp %434 : vector<2x8x8xf32>
    %cst_66 = arith.constant dense<0.000000e+00> : vector<2x8xf32>
    %436 = vector.multi_reduction <add>, %435, %cst_66 [2] : vector<2x8x8xf32> to vector<2x8xf32>
    %437 = vector.shape_cast %436 : vector<2x8xf32> to vector<2x8x1xf32>
    %438 = tpu.reciprocal %437 {approx = true} : vector<2x8x1xf32> -> vector<2x8x1xf32>
    %439 = vector.broadcast %438 : vector<2x8x1xf32> to vector<2x8x8xf32>
    %440 = arith.mulf %435, %439 : vector<2x8x8xf32>
    %441 = arith.truncf %440 : vector<2x8x8xf32> to vector<2x8x8xbf16>
    "tpu.trace_start"() <{level = 10 : i32, message = "bqk,bkd->bqd"}> : () -> ()
    %cst_67 = arith.constant dense<0.000000e+00> : vector<2x8x8xf32>
    %442 = tpu.matmul %441, %370, %cst_67 {dimension_numbers = #tpu.dot_dimension_numbers<[2], [1], [1], [2], [0, 0, 0, 1, 1, 2], [0], [0]>} : vector<2x8x8xbf16>, vector<2x8x8xbf16>, vector<2x8x8xf32> -> vector<2x8x8xf32>
    "tpu.trace_stop"() : () -> ()
    %443 = vector.shape_cast %442 : vector<2x8x8xf32> to vector<16x8xf32>
    %444 = arith.truncf %443 : vector<16x8xf32> to vector<16x8xbf16>
    %c24 = arith.constant 24 : index
    %c0_68 = arith.constant 0 : index
    %445 = vector.load %arg7[%c24, %c0_68] : memref<32x32xbf16, #tpu.memory_space<vmem>>, vector<8x32xbf16>
    %cst_69 = arith.constant dense<0.000000e+00> : vector<16x32xf32>
    %446 = tpu.matmul %444, %445, %cst_69 {dimension_numbers = #tpu.dot_dimension_numbers<[1], [0], [0], [1], [0, 0, 1, 1], [], []>} : vector<16x8xbf16>, vector<8x32xbf16>, vector<16x32xf32> -> vector<16x32xf32>
    %447 = arith.addf %361, %446 : vector<16x32xf32>
    %448 = arith.addf %0, %447 : vector<16x32xf32>
    %c12 = arith.constant 12 : index
    %c0_70 = arith.constant 0 : index
    %449 = vector.load %arg13[%c12, %c0_70] : memref<18x32xf32, #tpu.memory_space<vmem>>, vector<1x32xf32>
    %450 = vector.broadcast %449 : vector<1x32xf32> to vector<16x32xf32>
    %451 = arith.addf %448, %450 : vector<16x32xf32>
    %c2 = arith.constant 2 : index
    %c0_71 = arith.constant 0 : index
    %452 = vector.load %arg13[%c2, %c0_71] : memref<18x32xf32, #tpu.memory_space<vmem>>, vector<1x32xf32>
    %c3 = arith.constant 3 : index
    %c0_72 = arith.constant 0 : index
    %453 = vector.load %arg13[%c3, %c0_72] : memref<18x32xf32, #tpu.memory_space<vmem>>, vector<1x32xf32>
    %cst_73 = arith.constant dense<0.000000e+00> : vector<16xf32>
    %454 = vector.multi_reduction <add>, %451, %cst_73 [1] : vector<16x32xf32> to vector<16xf32>
    %455 = vector.shape_cast %454 : vector<16xf32> to vector<16x1xf32>
    %cst_74 = arith.constant 3.200000e+01 : f32
    %456 = vector.broadcast %cst_74 : f32 to vector<16x1xf32>
    %457 = arith.divf %455, %456 : vector<16x1xf32>
    %458 = vector.broadcast %457 : vector<16x1xf32> to vector<16x32xf32>
    %459 = arith.subf %451, %458 : vector<16x32xf32>
    %460 = arith.mulf %459, %459 : vector<16x32xf32>
    %cst_75 = arith.constant dense<0.000000e+00> : vector<16xf32>
    %461 = vector.multi_reduction <add>, %460, %cst_75 [1] : vector<16x32xf32> to vector<16xf32>
    %462 = vector.shape_cast %461 : vector<16xf32> to vector<16x1xf32>
    %cst_76 = arith.constant 3.200000e+01 : f32
    %463 = vector.broadcast %cst_76 : f32 to vector<16x1xf32>
    %464 = arith.divf %462, %463 : vector<16x1xf32>
    %465 = vector.broadcast %457 : vector<16x1xf32> to vector<16x32xf32>
    %466 = arith.subf %451, %465 : vector<16x32xf32>
    %cst_77 = arith.constant 9.99999974E-6 : f32
    %467 = vector.broadcast %cst_77 : f32 to vector<16x1xf32>
    %468 = arith.addf %464, %467 : vector<16x1xf32>
    %469 = math.rsqrt %468 : vector<16x1xf32>
    %470 = vector.broadcast %469 : vector<16x1xf32> to vector<16x32xf32>
    %471 = arith.mulf %466, %470 : vector<16x32xf32>
    %472 = vector.broadcast %452 : vector<1x32xf32> to vector<16x32xf32>
    %473 = arith.mulf %471, %472 : vector<16x32xf32>
    %474 = vector.broadcast %453 : vector<1x32xf32> to vector<16x32xf32>
    %475 = arith.addf %473, %474 : vector<16x32xf32>
    %476 = arith.truncf %475 : vector<16x32xf32> to vector<16x32xbf16>
    %c0_78 = arith.constant 0 : index
    %c0_79 = arith.constant 0 : index
    %477 = vector.load %arg8[%c0_78, %c0_79] : memref<32x32xbf16, #tpu.memory_space<vmem>>, vector<32x32xbf16>
    %cst_80 = arith.constant dense<0.000000e+00> : vector<16x32xf32>
    %478 = tpu.matmul %476, %477, %cst_80 {dimension_numbers = #tpu.dot_dimension_numbers<[1], [0], [0], [1], [0, 0, 1, 1], [], []>} : vector<16x32xbf16>, vector<32x32xbf16>, vector<16x32xf32> -> vector<16x32xf32>
    %c13 = arith.constant 13 : index
    %c0_81 = arith.constant 0 : index
    %479 = vector.load %arg13[%c13, %c0_81] : memref<18x32xf32, #tpu.memory_space<vmem>>, vector<1x32xf32>
    %480 = vector.broadcast %479 : vector<1x32xf32> to vector<16x32xf32>
    %481 = arith.addf %478, %480 : vector<16x32xf32>
    %482 = arith.truncf %1 : vector<16x32xf32> to vector<16x32xbf16>
    %c0_82 = arith.constant 0 : index
    %c0_83 = arith.constant 0 : index
    %483 = vector.load %arg9[%c0_82, %c0_83] : memref<32x64xbf16, #tpu.memory_space<vmem>>, vector<32x64xbf16>
    %cst_84 = arith.constant dense<0.000000e+00> : vector<16x64xf32>
    %484 = tpu.matmul %482, %483, %cst_84 {dimension_numbers = #tpu.dot_dimension_numbers<[1], [0], [0], [1], [0, 0, 1, 1], [], []>} : vector<16x32xbf16>, vector<32x64xbf16>, vector<16x64xf32> -> vector<16x64xf32>
    %485 = vector.extract_strided_slice %484 {offsets = [0, 0], sizes = [16, 32], strides = [1, 1]} : vector<16x64xf32> to vector<16x32xf32>
    %c14 = arith.constant 14 : index
    %c0_85 = arith.constant 0 : index
    %486 = vector.load %arg13[%c14, %c0_85] : memref<18x32xf32, #tpu.memory_space<vmem>>, vector<1x32xf32>
    %487 = vector.broadcast %486 : vector<1x32xf32> to vector<16x32xf32>
    %488 = arith.addf %485, %487 : vector<16x32xf32>
    %489 = vector.extract_strided_slice %484 {offsets = [0, 32], sizes = [16, 32], strides = [1, 1]} : vector<16x64xf32> to vector<16x32xf32>
    %c15 = arith.constant 15 : index
    %c0_86 = arith.constant 0 : index
    %490 = vector.load %arg13[%c15, %c0_86] : memref<18x32xf32, #tpu.memory_space<vmem>>, vector<1x32xf32>
    %491 = vector.broadcast %490 : vector<1x32xf32> to vector<16x32xf32>
    %492 = arith.addf %489, %491 : vector<16x32xf32>
    %cst_87 = arith.constant 0.000000e+00 : f32
    %493 = vector.broadcast %cst_87 : f32 to vector<16x32xf32>
    %494 = vector.extract_strided_slice %481 {offsets = [0, 0], sizes = [16, 8], strides = [1, 1]} : vector<16x32xf32> to vector<16x8xf32>
    %495 = vector.shape_cast %494 : vector<16x8xf32> to vector<2x8x8xf32>
    %496 = arith.truncf %495 : vector<2x8x8xf32> to vector<2x8x8xbf16>
    %497 = vector.extract_strided_slice %488 {offsets = [0, 0], sizes = [16, 8], strides = [1, 1]} : vector<16x32xf32> to vector<16x8xf32>
    %498 = vector.shape_cast %497 : vector<16x8xf32> to vector<2x8x8xf32>
    %499 = arith.truncf %498 : vector<2x8x8xf32> to vector<2x8x8xbf16>
    %500 = vector.extract_strided_slice %492 {offsets = [0, 0], sizes = [16, 8], strides = [1, 1]} : vector<16x32xf32> to vector<16x8xf32>
    %501 = vector.shape_cast %500 : vector<16x8xf32> to vector<2x8x8xf32>
    %502 = arith.truncf %501 : vector<2x8x8xf32> to vector<2x8x8xbf16>
    "tpu.trace_start"() <{level = 10 : i32, message = "bqd,bkd->bqk"}> : () -> ()
    %cst_88 = arith.constant dense<0.000000e+00> : vector<2x8x8xf32>
    %503 = tpu.matmul %496, %499, %cst_88 {dimension_numbers = #tpu.dot_dimension_numbers<[2], [2], [1], [1], [0, 0, 0, 1, 1, 1], [0], [0]>} : vector<2x8x8xbf16>, vector<2x8x8xbf16>, vector<2x8x8xf32> -> vector<2x8x8xf32>
    "tpu.trace_stop"() : () -> ()
    %cst_89 = arith.constant 0.353553385 : f32
    %504 = vector.broadcast %cst_89 : f32 to vector<2x8x8xf32>
    %505 = arith.mulf %503, %504 : vector<2x8x8xf32>
    %506 = vector.broadcast %50 : vector<2x1x8xf32> to vector<2x8x8xf32>
    %507 = arith.addf %505, %506 : vector<2x8x8xf32>
    %cst_90 = arith.constant dense<0xFF800000> : vector<2x8xf32>
    %508 = vector.multi_reduction <maximumf>, %507, %cst_90 [2] : vector<2x8x8xf32> to vector<2x8xf32>
    %509 = vector.shape_cast %508 : vector<2x8xf32> to vector<2x8x1xf32>
    %510 = vector.broadcast %509 : vector<2x8x1xf32> to vector<2x8x8xf32>
    %511 = arith.subf %507, %510 : vector<2x8x8xf32>
    %512 = math.exp %511 : vector<2x8x8xf32>
    %cst_91 = arith.constant dense<0.000000e+00> : vector<2x8xf32>
    %513 = vector.multi_reduction <add>, %512, %cst_91 [2] : vector<2x8x8xf32> to vector<2x8xf32>
    %514 = vector.shape_cast %513 : vector<2x8xf32> to vector<2x8x1xf32>
    %515 = vector.broadcast %514 : vector<2x8x1xf32> to vector<2x8x8xf32>
    %516 = arith.divf %512, %515 : vector<2x8x8xf32>
    %517 = vector.extract_strided_slice %516 {offsets = [0, 0, 0], sizes = [1, 8, 8], strides = [1, 1, 1]} : vector<2x8x8xf32> to vector<1x8x8xf32>
    %518 = vector.shape_cast %517 : vector<1x8x8xf32> to vector<8x8xf32>
    %c0_92 = arith.constant 0 : index
    %c0_93 = arith.constant 0 : index
    %c0_94 = arith.constant 0 : index
    %c0_95 = arith.constant 0 : index
    %519 = vector.load %arg16[%c0_92, %c0_93, %c0_94, %c0_95] : memref<2x4x8x8xf32, #tpu.memory_space<vmem>>, vector<1x1x8x8xf32>
    %520 = vector.shape_cast %519 : vector<1x1x8x8xf32> to vector<8x8xf32>
    %521 = vector.shape_cast %518 : vector<8x8xf32> to vector<1x1x8x8xf32>
    tpu.vector_store %arg16[%c0_92, %c0_93, %c0_94, %c0_95], %521 {strides = array<i32>} : memref<2x4x8x8xf32, #tpu.memory_space<vmem>>, vector<1x1x8x8xf32>,
    %522 = vector.extract_strided_slice %516 {offsets = [1, 0, 0], sizes = [1, 8, 8], strides = [1, 1, 1]} : vector<2x8x8xf32> to vector<1x8x8xf32>
    %523 = vector.shape_cast %522 : vector<1x8x8xf32> to vector<8x8xf32>
    %c1_96 = arith.constant 1 : index
    %c0_97 = arith.constant 0 : index
    %c0_98 = arith.constant 0 : index
    %c0_99 = arith.constant 0 : index
    %524 = vector.load %arg16[%c1_96, %c0_97, %c0_98, %c0_99] : memref<2x4x8x8xf32, #tpu.memory_space<vmem>>, vector<1x1x8x8xf32>
    %525 = vector.shape_cast %524 : vector<1x1x8x8xf32> to vector<8x8xf32>
    %526 = vector.shape_cast %523 : vector<8x8xf32> to vector<1x1x8x8xf32>
    tpu.vector_store %arg16[%c1_96, %c0_97, %c0_98, %c0_99], %526 {strides = array<i32>} : memref<2x4x8x8xf32, #tpu.memory_space<vmem>>, vector<1x1x8x8xf32>,
    %527 = arith.truncf %516 : vector<2x8x8xf32> to vector<2x8x8xbf16>
    "tpu.trace_start"() <{level = 10 : i32, message = "bqk,bkd->bqd"}> : () -> ()
    %cst_100 = arith.constant dense<0.000000e+00> : vector<2x8x8xf32>
    %528 = tpu.matmul %527, %502, %cst_100 {dimension_numbers = #tpu.dot_dimension_numbers<[2], [1], [1], [2], [0, 0, 0, 1, 1, 2], [0], [0]>} : vector<2x8x8xbf16>, vector<2x8x8xbf16>, vector<2x8x8xf32> -> vector<2x8x8xf32>
    "tpu.trace_stop"() : () -> ()
    %529 = vector.shape_cast %528 : vector<2x8x8xf32> to vector<16x8xf32>
    %530 = arith.truncf %529 : vector<16x8xf32> to vector<16x8xbf16>
    %c0_101 = arith.constant 0 : index
    %c0_102 = arith.constant 0 : index
    %531 = vector.load %arg10[%c0_101, %c0_102] : memref<32x32xbf16, #tpu.memory_space<vmem>>, vector<8x32xbf16>
    %cst_103 = arith.constant dense<0.000000e+00> : vector<16x32xf32>
    %532 = tpu.matmul %530, %531, %cst_103 {dimension_numbers = #tpu.dot_dimension_numbers<[1], [0], [0], [1], [0, 0, 1, 1], [], []>} : vector<16x8xbf16>, vector<8x32xbf16>, vector<16x32xf32> -> vector<16x32xf32>
    %533 = arith.addf %493, %532 : vector<16x32xf32>
    %534 = vector.extract_strided_slice %481 {offsets = [0, 8], sizes = [16, 8], strides = [1, 1]} : vector<16x32xf32> to vector<16x8xf32>
    %535 = vector.shape_cast %534 : vector<16x8xf32> to vector<2x8x8xf32>
    %536 = arith.truncf %535 : vector<2x8x8xf32> to vector<2x8x8xbf16>
    %537 = vector.extract_strided_slice %488 {offsets = [0, 8], sizes = [16, 8], strides = [1, 1]} : vector<16x32xf32> to vector<16x8xf32>
    %538 = vector.shape_cast %537 : vector<16x8xf32> to vector<2x8x8xf32>
    %539 = arith.truncf %538 : vector<2x8x8xf32> to vector<2x8x8xbf16>
    %540 = vector.extract_strided_slice %492 {offsets = [0, 8], sizes = [16, 8], strides = [1, 1]} : vector<16x32xf32> to vector<16x8xf32>
    %541 = vector.shape_cast %540 : vector<16x8xf32> to vector<2x8x8xf32>
    %542 = arith.truncf %541 : vector<2x8x8xf32> to vector<2x8x8xbf16>
    "tpu.trace_start"() <{level = 10 : i32, message = "bqd,bkd->bqk"}> : () -> ()
    %cst_104 = arith.constant dense<0.000000e+00> : vector<2x8x8xf32>
    %543 = tpu.matmul %536, %539, %cst_104 {dimension_numbers = #tpu.dot_dimension_numbers<[2], [2], [1], [1], [0, 0, 0, 1, 1, 1], [0], [0]>} : vector<2x8x8xbf16>, vector<2x8x8xbf16>, vector<2x8x8xf32> -> vector<2x8x8xf32>
    "tpu.trace_stop"() : () -> ()
    %cst_105 = arith.constant 0.353553385 : f32
    %544 = vector.broadcast %cst_105 : f32 to vector<2x8x8xf32>
    %545 = arith.mulf %543, %544 : vector<2x8x8xf32>
    %546 = vector.broadcast %50 : vector<2x1x8xf32> to vector<2x8x8xf32>
    %547 = arith.addf %545, %546 : vector<2x8x8xf32>
    %cst_106 = arith.constant dense<0xFF800000> : vector<2x8xf32>
    %548 = vector.multi_reduction <maximumf>, %547, %cst_106 [2] : vector<2x8x8xf32> to vector<2x8xf32>
    %549 = vector.shape_cast %548 : vector<2x8xf32> to vector<2x8x1xf32>
    %550 = vector.broadcast %549 : vector<2x8x1xf32> to vector<2x8x8xf32>
    %551 = arith.subf %547, %550 : vector<2x8x8xf32>
    %552 = math.exp %551 : vector<2x8x8xf32>
    %cst_107 = arith.constant dense<0.000000e+00> : vector<2x8xf32>
    %553 = vector.multi_reduction <add>, %552, %cst_107 [2] : vector<2x8x8xf32> to vector<2x8xf32>
    %554 = vector.shape_cast %553 : vector<2x8xf32> to vector<2x8x1xf32>
    %555 = vector.broadcast %554 : vector<2x8x1xf32> to vector<2x8x8xf32>
    %556 = arith.divf %552, %555 : vector<2x8x8xf32>
    %557 = vector.extract_strided_slice %556 {offsets = [0, 0, 0], sizes = [1, 8, 8], strides = [1, 1, 1]} : vector<2x8x8xf32> to vector<1x8x8xf32>
    %558 = vector.shape_cast %557 : vector<1x8x8xf32> to vector<8x8xf32>
    %c0_108 = arith.constant 0 : index
    %c1_109 = arith.constant 1 : index
    %c0_110 = arith.constant 0 : index
    %c0_111 = arith.constant 0 : index
    %559 = vector.load %arg16[%c0_108, %c1_109, %c0_110, %c0_111] : memref<2x4x8x8xf32, #tpu.memory_space<vmem>>, vector<1x1x8x8xf32>
    %560 = vector.shape_cast %559 : vector<1x1x8x8xf32> to vector<8x8xf32>
    %561 = vector.shape_cast %558 : vector<8x8xf32> to vector<1x1x8x8xf32>
    tpu.vector_store %arg16[%c0_108, %c1_109, %c0_110, %c0_111], %561 {strides = array<i32>} : memref<2x4x8x8xf32, #tpu.memory_space<vmem>>, vector<1x1x8x8xf32>,
    %562 = vector.extract_strided_slice %556 {offsets = [1, 0, 0], sizes = [1, 8, 8], strides = [1, 1, 1]} : vector<2x8x8xf32> to vector<1x8x8xf32>
    %563 = vector.shape_cast %562 : vector<1x8x8xf32> to vector<8x8xf32>
    %c1_112 = arith.constant 1 : index
    %c1_113 = arith.constant 1 : index
    %c0_114 = arith.constant 0 : index
    %c0_115 = arith.constant 0 : index
    %564 = vector.load %arg16[%c1_112, %c1_113, %c0_114, %c0_115] : memref<2x4x8x8xf32, #tpu.memory_space<vmem>>, vector<1x1x8x8xf32>
    %565 = vector.shape_cast %564 : vector<1x1x8x8xf32> to vector<8x8xf32>
    %566 = vector.shape_cast %563 : vector<8x8xf32> to vector<1x1x8x8xf32>
    tpu.vector_store %arg16[%c1_112, %c1_113, %c0_114, %c0_115], %566 {strides = array<i32>} : memref<2x4x8x8xf32, #tpu.memory_space<vmem>>, vector<1x1x8x8xf32>,
    %567 = arith.truncf %556 : vector<2x8x8xf32> to vector<2x8x8xbf16>
    "tpu.trace_start"() <{level = 10 : i32, message = "bqk,bkd->bqd"}> : () -> ()
    %cst_116 = arith.constant dense<0.000000e+00> : vector<2x8x8xf32>
    %568 = tpu.matmul %567, %542, %cst_116 {dimension_numbers = #tpu.dot_dimension_numbers<[2], [1], [1], [2], [0, 0, 0, 1, 1, 2], [0], [0]>} : vector<2x8x8xbf16>, vector<2x8x8xbf16>, vector<2x8x8xf32> -> vector<2x8x8xf32>
    "tpu.trace_stop"() : () -> ()
    %569 = vector.shape_cast %568 : vector<2x8x8xf32> to vector<16x8xf32>
    %570 = arith.truncf %569 : vector<16x8xf32> to vector<16x8xbf16>
    %c8_117 = arith.constant 8 : index
    %c0_118 = arith.constant 0 : index
    %571 = vector.load %arg10[%c8_117, %c0_118] : memref<32x32xbf16, #tpu.memory_space<vmem>>, vector<8x32xbf16>
    %cst_119 = arith.constant dense<0.000000e+00> : vector<16x32xf32>
    %572 = tpu.matmul %570, %571, %cst_119 {dimension_numbers = #tpu.dot_dimension_numbers<[1], [0], [0], [1], [0, 0, 1, 1], [], []>} : vector<16x8xbf16>, vector<8x32xbf16>, vector<16x32xf32> -> vector<16x32xf32>
    %573 = arith.addf %533, %572 : vector<16x32xf32>
    %574 = vector.extract_strided_slice %481 {offsets = [0, 16], sizes = [16, 8], strides = [1, 1]} : vector<16x32xf32> to vector<16x8xf32>
    %575 = vector.shape_cast %574 : vector<16x8xf32> to vector<2x8x8xf32>
    %576 = arith.truncf %575 : vector<2x8x8xf32> to vector<2x8x8xbf16>
    %577 = vector.extract_strided_slice %488 {offsets = [0, 16], sizes = [16, 8], strides = [1, 1]} : vector<16x32xf32> to vector<16x8xf32>
    %578 = vector.shape_cast %577 : vector<16x8xf32> to vector<2x8x8xf32>
    %579 = arith.truncf %578 : vector<2x8x8xf32> to vector<2x8x8xbf16>
    %580 = vector.extract_strided_slice %492 {offsets = [0, 16], sizes = [16, 8], strides = [1, 1]} : vector<16x32xf32> to vector<16x8xf32>
    %581 = vector.shape_cast %580 : vector<16x8xf32> to vector<2x8x8xf32>
    %582 = arith.truncf %581 : vector<2x8x8xf32> to vector<2x8x8xbf16>
    "tpu.trace_start"() <{level = 10 : i32, message = "bqd,bkd->bqk"}> : () -> ()
    %cst_120 = arith.constant dense<0.000000e+00> : vector<2x8x8xf32>
    %583 = tpu.matmul %576, %579, %cst_120 {dimension_numbers = #tpu.dot_dimension_numbers<[2], [2], [1], [1], [0, 0, 0, 1, 1, 1], [0], [0]>} : vector<2x8x8xbf16>, vector<2x8x8xbf16>, vector<2x8x8xf32> -> vector<2x8x8xf32>
    "tpu.trace_stop"() : () -> ()
    %cst_121 = arith.constant 0.353553385 : f32
    %584 = vector.broadcast %cst_121 : f32 to vector<2x8x8xf32>
    %585 = arith.mulf %583, %584 : vector<2x8x8xf32>
    %586 = vector.broadcast %50 : vector<2x1x8xf32> to vector<2x8x8xf32>
    %587 = arith.addf %585, %586 : vector<2x8x8xf32>
    %cst_122 = arith.constant dense<0xFF800000> : vector<2x8xf32>
    %588 = vector.multi_reduction <maximumf>, %587, %cst_122 [2] : vector<2x8x8xf32> to vector<2x8xf32>
    %589 = vector.shape_cast %588 : vector<2x8xf32> to vector<2x8x1xf32>
    %590 = vector.broadcast %589 : vector<2x8x1xf32> to vector<2x8x8xf32>
    %591 = arith.subf %587, %590 : vector<2x8x8xf32>
    %592 = math.exp %591 : vector<2x8x8xf32>
    %cst_123 = arith.constant dense<0.000000e+00> : vector<2x8xf32>
    %593 = vector.multi_reduction <add>, %592, %cst_123 [2] : vector<2x8x8xf32> to vector<2x8xf32>
    %594 = vector.shape_cast %593 : vector<2x8xf32> to vector<2x8x1xf32>
    %595 = vector.broadcast %594 : vector<2x8x1xf32> to vector<2x8x8xf32>
    %596 = arith.divf %592, %595 : vector<2x8x8xf32>
    %597 = vector.extract_strided_slice %596 {offsets = [0, 0, 0], sizes = [1, 8, 8], strides = [1, 1, 1]} : vector<2x8x8xf32> to vector<1x8x8xf32>
    %598 = vector.shape_cast %597 : vector<1x8x8xf32> to vector<8x8xf32>
    %c0_124 = arith.constant 0 : index
    %c2_125 = arith.constant 2 : index
    %c0_126 = arith.constant 0 : index
    %c0_127 = arith.constant 0 : index
    %599 = vector.load %arg16[%c0_124, %c2_125, %c0_126, %c0_127] : memref<2x4x8x8xf32, #tpu.memory_space<vmem>>, vector<1x1x8x8xf32>
    %600 = vector.shape_cast %599 : vector<1x1x8x8xf32> to vector<8x8xf32>
    %601 = vector.shape_cast %598 : vector<8x8xf32> to vector<1x1x8x8xf32>
    tpu.vector_store %arg16[%c0_124, %c2_125, %c0_126, %c0_127], %601 {strides = array<i32>} : memref<2x4x8x8xf32, #tpu.memory_space<vmem>>, vector<1x1x8x8xf32>,
    %602 = vector.extract_strided_slice %596 {offsets = [1, 0, 0], sizes = [1, 8, 8], strides = [1, 1, 1]} : vector<2x8x8xf32> to vector<1x8x8xf32>
    %603 = vector.shape_cast %602 : vector<1x8x8xf32> to vector<8x8xf32>
    %c1_128 = arith.constant 1 : index
    %c2_129 = arith.constant 2 : index
    %c0_130 = arith.constant 0 : index
    %c0_131 = arith.constant 0 : index
    %604 = vector.load %arg16[%c1_128, %c2_129, %c0_130, %c0_131] : memref<2x4x8x8xf32, #tpu.memory_space<vmem>>, vector<1x1x8x8xf32>
    %605 = vector.shape_cast %604 : vector<1x1x8x8xf32> to vector<8x8xf32>
    %606 = vector.shape_cast %603 : vector<8x8xf32> to vector<1x1x8x8xf32>
    tpu.vector_store %arg16[%c1_128, %c2_129, %c0_130, %c0_131], %606 {strides = array<i32>} : memref<2x4x8x8xf32, #tpu.memory_space<vmem>>, vector<1x1x8x8xf32>,
    %607 = arith.truncf %596 : vector<2x8x8xf32> to vector<2x8x8xbf16>
    "tpu.trace_start"() <{level = 10 : i32, message = "bqk,bkd->bqd"}> : () -> ()
    %cst_132 = arith.constant dense<0.000000e+00> : vector<2x8x8xf32>
    %608 = tpu.matmul %607, %582, %cst_132 {dimension_numbers = #tpu.dot_dimension_numbers<[2], [1], [1], [2], [0, 0, 0, 1, 1, 2], [0], [0]>} : vector<2x8x8xbf16>, vector<2x8x8xbf16>, vector<2x8x8xf32> -> vector<2x8x8xf32>
    "tpu.trace_stop"() : () -> ()
    %609 = vector.shape_cast %608 : vector<2x8x8xf32> to vector<16x8xf32>
    %610 = arith.truncf %609 : vector<16x8xf32> to vector<16x8xbf16>
    %c16_133 = arith.constant 16 : index
    %c0_134 = arith.constant 0 : index
    %611 = vector.load %arg10[%c16_133, %c0_134] : memref<32x32xbf16, #tpu.memory_space<vmem>>, vector<8x32xbf16>
    %cst_135 = arith.constant dense<0.000000e+00> : vector<16x32xf32>
    %612 = tpu.matmul %610, %611, %cst_135 {dimension_numbers = #tpu.dot_dimension_numbers<[1], [0], [0], [1], [0, 0, 1, 1], [], []>} : vector<16x8xbf16>, vector<8x32xbf16>, vector<16x32xf32> -> vector<16x32xf32>
    %613 = arith.addf %573, %612 : vector<16x32xf32>
    %614 = vector.extract_strided_slice %481 {offsets = [0, 24], sizes = [16, 8], strides = [1, 1]} : vector<16x32xf32> to vector<16x8xf32>
    %615 = vector.shape_cast %614 : vector<16x8xf32> to vector<2x8x8xf32>
    %616 = arith.truncf %615 : vector<2x8x8xf32> to vector<2x8x8xbf16>
    %617 = vector.extract_strided_slice %488 {offsets = [0, 24], sizes = [16, 8], strides = [1, 1]} : vector<16x32xf32> to vector<16x8xf32>
    %618 = vector.shape_cast %617 : vector<16x8xf32> to vector<2x8x8xf32>
    %619 = arith.truncf %618 : vector<2x8x8xf32> to vector<2x8x8xbf16>
    %620 = vector.extract_strided_slice %492 {offsets = [0, 24], sizes = [16, 8], strides = [1, 1]} : vector<16x32xf32> to vector<16x8xf32>
    %621 = vector.shape_cast %620 : vector<16x8xf32> to vector<2x8x8xf32>
    %622 = arith.truncf %621 : vector<2x8x8xf32> to vector<2x8x8xbf16>
    "tpu.trace_start"() <{level = 10 : i32, message = "bqd,bkd->bqk"}> : () -> ()
    %cst_136 = arith.constant dense<0.000000e+00> : vector<2x8x8xf32>
    %623 = tpu.matmul %616, %619, %cst_136 {dimension_numbers = #tpu.dot_dimension_numbers<[2], [2], [1], [1], [0, 0, 0, 1, 1, 1], [0], [0]>} : vector<2x8x8xbf16>, vector<2x8x8xbf16>, vector<2x8x8xf32> -> vector<2x8x8xf32>
    "tpu.trace_stop"() : () -> ()
    %cst_137 = arith.constant 0.353553385 : f32
    %624 = vector.broadcast %cst_137 : f32 to vector<2x8x8xf32>
    %625 = arith.mulf %623, %624 : vector<2x8x8xf32>
    %626 = vector.broadcast %50 : vector<2x1x8xf32> to vector<2x8x8xf32>
    %627 = arith.addf %625, %626 : vector<2x8x8xf32>
    %cst_138 = arith.constant dense<0xFF800000> : vector<2x8xf32>
    %628 = vector.multi_reduction <maximumf>, %627, %cst_138 [2] : vector<2x8x8xf32> to vector<2x8xf32>
    %629 = vector.shape_cast %628 : vector<2x8xf32> to vector<2x8x1xf32>
    %630 = vector.broadcast %629 : vector<2x8x1xf32> to vector<2x8x8xf32>
    %631 = arith.subf %627, %630 : vector<2x8x8xf32>
    %632 = math.exp %631 : vector<2x8x8xf32>
    %cst_139 = arith.constant dense<0.000000e+00> : vector<2x8xf32>
    %633 = vector.multi_reduction <add>, %632, %cst_139 [2] : vector<2x8x8xf32> to vector<2x8xf32>
    %634 = vector.shape_cast %633 : vector<2x8xf32> to vector<2x8x1xf32>
    %635 = vector.broadcast %634 : vector<2x8x1xf32> to vector<2x8x8xf32>
    %636 = arith.divf %632, %635 : vector<2x8x8xf32>
    %637 = vector.extract_strided_slice %636 {offsets = [0, 0, 0], sizes = [1, 8, 8], strides = [1, 1, 1]} : vector<2x8x8xf32> to vector<1x8x8xf32>
    %638 = vector.shape_cast %637 : vector<1x8x8xf32> to vector<8x8xf32>
    %c0_140 = arith.constant 0 : index
    %c3_141 = arith.constant 3 : index
    %c0_142 = arith.constant 0 : index
    %c0_143 = arith.constant 0 : index
    %639 = vector.load %arg16[%c0_140, %c3_141, %c0_142, %c0_143] : memref<2x4x8x8xf32, #tpu.memory_space<vmem>>, vector<1x1x8x8xf32>
    %640 = vector.shape_cast %639 : vector<1x1x8x8xf32> to vector<8x8xf32>
    %641 = vector.shape_cast %638 : vector<8x8xf32> to vector<1x1x8x8xf32>
    tpu.vector_store %arg16[%c0_140, %c3_141, %c0_142, %c0_143], %641 {strides = array<i32>} : memref<2x4x8x8xf32, #tpu.memory_space<vmem>>, vector<1x1x8x8xf32>,
    %642 = vector.extract_strided_slice %636 {offsets = [1, 0, 0], sizes = [1, 8, 8], strides = [1, 1, 1]} : vector<2x8x8xf32> to vector<1x8x8xf32>
    %643 = vector.shape_cast %642 : vector<1x8x8xf32> to vector<8x8xf32>
    %c1_144 = arith.constant 1 : index
    %c3_145 = arith.constant 3 : index
    %c0_146 = arith.constant 0 : index
    %c0_147 = arith.constant 0 : index
    %644 = vector.load %arg16[%c1_144, %c3_145, %c0_146, %c0_147] : memref<2x4x8x8xf32, #tpu.memory_space<vmem>>, vector<1x1x8x8xf32>
    %645 = vector.shape_cast %644 : vector<1x1x8x8xf32> to vector<8x8xf32>
    %646 = vector.shape_cast %643 : vector<8x8xf32> to vector<1x1x8x8xf32>
    tpu.vector_store %arg16[%c1_144, %c3_145, %c0_146, %c0_147], %646 {strides = array<i32>} : memref<2x4x8x8xf32, #tpu.memory_space<vmem>>, vector<1x1x8x8xf32>,
    %647 = arith.truncf %636 : vector<2x8x8xf32> to vector<2x8x8xbf16>
    "tpu.trace_start"() <{level = 10 : i32, message = "bqk,bkd->bqd"}> : () -> ()
    %cst_148 = arith.constant dense<0.000000e+00> : vector<2x8x8xf32>
    %648 = tpu.matmul %647, %622, %cst_148 {dimension_numbers = #tpu.dot_dimension_numbers<[2], [1], [1], [2], [0, 0, 0, 1, 1, 2], [0], [0]>} : vector<2x8x8xbf16>, vector<2x8x8xbf16>, vector<2x8x8xf32> -> vector<2x8x8xf32>
    "tpu.trace_stop"() : () -> ()
    %649 = vector.shape_cast %648 : vector<2x8x8xf32> to vector<16x8xf32>
    %650 = arith.truncf %649 : vector<16x8xf32> to vector<16x8xbf16>
    %c24_149 = arith.constant 24 : index
    %c0_150 = arith.constant 0 : index
    %651 = vector.load %arg10[%c24_149, %c0_150] : memref<32x32xbf16, #tpu.memory_space<vmem>>, vector<8x32xbf16>
    %cst_151 = arith.constant dense<0.000000e+00> : vector<16x32xf32>
    %652 = tpu.matmul %650, %651, %cst_151 {dimension_numbers = #tpu.dot_dimension_numbers<[1], [0], [0], [1], [0, 0, 1, 1], [], []>} : vector<16x8xbf16>, vector<8x32xbf16>, vector<16x32xf32> -> vector<16x32xf32>
    %653 = arith.addf %613, %652 : vector<16x32xf32>
    %654 = arith.addf %451, %653 : vector<16x32xf32>
    %c16_152 = arith.constant 16 : index
    %c0_153 = arith.constant 0 : index
    %655 = vector.load %arg13[%c16_152, %c0_153] : memref<18x32xf32, #tpu.memory_space<vmem>>, vector<1x32xf32>
    %656 = vector.broadcast %655 : vector<1x32xf32> to vector<16x32xf32>
    %657 = arith.addf %654, %656 : vector<16x32xf32>
    %c4 = arith.constant 4 : index
    %c0_154 = arith.constant 0 : index
    %658 = vector.load %arg13[%c4, %c0_154] : memref<18x32xf32, #tpu.memory_space<vmem>>, vector<1x32xf32>
    %c5 = arith.constant 5 : index
    %c0_155 = arith.constant 0 : index
    %659 = vector.load %arg13[%c5, %c0_155] : memref<18x32xf32, #tpu.memory_space<vmem>>, vector<1x32xf32>
    %cst_156 = arith.constant dense<0.000000e+00> : vector<16xf32>
    %660 = vector.multi_reduction <add>, %657, %cst_156 [1] : vector<16x32xf32> to vector<16xf32>
    %661 = vector.shape_cast %660 : vector<16xf32> to vector<16x1xf32>
    %cst_157 = arith.constant 3.200000e+01 : f32
    %662 = vector.broadcast %cst_157 : f32 to vector<16x1xf32>
    %663 = arith.divf %661, %662 : vector<16x1xf32>
    %664 = vector.broadcast %663 : vector<16x1xf32> to vector<16x32xf32>
    %665 = arith.subf %657, %664 : vector<16x32xf32>
    %666 = arith.mulf %665, %665 : vector<16x32xf32>
    %cst_158 = arith.constant dense<0.000000e+00> : vector<16xf32>
    %667 = vector.multi_reduction <add>, %666, %cst_158 [1] : vector<16x32xf32> to vector<16xf32>
    %668 = vector.shape_cast %667 : vector<16xf32> to vector<16x1xf32>
    %cst_159 = arith.constant 3.200000e+01 : f32
    %669 = vector.broadcast %cst_159 : f32 to vector<16x1xf32>
    %670 = arith.divf %668, %669 : vector<16x1xf32>
    %671 = vector.broadcast %663 : vector<16x1xf32> to vector<16x32xf32>
    %672 = arith.subf %657, %671 : vector<16x32xf32>
    %cst_160 = arith.constant 9.99999974E-6 : f32
    %673 = vector.broadcast %cst_160 : f32 to vector<16x1xf32>
    %674 = arith.addf %670, %673 : vector<16x1xf32>
    %675 = math.rsqrt %674 : vector<16x1xf32>
    %676 = vector.broadcast %675 : vector<16x1xf32> to vector<16x32xf32>
    %677 = arith.mulf %672, %676 : vector<16x32xf32>
    %678 = vector.broadcast %658 : vector<1x32xf32> to vector<16x32xf32>
    %679 = arith.mulf %677, %678 : vector<16x32xf32>
    %680 = vector.broadcast %659 : vector<1x32xf32> to vector<16x32xf32>
    %681 = arith.addf %679, %680 : vector<16x32xf32>
    %682 = arith.truncf %681 : vector<16x32xf32> to vector<16x32xbf16>
    %c0_161 = arith.constant 0 : index
    %c0_162 = arith.constant 0 : index
    %683 = vector.load %arg11[%c0_161, %c0_162] : memref<32x64xbf16, #tpu.memory_space<vmem>>, vector<32x64xbf16>
    %cst_163 = arith.constant dense<0.000000e+00> : vector<16x64xf32>
    %684 = tpu.matmul %682, %683, %cst_163 {dimension_numbers = #tpu.dot_dimension_numbers<[1], [0], [0], [1], [0, 0, 1, 1], [], []>} : vector<16x32xbf16>, vector<32x64xbf16>, vector<16x64xf32> -> vector<16x64xf32>
    %c0_164 = arith.constant 0 : index
    %c0_165 = arith.constant 0 : index
    %685 = vector.load %arg14[%c0_164, %c0_165] : memref<1x64xf32, #tpu.memory_space<vmem>>, vector<1x64xf32>
    %686 = vector.broadcast %685 : vector<1x64xf32> to vector<16x64xf32>
    %687 = arith.addf %684, %686 : vector<16x64xf32>
    %cst_166 = arith.constant 0.000000e+00 : f32
    %688 = vector.broadcast %cst_166 : f32 to vector<16x64xf32>
    %689 = arith.maximumf %687, %688 : vector<16x64xf32>
    %690 = arith.truncf %689 : vector<16x64xf32> to vector<16x64xbf16>
    %c0_167 = arith.constant 0 : index
    %c0_168 = arith.constant 0 : index
    %691 = vector.load %arg12[%c0_167, %c0_168] : memref<64x32xbf16, #tpu.memory_space<vmem>>, vector<64x32xbf16>
    %cst_169 = arith.constant dense<0.000000e+00> : vector<16x32xf32>
    %692 = tpu.matmul %690, %691, %cst_169 {dimension_numbers = #tpu.dot_dimension_numbers<[1], [0], [0], [1], [0, 0, 1, 1], [], []>} : vector<16x64xbf16>, vector<64x32xbf16>, vector<16x32xf32> -> vector<16x32xf32>
    %c17 = arith.constant 17 : index
    %c0_170 = arith.constant 0 : index
    %693 = vector.load %arg13[%c17, %c0_170] : memref<18x32xf32, #tpu.memory_space<vmem>>, vector<1x32xf32>
    %694 = vector.broadcast %693 : vector<1x32xf32> to vector<16x32xf32>
    %695 = arith.addf %692, %694 : vector<16x32xf32>
    %696 = arith.addf %657, %695 : vector<16x32xf32>
    %c0_171 = arith.constant 0 : index
    %c0_172 = arith.constant 0 : index
    %697 = vector.load %arg15[%c0_171, %c0_172] : memref<16x32xf32, #tpu.memory_space<vmem>>, vector<16x32xf32>
    tpu.vector_store %arg15[%c0_171, %c0_172], %696 {strides = array<i32>} : memref<16x32xf32, #tpu.memory_space<vmem>>, vector<16x32xf32>,
    return
  }
}

</mosaic_0001>

<bundles_post_ra>
// kernel: tpu_custom_call.1
= control target key start
LH: loop header
LB: loop body
LE: loop exit
PB: predicated region body
PF: predicated region fallthrough
CT: control target
= control target key end

     0   :  { %s5800_s0 = inlined_call_operand.vmem [shape: f32[16,32], index: 0, kind: input, shape index: {}]   ;;  %s5801_s1 = inlined_call_operand.hbm [shape: f32[16,32], index: 1, kind: input, shape index: {}]   ;;  %s5802_s2 = inlined_call_operand.hbm [shape: f32[8,32], index: 2, kind: input, shape index: {}]   ;;  %s5803_s3 = inlined_call_operand.hbm [shape: f32[2,8], index: 3, kind: input, shape index: {}]   ;;  %s5804_s4 = inlined_call_operand.hbm [shape: f32[2,8], index: 4, kind: input, shape index: {}]   ;;  %s5805_s5 = inlined_call_operand.vmem [shape: bf16[32,96], index: 5, kind: input, shape index: {}]   ;;  %s5806_s6 = inlined_call_operand.hbm [shape: bf16[32,32], index: 6, kind: input, shape index: {}]   ;;  %s5807_s7 = inlined_call_operand.hbm [shape: bf16[32,32], index: 7, kind: input, shape index: {}]   ;;  %s5808_s8 = inlined_call_operand.hbm [shape: bf16[32,32], index: 8, kind: input, shape index: {}]   ;;  %s5809_s9 = inlined_call_operand.hbm [shape: bf16[32,64], index: 9, kind: input, shape index: {}]   ;;  %s5810_s10 = inlined_call_operand.hbm [shape: bf16[32,32], index: 10, kind: input, shape index: {}]   ;;  %s5811_s11 = inlined_call_operand.vmem [shape: bf16[32,64], index: 11, kind: input, shape index: {}]   ;;  %s5812_s12 = inlined_call_operand.vmem [shape: bf16[64,32], index: 12, kind: input, shape index: {}]   ;;  %s5813_s13 = inlined_call_operand.vmem [shape: f32[18,32], index: 13, kind: input, shape index: {}]   ;;  %s5814_s14 = inlined_call_operand.vmem [shape: f32[1,64], index: 14, kind: input, shape index: {}]   ;;  %s5815_s15 = inlined_call_operand.hbm [shape: f32[16,32], index: 15, kind: output, shape index: {0}]   ;;  %s5816_s16 = inlined_call_operand.hbm [shape: f32[2,4,8,8], index: 16, kind: output, shape index: {1}]  }
   0x1   :  { %5818 = sst [smem:[#allocation27_spill]] %s5800_s0 }
   0x2   :  { %22 = vsyncpa [#allocation3], 0 }
   0x3   :  { %23 = vsyncpa [#allocation6], 0 }
   0x4   :  { %24 = vsyncpa [#allocation9], 0 }
   0x5   :  { %25 = vsyncpa [#allocation12], 0 }
   0x6   :  { %26 = vsyncpa [#allocation15], 0 }
   0x7   :  { %27 = vsyncpa [#allocation4], 0 }
   0x8   :  { %28 = vsyncpa [#allocation19], 0  ;;  %s4707_s21 = smov [#allocation5]   ;;  %s4708_s23 = smov [#allocation8]  }
   0x9   :  { %s49_s22 = sshll.u32 %s4707_s21, 4  ;;  %s69_s24 = sshll.u32 %s4708_s23, 4  ;;  %s50_s22 = int_to_ptr.vmem [resolvable:$true] %s49_s22  ;;  %s70_s24 = int_to_ptr.vmem [resolvable:$true] %s69_s24 }
   0xa   :  { %s4451_s27 = scalar_lea.hbm %s5802_s2, 128 }
   0xb   :  { %p4452_p0 = scmp.ne.s32.totalorder %s5802_s2, %s4451_s27  ;;  %p4455_p1 = scmp.lt.u32.totalorder %s4451_s27, %s5802_s2 }
   0xd   :  { %p4457_p2 = pnand %p4455_p1, %p4452_p0 }
   0xf   :  { %4460 = shalt.err (!%p4457_p2)
}
  0x10   :  { %s4461_s17 = scalar_lea.vmem %s50_s22, 128  ;;  %p4466_p4 = scmp.lt.s32.totalorder %s50_s22, %s50_s22 }
  0x11   :  { %p4462_p3 = scmp.ne.s32.totalorder %s50_s22, %s4461_s17  ;;  %p4467_p5 = scmp.lt.s32.totalorder %s4461_s17, %s4461_s17 }
  0x13   :  { %p4468_p6 = por %p4467_p5, %p4466_p4 }
  0x15   :  { %p4469_p7 = pnand %p4468_p6, %p4462_p3 }
  0x17   :  { %4472 = shalt.err (!%p4469_p7)
}
  0x18   :  { %52 = dma.hbm_to_vmem [thread:$0]  %s5802_s2, 128, %s50_s22, [#allocation6]  }
  0x19   :  { %s4473_s23 = scalar_lea.hbm %s5804_s4, 32 }
  0x1a   :  { %p4474_p8 = scmp.ne.s32.totalorder %s5804_s4, %s4473_s23  ;;  %p4477_p9 = scmp.lt.u32.totalorder %s4473_s23, %s5804_s4 }
  0x1c   :  { %p4479_p10 = pnand %p4477_p9, %p4474_p8 }
  0x1e   :  { %4482 = shalt.err (!%p4479_p10)
}
  0x1f   :  { %s4483_s29 = scalar_lea.vmem %s70_s24, 32  ;;  %p4488_p12 = scmp.lt.s32.totalorder %s70_s24, %s70_s24 }
  0x20   :  { %p4484_p11 = scmp.ne.s32.totalorder %s70_s24, %s4483_s29  ;;  %p4489_p13 = scmp.lt.s32.totalorder %s4483_s29, %s4483_s29 }
  0x22   :  { %p4490_p0 = por %p4489_p13, %p4488_p12 }
  0x24   :  { %p4491_p1 = pnand %p4490_p0, %p4484_p11 }
  0x26   :  { %4494 = shalt.err (!%p4491_p1)
}
  0x27   :  { %72 = dma.hbm_to_vmem [thread:$0]  %s5804_s4, 32, %s70_s24, [#allocation9]  }
  0x28   :  { %s4709_s30 = smov [#allocation11]   ;;  %s4710_s17 = smov [#allocation14]  }
  0x29   :  { %s92_s0 = sshll.u32 %s4709_s30, 4  ;;  %s116_s18 = sshll.u32 %s4710_s17, 4  ;;  %s93_s0 = int_to_ptr.vmem [resolvable:$true] %s92_s0  ;;  %s4853_s18 = int_to_ptr.vmem [resolvable:$true] %s116_s18 }
  0x2a   :  { %s4495_s21 = scalar_lea.hbm %s5807_s7, 256 }
  0x2b   :  { %p4496_p2 = scmp.ne.s32.totalorder %s5807_s7, %s4495_s21  ;;  %p4499_p3 = scmp.lt.u32.totalorder %s4495_s21, %s5807_s7 }
  0x2d   :  { %p4501_p4 = pnand %p4499_p3, %p4496_p2 }
  0x2f   :  { %4504 = shalt.err (!%p4501_p4)
}
  0x30   :  { %s4505_s4 = scalar_lea.vmem %s93_s0, 256  ;;  %p4510_p6 = scmp.lt.s32.totalorder %s93_s0, %s93_s0 }
  0x31   :  { %p4506_p5 = scmp.ne.s32.totalorder %s93_s0, %s4505_s4  ;;  %p4511_p7 = scmp.lt.s32.totalorder %s4505_s4, %s4505_s4 }
  0x33   :  { %p4512_p8 = por %p4511_p7, %p4510_p6 }
  0x35   :  { %p4513_p9 = pnand %p4512_p8, %p4506_p5 }
  0x37   :  { %4516 = shalt.err (!%p4513_p9)
}
  0x38   :  { %s4711_s24 = smov 64   ;;  %s4712_s28 = smov 4  }
  0x39   :  { %98 = dma.hbm_to_vmem [thread:$0]  %s5807_s7, 256, %s93_s0, [#allocation12], %s4711_s24, %s4711_s24, %s4712_s28  }
  0x3a   :  { %s4517_s17 = scalar_lea.hbm %s5809_s9, 256 }
  0x3b   :  { %p4518_p10 = scmp.ne.s32.totalorder %s5809_s9, %s4517_s17  ;;  %p4521_p11 = scmp.lt.u32.totalorder %s4517_s17, %s5809_s9 }
  0x3d   :  { %p4523_p12 = pnand %p4521_p11, %p4518_p10 }
  0x3f   :  { %4526 = shalt.err (!%p4523_p12)
}
  0x40   :  { %s4527_s25 = scalar_lea.vmem %s4853_s18, 256  ;;  %p4532_p0 = scmp.lt.s32.totalorder %s4853_s18, %s4853_s18 }
  0x41   :  { %p4528_p13 = scmp.ne.s32.totalorder %s4853_s18, %s4527_s25  ;;  %p4533_p1 = scmp.lt.s32.totalorder %s4527_s25, %s4527_s25 }
  0x43   :  { %p4534_p2 = por %p4533_p1, %p4532_p0 }
  0x45   :  { %p4535_p3 = pnand %p4534_p2, %p4528_p13 }
  0x47   :  { %4538 = shalt.err (!%p4535_p3)
}
  0x48   :  { %122 = dma.hbm_to_vmem [thread:$0]  %s5809_s9, 256, %s4853_s18, [#allocation15], %s4711_s24, %s4711_s24, %s4712_s28  }
  0x49   :  { %s4713_s26 = smov [#allocation2]   ;;  %s4539_s2 = scalar_lea.hbm %s5801_s1, 256 }
  0x4a   :  { %s36_s27 = sshll.u32 %s4713_s26, 4  ;;  %p4540_p4 = scmp.ne.s32.totalorder %s5801_s1, %s4539_s2  ;;  %s37_s27 = int_to_ptr.vmem [resolvable:$true] %s36_s27 }
  0x4b   :  { %p4543_p5 = scmp.lt.u32.totalorder %s4539_s2, %s5801_s1 }
  0x4d   :  { %p4545_p6 = pnand %p4543_p5, %p4540_p4 }
  0x4f   :  { %4548 = shalt.err (!%p4545_p6)
}
  0x50   :  { %s4549_s20 = scalar_lea.vmem %s37_s27, 256  ;;  %p4554_p8 = scmp.lt.s32.totalorder %s37_s27, %s37_s27 }
  0x51   :  { %p4550_p7 = scmp.ne.s32.totalorder %s37_s27, %s4549_s20  ;;  %p4555_p9 = scmp.lt.s32.totalorder %s4549_s20, %s4549_s20 }
  0x53   :  { %p4556_p10 = por %p4555_p9, %p4554_p8 }
  0x55   :  { %p4557_p11 = pnand %p4556_p10, %p4550_p7 }
  0x57   :  { %4560 = shalt.err (!%p4557_p11)
}
  0x58   :  { %s4714_s9 = smov 128   ;;  %s4715_s18 = smov 8  }
  0x59   :  { %42 = dma.hbm_to_vmem [thread:$0]  %s5801_s1, 256, %s37_s27, [#allocation3], %s4714_s9, %s4714_s9, %s4715_s18  }
  0x5a   :  { %s4716_s25 = smov [#allocation7]   ;;  %s4717_s0 = smov [#allocation10]  }
  0x5b   :  { %s59_s7 = sshll.u32 %s4716_s25, 4  ;;  %s80_s26 = sshll.u32 %s4717_s0, 4  ;;  %s60_s7 = int_to_ptr.vmem [resolvable:$true] %s59_s7  ;;  %s81_s26 = int_to_ptr.vmem [resolvable:$true] %s80_s26 }
  0x5c   :  { %s4561_s2 = scalar_lea.hbm %s5803_s3, 32 }
  0x5d   :  { %p4562_p12 = scmp.ne.s32.totalorder %s5803_s3, %s4561_s2  ;;  %p4565_p13 = scmp.lt.u32.totalorder %s4561_s2, %s5803_s3 }
  0x5f   :  { %p4567_p0 = pnand %p4565_p13, %p4562_p12 }
  0x61   :  { %4570 = shalt.err (!%p4567_p0)
}
  0x62   :  { %s4571_s1 = scalar_lea.vmem %s60_s7, 32  ;;  %p4576_p2 = scmp.lt.s32.totalorder %s60_s7, %s60_s7 }
  0x63   :  { %p4572_p1 = scmp.ne.s32.totalorder %s60_s7, %s4571_s1  ;;  %p4577_p3 = scmp.lt.s32.totalorder %s4571_s1, %s4571_s1 }
  0x65   :  { %p4578_p4 = por %p4577_p3, %p4576_p2 }
  0x67   :  { %p4579_p5 = pnand %p4578_p4, %p4572_p1 }
  0x69   :  { %4582 = shalt.err (!%p4579_p5)
}
  0x6a   :  { %62 = dma.hbm_to_vmem [thread:$0]  %s5803_s3, 32, %s60_s7, [#allocation6]  }
  0x6b   :  { %s4583_s25 = scalar_lea.hbm %s5806_s6, 256 }
  0x6c   :  { %p4584_p6 = scmp.ne.s32.totalorder %s5806_s6, %s4583_s25  ;;  %p4587_p7 = scmp.lt.u32.totalorder %s4583_s25, %s5806_s6 }
  0x6e   :  { %p4589_p8 = pnand %p4587_p7, %p4584_p6 }
  0x70   :  { %4592 = shalt.err (!%p4589_p8)
}
  0x71   :  { %s4593_s22 = scalar_lea.vmem %s81_s26, 256  ;;  %p4598_p10 = scmp.lt.s32.totalorder %s81_s26, %s81_s26 }
  0x72   :  { %p4594_p9 = scmp.ne.s32.totalorder %s81_s26, %s4593_s22  ;;  %p4599_p11 = scmp.lt.s32.totalorder %s4593_s22, %s4593_s22 }
  0x74   :  { %p4600_p12 = por %p4599_p11, %p4598_p10 }
  0x76   :  { %p4601_p13 = pnand %p4600_p12, %p4594_p9 }
  0x78   :  { %4604 = shalt.err (!%p4601_p13)
}
  0x79   :  { %86 = dma.hbm_to_vmem [thread:$0]  %s5806_s6, 256, %s81_s26, [#allocation9], %s4711_s24, %s4711_s24, %s4712_s28  }
  0x7a   :  { %s4718_s30 = smov [#allocation13]   ;;  %s4719_s19 = smov [#allocation16]  }
  0x7b   :  { %s104_s17 = sshll.u32 %s4718_s30, 4  ;;  %s128_s1 = sshll.u32 %s4719_s19, 4  ;;  %s105_s17 = int_to_ptr.vmem [resolvable:$true] %s104_s17  ;;  %s129_s1 = int_to_ptr.vmem [resolvable:$true] %s128_s1 }
  0x7c   :  { %s4605_s21 = scalar_lea.hbm %s5808_s8, 256 }
  0x7d   :  { %p4606_p0 = scmp.ne.s32.totalorder %s5808_s8, %s4605_s21  ;;  %p4609_p1 = scmp.lt.u32.totalorder %s4605_s21, %s5808_s8 }
  0x7f   :  { %p4611_p2 = pnand %p4609_p1, %p4606_p0 }
  0x81   :  { %4614 = shalt.err (!%p4611_p2)
}
  0x82   :  { %s4615_s6 = scalar_lea.vmem %s105_s17, 256  ;;  %p4620_p4 = scmp.lt.s32.totalorder %s105_s17, %s105_s17 }
  0x83   :  { %p4616_p3 = scmp.ne.s32.totalorder %s105_s17, %s4615_s6  ;;  %p4621_p5 = scmp.lt.s32.totalorder %s4615_s6, %s4615_s6 }
  0x85   :  { %p4622_p6 = por %p4621_p5, %p4620_p4 }
  0x87   :  { %p4623_p7 = pnand %p4622_p6, %p4616_p3 }
  0x89   :  { %4626 = shalt.err (!%p4623_p7)
}
  0x8a   :  { %110 = dma.hbm_to_vmem [thread:$0]  %s5808_s8, 256, %s105_s17, [#allocation12], %s4711_s24, %s4711_s24, %s4712_s28  }
  0x8b   :  { %s4627_s3 = scalar_lea.hbm %s5810_s10, 256 }
  0x8c   :  { %p4628_p8 = scmp.ne.s32.totalorder %s5810_s10, %s4627_s3  ;;  %p4631_p9 = scmp.lt.u32.totalorder %s4627_s3, %s5810_s10 }
  0x8e   :  { %p4633_p10 = pnand %p4631_p9, %p4628_p8 }
  0x90   :  { %4636 = shalt.err (!%p4633_p10)
}
  0x91   :  { %s4637_s20 = scalar_lea.vmem %s129_s1, 256  ;;  %p4642_p12 = scmp.lt.s32.totalorder %s129_s1, %s129_s1 }
  0x92   :  { %p4638_p11 = scmp.ne.s32.totalorder %s129_s1, %s4637_s20  ;;  %p4643_p13 = scmp.lt.s32.totalorder %s4637_s20, %s4637_s20 }
  0x94   :  { %p4644_p0 = por %p4643_p13, %p4642_p12 }
  0x96   :  { %p4645_p1 = pnand %p4644_p0, %p4638_p11 }
  0x98   :  { %4648 = shalt.err (!%p4645_p1)
}
  0x99   :  { %134 = dma.hbm_to_vmem [thread:$0]  %s5810_s10, 256, %s129_s1, [#allocation15], %s4711_s24, %s4711_s24, %s4712_s28  }
  0x9a   :  { %4693 = dma.done.wait [#allocation3], 256  }
  0x9b   :  { %4694 = vsyncadd [#allocation3], 4294967040 }
  0x9c   :  { %4695 = dma.done.wait [#allocation6], 160  }
  0x9d   :  { %4696 = vsyncadd [#allocation6], 4294967136 }
  0x9e   :  { %4697 = dma.done.wait [#allocation9], 288  }
  0x9f   :  { %4698 = vsyncadd [#allocation9], 4294967008 }
  0xa0   :  { %4699 = dma.done.wait [#allocation12], 512  }
  0xa1   :  { %4700 = vsyncadd [#allocation12], 4294966784 }
  0xa2   :  { %4701 = dma.done.wait [#allocation15], 512  }
  0xa3   :  { %4702 = vsyncadd [#allocation15], 4294966784  ;;  %vm269_vm0 = vcmask 261120   ;;  %s5819_s25 = sld [smem:[#allocation27_spill]]  ;;  %v4359_v14 = vld [vmem:[#allocation10] sm:$0xff]   ;;  %v4720_v15 = vmov 0.0  }
  0xa4   :  { %3952 = vmatprep.subr.bf16.mxu1 %v4720_v15  ;;  %vm4721_vm1 = vmmov 0   ;;  %v4361_v16 = vld [vmem:[%s5805_s5] sm:$0xff]   ;;  %3944 = vmatprep.subr.bf16.mxu0 %v4720_v15  ;;  %v399_v18 = vld [vmem:[#allocation5] sm:$0xff]  ;;  %v4362_v19 = vld [vmem:[%s5805_s5 + $0x8] sm:$0xff]   ;;  %s4722_s5 = smov 32   ;;  %vm487_vm2 = vcmask 64512  }
  0xa5   :  { %3956 = vmatprep.mubr.msk.bf16.mxu1 %vm4721_vm1, %v4720_v15  ;;  %3953 = vmatpush3.bf16.msra.mxu1 %v4359_v14  ;;  %v4360_v17 = vld [vmem:[#allocation10 + $0x8] sm:$0xff]   ;;  %v400_v20 = vpack.c.bf16 %v399_v18, %v399_v18  ;;  %v3753_v30 = vld [vmem:[%s5813_s13] ss:$0 sm:$0xff]  ;;  %v3754_v34 = vld [vmem:[%s5813_s13 + $0x1] ss:$0 sm:$0xff]  ;;  %s4723_s21 = smov 96  }
  0xa6   :  { %3954 = vmatprep.subr.bf16.mxu1 %v4720_v15  ;;  %3945 = vmatpush3.bf16.msra.mxu0 %v4361_v16  ;;  %v3759_v21 = vld [vmem:[%s5813_s13 + $0x9] ss:$0 sm:$0xff]  ;;  %v3761_v39 = vld [vmem:[%s5813_s13 + $0xb] ss:$0 sm:$0xff]  ;;  %v3758_v47 = vld [vmem:[%s5813_s13 + $0x8] ss:$0 sm:$0xff] }
  0xa7   :  { %3946 = vmatprep.subr.bf16.mxu0 %v4720_v15  ;;  %3948 = vmatprep.mubr.msk.bf16.mxu0 %vm4721_vm1, %v4720_v15  ;;  %v3766_v53 = vld [vmem:[%s5813_s13 + $0x7] ss:$0 sm:$0xff]  ;;  %v4724_v61 = vmov 1   ;;  %v4725_v62 = vmov 0   ;;  %v4726_v14 = vmov 4   ;;  %v4727_v16 = vmov 2  }
  0xa8   :  { %4298 = vset.pattern.permute.xlu0 %v4724_v61  ;;  %4297 = vset.pattern.permute.xlu1 %v4725_v62  ;;  %v4729_v18 = vmov 3   ;;  %s4733_s28 = smov 120   ;;  %vm765_vm12 = vcmask 1043456   ;;  %s4734_s1 = smov 88   ;;  %vm3657_vm13 = vcmask 523264  }
  0xa9   :  { %v171_v0 = vld [vmem:[%s5819_s25] sm:$0xff]  ;;  %v172_v1 = vld [vmem:[%s5819_s25 + $0x8] sm:$0xff]  ;;  %3955 = vmatpush3.bf16.msra.mxu1 %v4360_v17  ;;  %v4728_v17 = vmov 7   ;;  %s4736_s6 = smov 112   ;;  %s4737_s26 = smov 80  }
  0xaa   :  { %v270_v2 = vsel %vm269_vm0, %v171_v0, 0.0  ;;  %v273_v3 = vsel %vm269_vm0, %v172_v1, 0.0  ;;  %3947 = vmatpush3.bf16.msra.mxu0 %v4362_v19  ;;  %3966 = vmatprep.subr.bf16.mxu1 %v4720_v15  ;;  %v4730_v19 = vmov 5   ;;  %s4738_s29 = smov 48   ;;  %s4739_s2 = smov 104  }
  0xab   :  { %271 = vadd.xlane.f32.xlu0 %v270_v2  ;;  %3960 = vmatprep.subr.bf16.mxu0 %v4720_v15  ;;  %s4740_s22 = smov 72   ;;  %s4741_s3 = smov 40  }
  0xac   :  { %3957 = vmatmul.mubr.msk.bf16.vlgmr.msra.gmra.mrb[0].mxu1 %vm269_vm0, %v400_v20  ;;  %v4731_v20 = vmov 6  }
  0xad   :  { %3968 = vmatprep.mubr.msk.bf16.mxu1 %vm4721_vm1, %v4720_v15 }
  0xaf   :  { %274 = vadd.xlane.f32.xlu0 %v273_v3 }
  0xc5   :  { %383 = vrot.lane.b32.xlu0 %v3759_v21, %s4722_s5  ;;  %v3760_v21 = vld [vmem:[%s5813_s13 + $0xa] ss:$0 sm:$0xff] }
 0x138   :  { %v272_v4 = vpop.xlane.xlu0 %271 }
 0x139   :  { %v277_v5 = vmul.f32 0.03125, %v272_v4 }
 0x13b   :  { %v279_v6 = vsub.f32 %v171_v0, %v277_v5 }
 0x13c   :  { %v275_v7 = vpop.xlane.xlu0 %274 }
 0x13d   :  { %v278_v8 = vmul.f32 0.03125, %v275_v7  ;;  %v281_v9 = vmul.f32 %v279_v6, %v279_v6 }
 0x13f   :  { %v280_v10 = vsub.f32 %v172_v1, %v278_v8  ;;  %v283_v11 = vsel %vm269_vm0, %v281_v9, 0.0  ;;  %v3765_v1 = vld [vmem:[%s5813_s13 + $0x6] ss:$0 sm:$0xff] }
 0x140   :  { %284 = vadd.xlane.f32.xlu1 %v283_v11  ;;  %v384_v48 = vpop.permute.xlu0 %383 }
 0x141   :  { %v282_v12 = vmul.f32 %v280_v10, %v280_v10 }
 0x143   :  { %v286_v13 = vsel %vm269_vm0, %v282_v12, 0.0 }
 0x144   :  { %287 = vadd.xlane.f32.xlu1 %v286_v13 }
 0x17f   :  { %v459_v40 = vpop.f32.mrb[0].mxu1 }
 0x180   :  { %v3958_v41 = vpop.f32.mrb[1].mxu1  ;;  %v460_v43 = vadd.f32 %v3761_v39, %v459_v40 }
 0x181   :  { %v462_v42 = vpop.f32.mrb[2].mxu1 }
 0x182   :  { %v3959_v44 = vpop.f32.mrb[3].mxu1  ;;  %v5007_v45 = vpack.c.bf16 %v460_v43, %v460_v43 }
 0x184   :  { %v492_v46 = vsel %vm487_vm2, %v5007_v45, 0 }
 0x1cd   :  { %v285_v22 = vpop.xlane.xlu1 %284 }
 0x1ce   :  { %v289_v23 = vmul.f32 0.03125, %v285_v22  ;;  %v175_v22 = vlaneseq }
 0x1d0   :  { %v291_v24 = vadd.f32 1e-05, %v289_v23  ;;  %v176_v23 = vshrl.u32 %v175_v22, 7 }
 0x1d1   :  { %v288_v25 = vpop.xlane.xlu1 %287 }
 0x1d2   :  { %4373 = vrsqrt.f32 %v291_v24  ;;  %v290_v26 = vmul.f32 0.03125, %v288_v25  ;;  %v178_v24 = vand.u32 127, %v175_v22 }
 0x1d4   :  { %v292_v27 = vadd.f32 1e-05, %v290_v26  ;;  %v181_v26 = vsub.s32 %v178_v24, %v176_v23  ;;  %vm179_vm11 = vcmp.gt.s32.totalorder %v178_v24, %v176_v23 }
 0x1d6   :  { %4375 = vrsqrt.f32 %v292_v27 }
 0x1dc   :  { %v4374_v28 = vpop.eup %4373 }
 0x1dd   :  { %v295_v29 = vmul.f32 %v4374_v28, %v279_v6 }
 0x1df   :  { %v301_v33 = vmul.f32 %v3753_v30, %v295_v29 }
 0x1e0   :  { %v4376_v31 = vpop.eup %4375 }
 0x1e1   :  { %v296_v32 = vmul.f32 %v4376_v31, %v280_v10  ;;  %v307_v36 = vadd.f32 %v3754_v34, %v301_v33  ;;  %v182_v31 = vadd.s32 7, %v181_v26 }
 0x1e3   :  { %v302_v35 = vmul.f32 %v3753_v30, %v296_v32  ;;  %vm183_vm3 = vcmp.eq.s32.totalorder %v182_v31, 0  ;;  %vm186_vm4 = vcmp.eq.s32.totalorder %v182_v31, 1  ;;  %vm189_vm5 = vcmp.eq.s32.totalorder %v182_v31, 2 }
 0x1e4   :  { %v5091_v39 = vsel %vm189_vm5, 1.0, %v4720_v15  ;;  %vm192_vm6 = vcmp.eq.s32.totalorder %v182_v31, 3  ;;  %vm195_vm7 = vcmp.eq.s32.totalorder %v182_v31, 4  ;;  %vm198_vm8 = vcmp.eq.s32.totalorder %v182_v31, 5 }
 0x1e5   :  { %v308_v37 = vadd.f32 %v3754_v34, %v302_v35  ;;  %vm201_vm9 = vcmp.eq.s32.totalorder %v182_v31, 6  ;;  %vm204_vm10 = vcmp.eq.s32.totalorder %v182_v31, 7 }
 0x1e7   :  { %v309_v38 = vpack.c.bf16 %v308_v37, %v307_v36  ;;  %v5085_v37 = vsel %vm183_vm3, 1.0, %v4720_v15 }
 0x1e9   :  { %3949 = vmatmul.mubr.msk.bf16.vlgmr.msra.gmra.mrb[0].mxu0 %vm269_vm0, %v309_v38  ;;  %v5088_v38 = vsel %vm186_vm4, 1.0, %v4720_v15 }
 0x1ea   :  { %3962 = vmatprep.mubr.msk.bf16.mxu0 %vm4721_vm1, %v4720_v15  ;;  %3961 = vmatpush3.bf16.xpose.msra.mxu0 %v492_v46  ;;  %v4732_v46 = vmov 1966171168  }
 0x1eb   :  { %3972 = vmatprep.subr.bf16.mxu0 %v4720_v15 }
 0x2bc   :  { %v5015_v49 = vpop.f32.mrb[0].mxu0 }
 0x2bd   :  { %v375_v50 = vadd.f32 %v3758_v47, %v5015_v49  ;;  %v386_v51 = vadd.f32 %v384_v48, %v5015_v49  ;;  %v3950_v52 = vpop.f32.mrb[1].mxu0 }
 0x2be   :  { %v5022_v54 = vpop.f32.mrb[2].mxu0 }
 0x2bf   :  { %v5024_v55 = vpack.c.bf16 %v386_v51, %v386_v51  ;;  %v376_v56 = vadd.f32 %v3758_v47, %v5022_v54  ;;  %v3951_v57 = vpop.f32.mrb[3].mxu0  ;;  %v387_v58 = vadd.f32 %v384_v48, %v5022_v54  ;;  %v477_v59 = vadd.f32 %v3766_v53, %v375_v50 }
 0x2c0   :  { %v470_v4 = vadd.f32 %v3765_v1, %v375_v50  ;;  %v218_v47 = vunpack.c.l.s4 %v4732_v46  ;;  %v5097_v48 = vsel %vm192_vm6, 1.0, %v4720_v15 }
 0x2c1   :  { %v478_v60 = vadd.f32 %v3766_v53, %v376_v56  ;;  %634 = vrot.lane.b32.xlu1 %v5024_v55, %s4723_s21  ;;  %v5032_v63 = vpack.c.bf16 %v387_v58, %v387_v58  ;;  %v471_v8 = vadd.f32 %v3765_v1, %v376_v56  ;;  %v5101_v58 = vsel %vm195_vm7, 1.0, %v4720_v15 }
 0x2c2   :  { %v5048_v7 = vpack.c.bf16 %v470_v4, %v470_v4  ;;  %v219_v57 = vunpack.c.0.s8 %v218_v47  ;;  %v3751_v4 = vld.sshfl [vmem:[#allocation7] sm:$0x11 pattern:$0x75316420] }
 0x2c3   :  { %v5034_v0 = vpack.c.bf16 %v478_v60, %v477_v59  ;;  %v5055_v9 = vpack.c.bf16 %v471_v8, %v471_v8  ;;  %v5104_v60 = vsel %vm198_vm8, 1.0, %v4720_v15 }
 0x2c5   :  { %3963 = vmatmul.mubr.msk.bf16.vlgmr.msra.gmra.mrb[4].mxu0 %vm487_vm2, %v5034_v0  ;;  %683 = vrot.lane.b32.xlu1 %v5032_v63, %s4723_s21 }
 0x2c6   :  { %3974 = vmatprep.mubr.msk.bf16.mxu0 %vm4721_vm1, %v4720_v15 }
 0x333   :  { %v635_v2 = vpop.permute.xlu1 %634 }
 0x334   :  { %v640_v3 = vsel %vm487_vm2, %v635_v2, 0 }
 0x335   :  { %3967 = vmatpush3.bf16.xpose.msra.mxu1 %v640_v3  ;;  %v5107_v3 = vsub.s32 %v219_v57, %v176_v23 }
 0x336   :  { %3978 = vmatprep.subr.bf16.mxu1 %v4720_v15 }
 0x337   :  { %v684_v5 = vpop.permute.xlu1 %683 }
 0x338   :  { %v689_v6 = vsel %vm487_vm2, %v684_v5, 0 }
 0x339   :  { %3973 = vmatpush3.bf16.xpose.msra.mxu0 %v689_v6 }
 0x33a   :  { %3984 = vmatprep.subr.bf16.mxu0 %v4720_v15 }
 0x33c   :  { %3969 = vmatmul.mubr.msk.bf16.vlgmr.msra.gmra.mrb[4].mxu1 %vm487_vm2, %v5048_v7 }
 0x33d   :  { %3980 = vmatprep.mubr.msk.bf16.mxu1 %vm4721_vm1, %v4720_v15 }
 0x340   :  { %3975 = vmatmul.mubr.msk.bf16.vlgmr.msra.gmra.mrb[8].mxu0 %vm487_vm2, %v5055_v9 }
 0x341   :  { %3986 = vmatprep.mubr.msk.bf16.mxu0 %vm4721_vm1, %v4720_v15 }
 0x398   :  { %v528_v10 = vpop.f32.mrb[4].mxu0 }
 0x399   :  { %550 = vperm.xlu0 %4298, %v528_v10   ;;  %v3964_v11 = vpop.f32.mrb[5].mxu0  ;;  %537 = vperm.xlu1 %4297, %v528_v10  }
 0x39a   :  { %v531_v12 = vpop.f32.mrb[6].mxu0  ;;  %v223_v11 = vrot.slane %v3751_v4, %v5107_v3 }
 0x39b   :  { %v3965_v13 = vpop.f32.mrb[7].mxu0 }
 0x39c   :  { %v5117_v13 = vsel %vm204_vm10, 1.0, %v4720_v15 }
 0x39d   :  { %4301 = vset.pattern.permute.xlu0 %v4726_v14  ;;  %4299 = vset.pattern.permute.xlu1 %v4727_v16 }
 0x39e   :  { %586 = vperm.xlu0 %4301, %v528_v10   ;;  %562 = vperm.xlu1 %4299, %v528_v10  }
 0x3a2   :  { %4304 = vset.pattern.permute.xlu0 %v4728_v17  ;;  %4300 = vset.pattern.permute.xlu1 %v4729_v18 }
 0x3a3   :  { %622 = vperm.xlu0 %4304, %v528_v10   ;;  %574 = vperm.xlu1 %4300, %v528_v10  }
 0x3a7   :  { %4307 = vset.pattern.permute.xlu0 %v4727_v16  ;;  %4302 = vset.pattern.permute.xlu1 %v4730_v19 }
 0x3a8   :  { %566 = vperm.xlu0 %4307, %v531_v12   ;;  %598 = vperm.xlu1 %4302, %v528_v10  }
 0x3ac   :  { %4309 = vset.pattern.permute.xlu0 %v4726_v14  ;;  %4303 = vset.pattern.permute.xlu1 %v4731_v20 }
 0x3ad   :  { %590 = vperm.xlu0 %4309, %v531_v12   ;;  %610 = vperm.xlu1 %4303, %v528_v10   ;;  %v5111_v10 = vsel %vm201_vm9, 1.0, %v4720_v15 }
 0x3b1   :  { %4310 = vset.pattern.permute.xlu0 %v4730_v19  ;;  %4305 = vset.pattern.permute.xlu1 %v4725_v62 }
 0x3b2   :  { %602 = vperm.xlu0 %4310, %v531_v12   ;;  %542 = vperm.xlu1 %4305, %v531_v12  }
 0x3b6   :  { %4311 = vset.pattern.permute.xlu0 %v4731_v20  ;;  %4306 = vset.pattern.permute.xlu1 %v4724_v61 }
 0x3b7   :  { %614 = vperm.xlu0 %4311, %v531_v12   ;;  %554 = vperm.xlu1 %4306, %v531_v12  }
 0x3bb   :  { %4312 = vset.pattern.permute.xlu0 %v4728_v17  ;;  %4308 = vset.pattern.permute.xlu1 %v4729_v18 }
 0x3bc   :  { %626 = vperm.xlu0 %4312, %v531_v12   ;;  %578 = vperm.xlu1 %4308, %v531_v12   ;;  %v5114_v12 = vsub.s32 0, %v176_v23 }
 0x3be   :  { %v234_v31 = vrot.slane %v223_v11, %v5114_v12 }
 0x3c0   :  { %394 = vrot.lane.b32.xlu0 %v3760_v21, %s4711_s24 }
 0x3c1   :  { %4313 = vset.pattern.permute.xlu0 %v4725_v62 }
 0x40f   :  { %v5080_v25 = vpop.f32.mrb[4].mxu1 }
 0x410   :  { %v3970_v27 = vpop.f32.mrb[5].mxu1 }
 0x411   :  { %v679_v28 = vpop.f32.mrb[6].mxu1 }
 0x412   :  { %v3971_v29 = vpop.f32.mrb[7].mxu1 }
 0x413   :  { %v5082_v30 = vpop.f32.mrb[8].mxu0 }
 0x414   :  { %v3976_v32 = vpop.f32.mrb[9].mxu0 }
 0x415   :  { %v728_v33 = vpop.f32.mrb[10].mxu0  ;;  %v180_v32 = vsel %vm179_vm11, -1e+30, %v4720_v15 }
 0x416   :  { %v3977_v34 = vpop.f32.mrb[11].mxu0 }
 0x418   :  { %v538_v35 = vpop.permute.xlu1 %537  ;;  %v551_v36 = vpop.permute.xlu0 %550 }
 0x419   :  { %v545_v40 = vmul.f32 %v5085_v37, %v538_v35  ;;  %v557_v41 = vmul.f32 %v5088_v38, %v551_v36  ;;  %v5123_v35 = vadd.f32 %v234_v31, %v180_v32 }
 0x41b   :  { %v559_v50 = vadd.f32 %v557_v41, %v545_v40 }
 0x41d   :  { %v563_v42 = vpop.permute.xlu1 %562  ;;  %v587_v43 = vpop.permute.xlu0 %586 }
 0x41e   :  { %v569_v44 = vmul.f32 %v5091_v39, %v563_v42  ;;  %v593_v1 = vmul.f32 %v5101_v58, %v587_v43 }
 0x420   :  { %v571_v52 = vadd.f32 %v569_v44, %v559_v50 }
 0x422   :  { %v575_v51 = vpop.permute.xlu1 %574  ;;  %v623_v56 = vpop.permute.xlu0 %622 }
 0x423   :  { %v581_v53 = vmul.f32 %v5097_v48, %v575_v51  ;;  %v629_v27 = vmul.f32 %v5117_v13, %v623_v56 }
 0x425   :  { %v583_v59 = vadd.f32 %v581_v53, %v571_v52  ;;  %v216_v53 = vcombine.high %v3751_v4, %v3751_v4 }
 0x427   :  { %v599_v2 = vpop.permute.xlu1 %598  ;;  %v595_v5 = vadd.f32 %v593_v1, %v583_v59  ;;  %v567_v8 = vpop.permute.xlu0 %566 }
 0x428   :  { %v605_v6 = vmul.f32 %v5104_v60, %v599_v2  ;;  %v570_v44 = vmul.f32 %v5091_v39, %v567_v8  ;;  %v230_v2 = vrot.slane %v216_v53, %v5107_v3 }
 0x42a   :  { %v607_v22 = vadd.f32 %v605_v6, %v595_v5 }
 0x42c   :  { %v611_v21 = vpop.permute.xlu1 %610  ;;  %v591_v29 = vpop.permute.xlu0 %590 }
 0x42d   :  { %v617_v26 = vmul.f32 %v5111_v10, %v611_v21  ;;  %v594_v56 = vmul.f32 %v5101_v58, %v591_v29 }
 0x42f   :  { %v619_v28 = vadd.f32 %v617_v26, %v607_v22  ;;  %v238_v22 = vrot.slane %v230_v2, %v5114_v12 }
 0x431   :  { %v631_v33 = vadd.f32 %v629_v27, %v619_v28  ;;  %v543_v34 = vpop.permute.xlu1 %542  ;;  %v603_v40 = vpop.permute.xlu0 %602  ;;  %v5138_v27 = vadd.f32 %v238_v22, %v180_v32 }
 0x432   :  { %v546_v43 = vmul.f32 %v5085_v37, %v543_v34  ;;  %v606_v59 = vmul.f32 %v5104_v60, %v603_v40 }
 0x433   :  { %v677_v36 = vadd.f32 %v5080_v25, %v631_v33 }
 0x435   :  { %v731_v41 = vmul.f32 0.35355338, %v677_v36 }
 0x436   :  { %v555_v42 = vpop.permute.xlu1 %554  ;;  %v615_v50 = vpop.permute.xlu0 %614 }
 0x437   :  { %v558_v23 = vmul.f32 %v5088_v38, %v555_v42  ;;  %v733_v24 = vadd.f32 %v731_v41, %v5123_v35  ;;  %v618_v6 = vmul.f32 %v5111_v10, %v615_v50 }
 0x439   :  { %v560_v46 = vadd.f32 %v558_v23, %v546_v43  ;;  %v735_v47 = vsel %vm487_vm2, %v733_v24, -inf }
 0x43a   :  { %736 = vmax.xlane.f32.xlu1 %v735_v47 }
 0x43b   :  { %v579_v51 = vpop.permute.xlu1 %578  ;;  %v572_v52 = vadd.f32 %v570_v44, %v560_v46  ;;  %v627_v5 = vpop.permute.xlu0 %626 }
 0x43c   :  { %v582_v25 = vmul.f32 %v5097_v48, %v579_v51  ;;  %v630_v21 = vmul.f32 %v5117_v13, %v627_v5 }
 0x43e   :  { %v584_v57 = vadd.f32 %v582_v25, %v572_v52 }
 0x43f   :  { %v395_v33 = vpop.permute.xlu0 %394 }
 0x440   :  { %v596_v1 = vadd.f32 %v594_v56, %v584_v57  ;;  %v397_v34 = vadd.f32 %v395_v33, %v5015_v49  ;;  %v398_v47 = vadd.f32 %v395_v33, %v5022_v54 }
 0x442   :  { %v608_v8 = vadd.f32 %v606_v59, %v596_v1  ;;  %v5144_v36 = vpack.c.bf16 %v397_v34, %v397_v34  ;;  %v5156_v50 = vpack.c.bf16 %v398_v47, %v398_v47 }
 0x444   :  { %v620_v11 = vadd.f32 %v618_v6, %v608_v8 }
 0x446   :  { %v632_v26 = vadd.f32 %v630_v21, %v620_v11 }
 0x448   :  { %v726_v4 = vadd.f32 %v5082_v30, %v632_v26 }
 0x44a   :  { %v732_v28 = vmul.f32 0.35355338, %v726_v4 }
 0x44c   :  { %v734_v29 = vadd.f32 %v732_v28, %v5138_v27 }
 0x44e   :  { %v738_v31 = vsel %vm487_vm2, %v734_v29, -inf }
 0x44f   :  { %739 = vmax.xlane.f32.xlu1 %v738_v31 }
 0x460   :  { %760 = vrot.lane.b32.xlu1 %v5144_v36, %s4711_s24 }
 0x464   :  { %864 = vrot.lane.b32.xlu1 %v5007_v45, %s4733_s28 }
 0x468   :  { %861 = vrot.lane.b32.xlu1 %v5034_v0, %s4733_s28 }
 0x4c7   :  { %v737_v30 = vpop.xlane.xlu1 %736 }
 0x4c8   :  { %v741_v32 = vsub.f32 %v733_v24, %v737_v30 }
 0x4ca   :  { %v743_v40 = vmul.f32 1.442695, %v741_v32 }
 0x4cc   :  { %4377 = vpow2.f32 %v743_v40 }
 0x4d6   :  { %v4378_v41 = vpop.eup %4377 }
 0x4d7   :  { %v747_v42 = vsel %vm487_vm2, %v4378_v41, 0.0 }
 0x4d8   :  { %748 = vadd.xlane.f32.xlu0 %v747_v42 }
 0x4dc   :  { %v740_v49 = vpop.xlane.xlu1 %739 }
 0x4dd   :  { %v742_v43 = vsub.f32 %v734_v29, %v740_v49 }
 0x4df   :  { %v745_v23 = vmul.f32 1.442695, %v742_v43 }
 0x4e0   :  { %v761_v44 = vpop.permute.xlu1 %760 }
 0x4e1   :  { %4379 = vpow2.f32 %v745_v23  ;;  %v767_v46 = vsel %vm765_vm12, %v761_v44, 0 }
 0x4e2   :  { %3979 = vmatpush3.bf16.msra.mxu1 %v767_v46 }
 0x4e3   :  { %3990 = vmatprep.subr.bf16.mxu1 %v4720_v15 }
 0x4e4   :  { %v865_v56 = vpop.permute.xlu1 %864 }
 0x4e5   :  { %v870_v2 = vsel %vm487_vm2, %v865_v56, 0 }
 0x4e8   :  { %v862_v5 = vpop.permute.xlu1 %861 }
 0x4eb   :  { %v4380_v24 = vpop.eup %4379 }
 0x4ec   :  { %v750_v51 = vsel %vm487_vm2, %v4380_v24, 0.0 }
 0x4ed   :  { %751 = vadd.xlane.f32.xlu1 %v750_v51 }
 0x4ee   :  { %810 = vrot.lane.b32.xlu0 %v5156_v50, %s4711_s24  ;;  %s4735_s24 = smov 56  }
 0x4f2   :  { %1014 = vrot.lane.b32.xlu0 %v5024_v55, %s4734_s1 }
 0x4f6   :  { %1065 = vrot.lane.b32.xlu0 %v5032_v63, %s4734_s1 }
 0x4fa   :  { %1012 = vrot.lane.b32.xlu0 %v5048_v7, %s4733_s28 }
 0x4fe   :  { %1063 = vrot.lane.b32.xlu1 %v5055_v9, %s4733_s28 }
 0x565   :  { %v749_v54 = vpop.xlane.xlu0 %748 }
 0x566   :  { %4381 = vrcp.f32 %v749_v54 }
 0x569   :  { %v811_v52 = vpop.permute.xlu0 %810 }
 0x56a   :  { %v816_v25 = vsel %vm765_vm12, %v811_v52, 0 }
 0x56b   :  { %3985 = vmatpush3.bf16.msra.mxu0 %v816_v25 }
 0x56c   :  { %3996 = vmatprep.subr.bf16.mxu0 %v4720_v15 }
 0x56d   :  { %v1015_v1 = vpop.permute.xlu0 %1014 }
 0x56e   :  { %v1020_v28 = vsel %vm487_vm2, %v1015_v1, 0 }
 0x570   :  { %v4382_v53 = vpop.eup %4381 }
 0x571   :  { %v755_v57 = vmul.f32 %v4382_v53, %v4378_v41  ;;  %v1066_v6 = vpop.permute.xlu0 %1065 }
 0x572   :  { %v1071_v11 = vsel %vm487_vm2, %v1066_v6, 0 }
 0x573   :  { %v757_v59 = vpack.c.bf16 %v755_v57, %v755_v57 }
 0x575   :  { %3981 = vmatmul.mubr.msk.bf16.vlgmr.msra.gmra.mrb[8].mxu1 %vm487_vm2, %v757_v59  ;;  %v1013_v29 = vpop.permute.xlu0 %1012 }
 0x576   :  { %3991 = vmatpush3.bf16.xpose.msra.mxu1 %v870_v2  ;;  %3992 = vmatprep.mubr.msk.bf16.mxu1 %vm4721_vm1, %v4720_v15 }
 0x577   :  { %4002 = vmatprep.subr.bf16.mxu1 %v4720_v15 }
 0x57a   :  { %v752_v8 = vpop.xlane.xlu1 %751 }
 0x57b   :  { %4383 = vrcp.f32 %v752_v8 }
 0x57d   :  { %3993 = vmatmul.mubr.msk.bf16.vlgmr.msra.gmra.mrb[12].mxu1 %vm487_vm2, %v862_v5 }
 0x57e   :  { %4003 = vmatpush3.bf16.xpose.msra.mxu1 %v1071_v11  ;;  %4004 = vmatprep.mubr.msk.bf16.mxu1 %vm4721_vm1, %v4720_v15  ;;  %v1064_v21 = vpop.permute.xlu1 %1063 }
 0x57f   :  { %4014 = vmatprep.subr.bf16.mxu1 %v4720_v15 }
 0x585   :  { %v4384_v22 = vpop.eup %4383  ;;  %4005 = vmatmul.mubr.msk.bf16.vlgmr.msra.gmra.mrb[16].mxu1 %vm487_vm2, %v1064_v21 }
 0x586   :  { %v756_v26 = vmul.f32 %v4384_v22, %v4380_v24  ;;  %4016 = vmatprep.mubr.msk.bf16.mxu1 %vm4721_vm1, %v4720_v15 }
 0x588   :  { %v758_v4 = vpack.c.bf16 %v756_v26, %v756_v26 }
 0x58a   :  { %3987 = vmatmul.mubr.msk.bf16.vlgmr.msra.gmra.mrb[12].mxu0 %vm487_vm2, %v758_v4 }
 0x58b   :  { %3997 = vmatpush3.bf16.xpose.msra.mxu0 %v1020_v28  ;;  %3998 = vmatprep.mubr.msk.bf16.mxu0 %vm4721_vm1, %v4720_v15 }
 0x58c   :  { %4008 = vmatprep.subr.bf16.mxu0 %v4720_v15 }
 0x592   :  { %3999 = vmatmul.mubr.msk.bf16.vlgmr.msra.gmra.mrb[16].mxu0 %vm487_vm2, %v1013_v29 }
 0x593   :  { %4010 = vmatprep.mubr.msk.bf16.mxu0 %vm4721_vm1, %v4720_v15 }
 0x648   :  { %v5192_v31 = vpop.f32.mrb[8].mxu1 }
 0x649   :  { %v3982_v33 = vpop.f32.mrb[9].mxu1 }
 0x64a   :  { %v806_v34 = vpop.f32.mrb[10].mxu1 }
 0x64b   :  { %v3983_v30 = vpop.f32.mrb[11].mxu1 }
 0x650   :  { %v906_v32 = vpop.f32.mrb[12].mxu1 }
 0x651   :  { %952 = vperm.xlu1 %4308, %v906_v32   ;;  %915 = vperm.xlu0 %4313, %v906_v32   ;;  %v3994_v40 = vpop.f32.mrb[13].mxu1 }
 0x652   :  { %v909_v41 = vpop.f32.mrb[14].mxu1 }
 0x653   :  { %v3995_v42 = vpop.f32.mrb[15].mxu1 }
 0x655   :  { %4316 = vset.pattern.permute.xlu1 %v4726_v14  ;;  %4314 = vset.pattern.permute.xlu0 %v4724_v61 }
 0x656   :  { %964 = vperm.xlu1 %4316, %v906_v32   ;;  %928 = vperm.xlu0 %4314, %v906_v32  }
 0x658   :  { %v5196_v49 = vpop.f32.mrb[16].mxu1 }
 0x659   :  { %v4006_v43 = vpop.f32.mrb[17].mxu1 }
 0x65a   :  { %4318 = vset.pattern.permute.xlu1 %v4731_v20  ;;  %4315 = vset.pattern.permute.xlu0 %v4727_v16  ;;  %v1110_v23 = vpop.f32.mrb[18].mxu1 }
 0x65b   :  { %988 = vperm.xlu1 %4318, %v906_v32   ;;  %940 = vperm.xlu0 %4315, %v906_v32   ;;  %v4007_v44 = vpop.f32.mrb[19].mxu1 }
 0x65d   :  { %v5200_v46 = vpop.f32.mrb[12].mxu0 }
 0x65e   :  { %v858_v47 = vpack.c.bf16 %v5200_v46, %v5192_v31  ;;  %v3988_v24 = vpop.f32.mrb[13].mxu0 }
 0x65f   :  { %4320 = vset.pattern.permute.xlu1 %v4724_v61  ;;  %4317 = vset.pattern.permute.xlu0 %v4730_v19  ;;  %v855_v51 = vpop.f32.mrb[14].mxu0 }
 0x660   :  { %976 = vperm.xlu0 %4317, %v906_v32   ;;  %932 = vperm.xlu1 %4320, %v909_v41   ;;  %v3989_v54 = vpop.f32.mrb[15].mxu0 }
 0x664   :  { %4319 = vset.pattern.permute.xlu0 %v4725_v62  ;;  %4321 = vset.pattern.permute.xlu1 %v4727_v16 }
 0x665   :  { %944 = vperm.xlu1 %4321, %v909_v41   ;;  %920 = vperm.xlu0 %4319, %v909_v41   ;;  %v1056_v52 = vpop.f32.mrb[16].mxu0 }
 0x666   :  { %v4000_v25 = vpop.f32.mrb[17].mxu0 }
 0x667   :  { %v1059_v53 = vpop.f32.mrb[18].mxu0 }
 0x668   :  { %v4001_v56 = vpop.f32.mrb[19].mxu0 }
 0x669   :  { %4323 = vset.pattern.permute.xlu1 %v4726_v14  ;;  %4322 = vset.pattern.permute.xlu0 %v4729_v18 }
 0x66a   :  { %968 = vperm.xlu1 %4323, %v909_v41   ;;  %956 = vperm.xlu0 %4322, %v909_v41  }
 0x66e   :  { %4324 = vset.pattern.permute.xlu1 %v4730_v19  ;;  %4325 = vset.pattern.permute.xlu0 %v4731_v20 }
 0x66f   :  { %980 = vperm.xlu1 %4324, %v909_v41   ;;  %992 = vperm.xlu0 %4325, %v909_v41  }
 0x673   :  { %4326 = vset.pattern.permute.xlu1 %v4728_v17  ;;  %4327 = vset.pattern.permute.xlu0 %v4725_v62 }
 0x674   :  { %1000 = vperm.xlu1 %4326, %v906_v32  }
 0x678   :  { %1004 = vperm.xlu1 %4326, %v909_v41  }
 0x67c   :  { %4328 = vset.pattern.permute.xlu1 %v4724_v61 }
 0x6d0   :  { %v953_v57 = vpop.permute.xlu1 %952  ;;  %v916_v59 = vpop.permute.xlu0 %915 }
 0x6d1   :  { %v923_v22 = vmul.f32 %v5085_v37, %v916_v59  ;;  %v959_v32 = vmul.f32 %v5097_v48, %v953_v57 }
 0x6d5   :  { %v965_v1 = vpop.permute.xlu1 %964  ;;  %v929_v2 = vpop.permute.xlu0 %928 }
 0x6d6   :  { %v935_v8 = vmul.f32 %v5088_v38, %v929_v2  ;;  %v971_v24 = vmul.f32 %v5101_v58, %v965_v1 }
 0x6d8   :  { %v937_v4 = vadd.f32 %v935_v8, %v923_v22 }
 0x6da   :  { %v989_v5 = vpop.permute.xlu1 %988  ;;  %v941_v6 = vpop.permute.xlu0 %940 }
 0x6db   :  { %v947_v26 = vmul.f32 %v5091_v39, %v941_v6  ;;  %v995_v8 = vmul.f32 %v5111_v10, %v989_v5 }
 0x6dd   :  { %v949_v28 = vadd.f32 %v947_v26, %v937_v4 }
 0x6df   :  { %v933_v11 = vpop.permute.xlu1 %932  ;;  %v977_v21 = vpop.permute.xlu0 %976  ;;  %v961_v42 = vadd.f32 %v959_v32, %v949_v28 }
 0x6e0   :  { %v936_v34 = vmul.f32 %v5088_v38, %v933_v11  ;;  %v983_v25 = vmul.f32 %v5104_v60, %v977_v21 }
 0x6e1   :  { %v973_v54 = vadd.f32 %v971_v24, %v961_v42 }
 0x6e3   :  { %v985_v2 = vadd.f32 %v983_v25, %v973_v54 }
 0x6e4   :  { %v945_v29 = vpop.permute.xlu1 %944  ;;  %v921_v33 = vpop.permute.xlu0 %920 }
 0x6e5   :  { %v924_v30 = vmul.f32 %v5085_v37, %v921_v33  ;;  %v948_v40 = vmul.f32 %v5091_v39, %v945_v29  ;;  %v997_v4 = vadd.f32 %v995_v8, %v985_v2 }
 0x6e7   :  { %v938_v41 = vadd.f32 %v936_v34, %v924_v30 }
 0x6e9   :  { %v969_v43 = vpop.permute.xlu1 %968  ;;  %v950_v23 = vadd.f32 %v948_v40, %v938_v41  ;;  %v957_v44 = vpop.permute.xlu0 %956 }
 0x6ea   :  { %v960_v51 = vmul.f32 %v5097_v48, %v957_v44  ;;  %v972_v56 = vmul.f32 %v5101_v58, %v969_v43 }
 0x6ec   :  { %v962_v53 = vadd.f32 %v960_v51, %v950_v23 }
 0x6ee   :  { %v981_v59 = vpop.permute.xlu1 %980  ;;  %v974_v57 = vadd.f32 %v972_v56, %v962_v53  ;;  %v993_v11 = vpop.permute.xlu0 %992 }
 0x6ef   :  { %v984_v6 = vmul.f32 %v5104_v60, %v981_v59  ;;  %v996_v28 = vmul.f32 %v5111_v10, %v993_v11 }
 0x6f1   :  { %v986_v26 = vadd.f32 %v984_v6, %v974_v57 }
 0x6f3   :  { %v1001_v22 = vpop.permute.xlu1 %1000  ;;  %v998_v33 = vadd.f32 %v996_v28, %v986_v26 }
 0x6f4   :  { %v1007_v1 = vmul.f32 %v5117_v13, %v1001_v22 }
 0x6f6   :  { %v1009_v29 = vadd.f32 %v1007_v1, %v997_v4  ;;  %v1238_v1 = vld [vmem:[#allocation11 + $0x4] sm:$0xf] }
 0x6f7   :  { %v1005_v21 = vpop.permute.xlu1 %1004 }
 0x6f8   :  { %v1008_v34 = vmul.f32 %v5117_v13, %v1005_v21  ;;  %v1057_v30 = vadd.f32 %v1056_v52, %v1009_v29  ;;  %v1243_v21 = vsel %vm765_vm12, %v1238_v1, 0 }
 0x6fa   :  { %v1010_v32 = vadd.f32 %v1008_v34, %v998_v33  ;;  %v1113_v40 = vmul.f32 0.35355338, %v1057_v30  ;;  %v859_v34 = vld [vmem:[#allocation11] sm:$0xf] }
 0x6fc   :  { %v1115_v41 = vadd.f32 %v1113_v40, %v5123_v35  ;;  %v1108_v5 = vadd.f32 %v5196_v49, %v1010_v32  ;;  %v1290_v40 = vsel %vm765_vm12, %v859_v34, 0 }
 0x6fe   :  { %v1117_v42 = vsel %vm487_vm2, %v1115_v41, -inf  ;;  %v1114_v43 = vmul.f32 0.35355338, %v1108_v5 }
 0x6ff   :  { %1118 = vmax.xlane.f32.xlu0 %v1117_v42 }
 0x700   :  { %v1116_v23 = vadd.f32 %v1114_v43, %v5138_v27 }
 0x702   :  { %v1120_v44 = vsel %vm487_vm2, %v1116_v23, -inf }
 0x703   :  { %1121 = vmax.xlane.f32.xlu1 %v1120_v44 }
 0x714   :  { %1141 = vrot.lane.b32.xlu1 %v5144_v36, %s4735_s24 }
 0x718   :  { %1335 = vrot.lane.b32.xlu1 %v5007_v45, %s4736_s6 }
 0x71c   :  { %1333 = vrot.lane.b32.xlu1 %v5034_v0, %s4736_s6 }
 0x720   :  { %1534 = vrot.lane.b32.xlu1 %v5032_v63, %s4737_s26 }
 0x724   :  { %1532 = vrot.lane.b32.xlu1 %v5055_v9, %s4736_s6 }
 0x78c   :  { %v1119_v49 = vpop.xlane.xlu0 %1118 }
 0x78d   :  { %v1123_v52 = vsub.f32 %v1115_v41, %v1119_v49 }
 0x78f   :  { %v1125_v24 = vmul.f32 1.442695, %v1123_v52 }
 0x790   :  { %v1122_v51 = vpop.xlane.xlu1 %1121 }
 0x791   :  { %4385 = vpow2.f32 %v1125_v24  ;;  %v1124_v54 = vsub.f32 %v1116_v23, %v1122_v51 }
 0x793   :  { %v1127_v25 = vmul.f32 1.442695, %v1124_v54 }
 0x794   :  { %v1142_v53 = vpop.permute.xlu1 %1141 }
 0x795   :  { %4387 = vpow2.f32 %v1127_v25  ;;  %v1147_v56 = vsel %vm765_vm12, %v1142_v53, 0 }
 0x796   :  { %4009 = vmatpush3.bf16.msra.mxu0 %v1147_v56 }
 0x797   :  { %4020 = vmatprep.subr.bf16.mxu0 %v4720_v15 }
 0x798   :  { %v1336_v43 = vpop.permute.xlu1 %1335 }
 0x799   :  { %v1341_v54 = vsel %vm487_vm2, %v1336_v43, 0 }
 0x79b   :  { %v4386_v59 = vpop.eup %4385 }
 0x79c   :  { %v1129_v2 = vsel %vm487_vm2, %v4386_v59, 0.0  ;;  %v1334_v24 = vpop.permute.xlu1 %1333 }
 0x79d   :  { %1130 = vadd.xlane.f32.xlu0 %v1129_v2 }
 0x79f   :  { %v4388_v57 = vpop.eup %4387 }
 0x7a0   :  { %v1132_v6 = vsel %vm487_vm2, %v4388_v57, 0.0  ;;  %v1535_v53 = vpop.permute.xlu1 %1534 }
 0x7a1   :  { %1133 = vadd.xlane.f32.xlu0 %v1132_v6 }
 0x7b7   :  { %1189 = vrot.lane.b32.xlu0 %v5156_v50, %s4735_s24  ;;  %s4742_s24 = smov [#allocation18]  }
 0x7bb   :  { %1484 = vrot.lane.b32.xlu0 %v5024_v55, %s4737_s26 }
 0x7bf   :  { %1482 = vrot.lane.b32.xlu0 %v5048_v7, %s4736_s6 }
 0x82a   :  { %v1131_v8 = vpop.xlane.xlu0 %1130 }
 0x82b   :  { %4389 = vrcp.f32 %v1131_v8 }
 0x82e   :  { %v1134_v11 = vpop.xlane.xlu0 %1133 }
 0x82f   :  { %4391 = vrcp.f32 %v1134_v11  ;;  %v1533_v11 = vpop.permute.xlu1 %1532 }
 0x832   :  { %v1190_v22 = vpop.permute.xlu0 %1189 }
 0x833   :  { %v1195_v26 = vsel %vm765_vm12, %v1190_v22, 0 }
 0x834   :  { %4015 = vmatpush3.bf16.msra.mxu1 %v1195_v26 }
 0x835   :  { %v4390_v4 = vpop.eup %4389  ;;  %4026 = vmatprep.subr.bf16.mxu1 %v4720_v15 }
 0x836   :  { %v1137_v28 = vmul.f32 %v4390_v4, %v4386_v59  ;;  %v1485_v41 = vpop.permute.xlu0 %1484 }
 0x837   :  { %v1490_v5 = vsel %vm487_vm2, %v1485_v41, 0 }
 0x838   :  { %v1139_v29 = vpack.c.bf16 %v1137_v28, %v1137_v28 }
 0x839   :  { %v4392_v33 = vpop.eup %4391 }
 0x83a   :  { %v1138_v30 = vmul.f32 %v4392_v33, %v4388_v57  ;;  %4011 = vmatmul.mubr.msk.bf16.vlgmr.msra.gmra.mrb[20].mxu0 %vm487_vm2, %v1139_v29  ;;  %v1483_v42 = vpop.permute.xlu0 %1482  ;;  %v1540_v57 = vsel %vm487_vm2, %v1535_v53, 0 }
 0x83b   :  { %4021 = vmatpush3.bf16.msra.mxu0 %v1243_v21  ;;  %4022 = vmatprep.mubr.msk.bf16.mxu0 %vm4721_vm1, %v4720_v15 }
 0x83c   :  { %v1140_v32 = vpack.c.bf16 %v1138_v30, %v1138_v30  ;;  %4032 = vmatprep.subr.bf16.mxu0 %v4720_v15 }
 0x83e   :  { %4017 = vmatmul.mubr.msk.bf16.vlgmr.msra.gmra.mrb[20].mxu1 %vm487_vm2, %v1140_v32 }
 0x83f   :  { %4027 = vmatpush3.bf16.msra.mxu1 %v1290_v40  ;;  %4028 = vmatprep.mubr.msk.bf16.mxu1 %vm4721_vm1, %v4720_v15 }
 0x840   :  { %4038 = vmatprep.subr.bf16.mxu1 %v4720_v15 }
 0x846   :  { %4029 = vmatmul.mubr.msk.bf16.vlgmr.msra.gmra.mrb[24].mxu1 %vm487_vm2, %v858_v47 }
 0x847   :  { %4040 = vmatprep.mubr.msk.bf16.mxu1 %vm4721_vm1, %v4720_v15 }
 0x848   :  { %4039 = vmatpush3.bf16.xpose.msra.mxu1 %v1490_v5 }
 0x849   :  { %4050 = vmatprep.subr.bf16.mxu1 %v4720_v15 }
 0x84f   :  { %4041 = vmatmul.mubr.msk.bf16.vlgmr.msra.gmra.mrb[28].mxu1 %vm487_vm2, %v1483_v42 }
 0x850   :  { %4052 = vmatprep.mubr.msk.bf16.mxu1 %vm4721_vm1, %v4720_v15 }
 0x90d   :  { %v1183_v23 = vpop.f32.mrb[20].mxu0 }
 0x90e   :  { %v4012_v44 = vpop.f32.mrb[21].mxu0 }
 0x90f   :  { %v1186_v31 = vpop.f32.mrb[22].mxu0 }
 0x910   :  { %v4013_v46 = vpop.f32.mrb[23].mxu0 }
 0x911   :  { %v1231_v47 = vpop.f32.mrb[20].mxu1 }
 0x912   :  { %v1237_v49 = vpack.c.bf16 %v1231_v47, %v1183_v23  ;;  %v4018_v52 = vpop.f32.mrb[21].mxu1 }
 0x913   :  { %v1234_v51 = vpop.f32.mrb[22].mxu1 }
 0x914   :  { %v4019_v25 = vpop.f32.mrb[23].mxu1  ;;  %4023 = vmatmul.mubr.msk.bf16.vlgmr.msra.gmra.mrb[24].mxu0 %vm487_vm2, %v1237_v49 }
 0x915   :  { %4033 = vmatpush3.bf16.xpose.msra.mxu0 %v1341_v54  ;;  %4034 = vmatprep.mubr.msk.bf16.mxu0 %vm4721_vm1, %v4720_v15 }
 0x916   :  { %4044 = vmatprep.subr.bf16.mxu0 %v4720_v15 }
 0x919   :  { %v1326_v56 = vpop.f32.mrb[24].mxu1 }
 0x91a   :  { %v4030_v59 = vpop.f32.mrb[25].mxu1 }
 0x91b   :  { %v1329_v2 = vpop.f32.mrb[26].mxu1 }
 0x91c   :  { %v4031_v6 = vpop.f32.mrb[27].mxu1  ;;  %4035 = vmatmul.mubr.msk.bf16.vlgmr.msra.gmra.mrb[28].mxu0 %vm487_vm2, %v1334_v24 }
 0x91d   :  { %4045 = vmatpush3.bf16.xpose.msra.mxu0 %v1540_v57  ;;  %4046 = vmatprep.mubr.msk.bf16.mxu0 %vm4721_vm1, %v4720_v15 }
 0x91e   :  { %4056 = vmatprep.subr.bf16.mxu0 %v4720_v15 }
 0x922   :  { %v5287_v8 = vpop.f32.mrb[28].mxu1 }
 0x923   :  { %v4042_v22 = vpop.f32.mrb[29].mxu1 }
 0x924   :  { %v1529_v26 = vpop.f32.mrb[30].mxu1  ;;  %4047 = vmatmul.mubr.msk.bf16.vlgmr.msra.gmra.mrb[32].mxu0 %vm487_vm2, %v1533_v11 }
 0x925   :  { %v4043_v4 = vpop.f32.mrb[31].mxu1  ;;  %4058 = vmatprep.mubr.msk.bf16.mxu0 %vm4721_vm1, %v4720_v15 }
 0x9e7   :  { %v1279_v1 = vpop.f32.mrb[24].mxu0 }
 0x9e8   :  { %v5292_v28 = vadd.f32 %v1326_v56, %v1279_v1  ;;  %v4024_v29 = vpop.f32.mrb[25].mxu0 }
 0x9e9   :  { %v1282_v21 = vpop.f32.mrb[26].mxu0 }
 0x9ea   :  { %v5294_v33 = vadd.f32 %v1329_v2, %v1282_v21  ;;  %v4025_v34 = vpop.f32.mrb[27].mxu0 }
 0x9ef   :  { %v1377_v30 = vpop.f32.mrb[28].mxu0 }
 0x9f0   :  { %1399 = vperm.xlu1 %4328, %v1377_v30   ;;  %1386 = vperm.xlu0 %4327, %v1377_v30   ;;  %v4036_v32 = vpop.f32.mrb[29].mxu0 }
 0x9f1   :  { %v1380_v40 = vpop.f32.mrb[30].mxu0 }
 0x9f2   :  { %v4037_v41 = vpop.f32.mrb[31].mxu0 }
 0x9f4   :  { %4329 = vset.pattern.permute.xlu1 %v4727_v16  ;;  %4330 = vset.pattern.permute.xlu0 %v4729_v18 }
 0x9f5   :  { %1411 = vperm.xlu1 %4329, %v1377_v30   ;;  %1423 = vperm.xlu0 %4330, %v1377_v30  }
 0x9f7   :  { %v5298_v5 = vpop.f32.mrb[32].mxu0 }
 0x9f8   :  { %v4048_v42 = vpop.f32.mrb[33].mxu0 }
 0x9f9   :  { %4331 = vset.pattern.permute.xlu1 %v4726_v14  ;;  %4333 = vset.pattern.permute.xlu0 %v4731_v20  ;;  %v1579_v43 = vpop.f32.mrb[34].mxu0 }
 0x9fa   :  { %1435 = vperm.xlu1 %4331, %v1377_v30   ;;  %1459 = vperm.xlu0 %4333, %v1377_v30   ;;  %v4049_v23 = vpop.f32.mrb[35].mxu0 }
 0x9fe   :  { %4332 = vset.pattern.permute.xlu1 %v4730_v19  ;;  %4335 = vset.pattern.permute.xlu0 %v4724_v61 }
 0x9ff   :  { %1447 = vperm.xlu1 %4332, %v1377_v30   ;;  %1403 = vperm.xlu0 %4335, %v1380_v40  }
 0xa03   :  { %4334 = vset.pattern.permute.xlu1 %v4725_v62  ;;  %4338 = vset.pattern.permute.xlu0 %v4726_v14 }
 0xa04   :  { %1439 = vperm.xlu0 %4338, %v1380_v40   ;;  %1391 = vperm.xlu1 %4334, %v1380_v40  }
 0xa08   :  { %4342 = vset.pattern.permute.xlu0 %v4728_v17  ;;  %4336 = vset.pattern.permute.xlu1 %v4727_v16 }
 0xa09   :  { %1475 = vperm.xlu0 %4342, %v1380_v40   ;;  %1415 = vperm.xlu1 %4336, %v1380_v40  }
 0xa0d   :  { %4337 = vset.pattern.permute.xlu1 %v4729_v18  ;;  %4343 = vset.pattern.permute.xlu0 %v4725_v62 }
 0xa0e   :  { %1427 = vperm.xlu1 %4337, %v1380_v40  }
 0xa12   :  { %4339 = vset.pattern.permute.xlu1 %v4730_v19 }
 0xa13   :  { %1451 = vperm.xlu1 %4339, %v1380_v40  }
 0xa17   :  { %4340 = vset.pattern.permute.xlu1 %v4731_v20 }
 0xa18   :  { %1463 = vperm.xlu1 %4340, %v1380_v40  }
 0xa1c   :  { %4341 = vset.pattern.permute.xlu1 %v4728_v17 }
 0xa1d   :  { %1471 = vperm.xlu1 %4341, %v1377_v30  }
 0xa21   :  { %4344 = vset.pattern.permute.xlu1 %v4724_v61 }
 0xa6f   :  { %v1400_v44 = vpop.permute.xlu1 %1399  ;;  %v1387_v46 = vpop.permute.xlu0 %1386 }
 0xa70   :  { %v1406_v56 = vmul.f32 %v5088_v38, %v1400_v44  ;;  %v1394_v59 = vmul.f32 %v5085_v37, %v1387_v46 }
 0xa72   :  { %v1408_v22 = vadd.f32 %v1406_v56, %v1394_v59 }
 0xa74   :  { %v1412_v31 = vpop.permute.xlu1 %1411  ;;  %v1424_v49 = vpop.permute.xlu0 %1423 }
 0xa75   :  { %v1418_v6 = vmul.f32 %v5091_v39, %v1412_v31  ;;  %v1430_v30 = vmul.f32 %v5097_v48, %v1424_v49 }
 0xa77   :  { %v1420_v29 = vadd.f32 %v1418_v6, %v1408_v22 }
 0xa79   :  { %v1436_v47 = vpop.permute.xlu1 %1435  ;;  %v1460_v24 = vpop.permute.xlu0 %1459  ;;  %v1432_v41 = vadd.f32 %v1430_v30, %v1420_v29 }
 0xa7a   :  { %v1442_v42 = vmul.f32 %v5101_v58, %v1436_v47  ;;  %v1466_v59 = vmul.f32 %v5111_v10, %v1460_v24 }
 0xa7c   :  { %v1444_v31 = vadd.f32 %v1442_v42, %v1432_v41 }
 0xa7e   :  { %v1448_v52 = vpop.permute.xlu1 %1447  ;;  %v1404_v54 = vpop.permute.xlu0 %1403 }
 0xa7f   :  { %v1407_v2 = vmul.f32 %v5088_v38, %v1404_v54  ;;  %v1454_v44 = vmul.f32 %v5104_v60, %v1448_v52 }
 0xa83   :  { %v1392_v51 = vpop.permute.xlu1 %1391  ;;  %v1440_v21 = vpop.permute.xlu0 %1439 }
 0xa84   :  { %v1395_v25 = vmul.f32 %v5085_v37, %v1392_v51  ;;  %v1443_v32 = vmul.f32 %v5101_v58, %v1440_v21 }
 0xa86   :  { %v1409_v11 = vadd.f32 %v1407_v2, %v1395_v25 }
 0xa88   :  { %v1416_v53 = vpop.permute.xlu1 %1415  ;;  %v1476_v46 = vpop.permute.xlu0 %1475 }
 0xa89   :  { %v1419_v57 = vmul.f32 %v5091_v39, %v1416_v53  ;;  %v1456_v53 = vadd.f32 %v1454_v44, %v1444_v31  ;;  %v1479_v49 = vmul.f32 %v5117_v13, %v1476_v46 }
 0xa8b   :  { %v1421_v4 = vadd.f32 %v1419_v57, %v1409_v11  ;;  %v1468_v47 = vadd.f32 %v1466_v59, %v1456_v53 }
 0xa8d   :  { %v1428_v26 = vpop.permute.xlu1 %1427 }
 0xa8e   :  { %v1431_v1 = vmul.f32 %v5097_v48, %v1428_v26 }
 0xa90   :  { %v1433_v34 = vadd.f32 %v1431_v1, %v1421_v4 }
 0xa92   :  { %v1452_v40 = vpop.permute.xlu1 %1451  ;;  %v1445_v43 = vadd.f32 %v1443_v32, %v1433_v34 }
 0xa93   :  { %v1455_v23 = vmul.f32 %v5104_v60, %v1452_v40 }
 0xa95   :  { %v1457_v54 = vadd.f32 %v1455_v23, %v1445_v43 }
 0xa97   :  { %v1464_v51 = vpop.permute.xlu1 %1463 }
 0xa98   :  { %v1467_v25 = vmul.f32 %v5111_v10, %v1464_v51 }
 0xa9a   :  { %v1469_v56 = vadd.f32 %v1467_v25, %v1457_v54  ;;  %v1707_v25 = vld [vmem:[#allocation11 + $0x8] sm:$0xf] }
 0xa9c   :  { %v1481_v2 = vadd.f32 %v1479_v49, %v1469_v56  ;;  %v1472_v57 = vpop.permute.xlu1 %1471 }
 0xa9d   :  { %v1478_v6 = vmul.f32 %v5117_v13, %v1472_v57 }
 0xa9e   :  { %v1577_v11 = vadd.f32 %v5298_v5, %v1481_v2  ;;  %v1712_v2 = vsel %vm765_vm12, %v1707_v25, 0 }
 0xa9f   :  { %v1480_v52 = vadd.f32 %v1478_v6, %v1468_v47 }
 0xaa0   :  { %v1583_v22 = vmul.f32 0.35355338, %v1577_v11 }
 0xaa1   :  { %v1527_v26 = vadd.f32 %v5287_v8, %v1480_v52 }
 0xaa2   :  { %v1585_v4 = vadd.f32 %v1583_v22, %v5138_v27 }
 0xaa3   :  { %v1582_v1 = vmul.f32 0.35355338, %v1527_v26 }
 0xaa4   :  { %v1589_v29 = vsel %vm487_vm2, %v1585_v4, -inf }
 0xaa5   :  { %1590 = vmax.xlane.f32.xlu0 %v1589_v29  ;;  %v1584_v21 = vadd.f32 %v1582_v1, %v5123_v35 }
 0xaa7   :  { %v1586_v24 = vsel %vm487_vm2, %v1584_v21, -inf }
 0xaa8   :  { %1587 = vmax.xlane.f32.xlu1 %v1586_v24 }
 0xb32   :  { %v1591_v34 = vpop.xlane.xlu0 %1590 }
 0xb33   :  { %v1593_v30 = vsub.f32 %v1585_v4, %v1591_v34 }
 0xb35   :  { %v1596_v32 = vmul.f32 1.442695, %v1593_v30  ;;  %v1588_v40 = vpop.xlane.xlu1 %1587 }
 0xb36   :  { %v1592_v5 = vsub.f32 %v1584_v21, %v1588_v40 }
 0xb37   :  { %4393 = vpow2.f32 %v1596_v32 }
 0xb38   :  { %v1594_v41 = vmul.f32 1.442695, %v1592_v5 }
 0xb3a   :  { %4395 = vpow2.f32 %v1594_v41 }
 0xb41   :  { %v4394_v8 = vpop.eup %4393 }
 0xb42   :  { %v1601_v42 = vsel %vm487_vm2, %v4394_v8, 0.0 }
 0xb43   :  { %1602 = vadd.xlane.f32.xlu0 %v1601_v42 }
 0xb44   :  { %v4396_v43 = vpop.eup %4395 }
 0xb45   :  { %v1598_v23 = vsel %vm487_vm2, %v4396_v43, 0.0 }
 0xb46   :  { %1599 = vadd.xlane.f32.xlu1 %v1598_v23 }
 0xb57   :  { %1610 = vrot.lane.b32.xlu1 %v5144_v36, %s4738_s29 }
 0xb59   :  { %1658 = vrot.lane.b32.xlu0 %v5156_v50, %s4738_s29  ;;  %s3723_s29 = sshll.u32 %s4742_s24, 4  ;;  %s3724_s29 = int_to_ptr.vmem [resolvable:$true] %s3723_s29 }
 0xb5a   :  { %p4654_p3 = scmp.lt.s32.totalorder %s3724_s29, %s3724_s29 }
 0xb5b   :  { %1759 = vrot.lane.b32.xlu1 %v5007_v45, %s4739_s2 }
 0xb5d   :  { %1908 = vrot.lane.b32.xlu0 %v5024_v55, %s4740_s22 }
 0xb5f   :  { %1757 = vrot.lane.b32.xlu1 %v5034_v0, %s4739_s2 }
 0xb61   :  { %1906 = vrot.lane.b32.xlu0 %v5048_v7, %s4739_s2 }
 0xb63   :  { %1958 = vrot.lane.b32.xlu1 %v5032_v63, %s4740_s22 }
 0xb67   :  { %1956 = vrot.lane.b32.xlu1 %v5055_v9, %s4739_s2 }
 0xbd0   :  { %v1603_v44 = vpop.xlane.xlu0 %1602 }
 0xbd1   :  { %4397 = vrcp.f32 %v1603_v44 }
 0xbd3   :  { %v1600_v31 = vpop.xlane.xlu1 %1599 }
 0xbd4   :  { %4399 = vrcp.f32 %v1600_v31  ;;  %v1659_v45 = vpop.permute.xlu0 %1658 }
 0xbd5   :  { %v1664_v46 = vsel %vm765_vm12, %v1659_v45, 0 }
 0xbd6   :  { %4057 = vmatpush3.bf16.msra.mxu0 %v1664_v46 }
 0xbd7   :  { %v1611_v55 = vpop.permute.xlu1 %1610  ;;  %4068 = vmatprep.subr.bf16.mxu0 %v4720_v15 }
 0xbd8   :  { %v1616_v0 = vsel %vm765_vm12, %v1611_v55, 0  ;;  %v1909_v22 = vpop.permute.xlu0 %1908 }
 0xbd9   :  { %4051 = vmatpush3.bf16.msra.mxu1 %v1616_v0  ;;  %v1914_v34 = vsel %vm487_vm2, %v1909_v22, 0 }
 0xbda   :  { %4062 = vmatprep.subr.bf16.mxu1 %v4720_v15 }
 0xbdb   :  { %v4398_v63 = vpop.eup %4397  ;;  %v1760_v7 = vpop.permute.xlu1 %1759 }
 0xbdc   :  { %v1607_v51 = vmul.f32 %v4398_v63, %v4394_v8  ;;  %v1765_v56 = vsel %vm487_vm2, %v1760_v7, 0  ;;  %v1907_v8 = vpop.permute.xlu0 %1906 }
 0xbde   :  { %v4400_v9 = vpop.eup %4399  ;;  %v1609_v54 = vpack.c.bf16 %v1607_v51, %v1607_v51 }
 0xbdf   :  { %v1606_v53 = vmul.f32 %v4400_v9, %v4396_v43  ;;  %v1758_v49 = vpop.permute.xlu1 %1757 }
 0xbe0   :  { %4059 = vmatmul.mubr.msk.bf16.vlgmr.msra.gmra.mrb[36].mxu0 %vm487_vm2, %v1609_v54 }
 0xbe1   :  { %4069 = vmatpush3.bf16.xpose.msra.mxu0 %v1765_v56  ;;  %v1608_v59 = vpack.c.bf16 %v1606_v53, %v1606_v53  ;;  %4070 = vmatprep.mubr.msk.bf16.mxu0 %vm4721_vm1, %v4720_v15 }
 0xbe2   :  { %4080 = vmatprep.subr.bf16.mxu0 %v4720_v15 }
 0xbe3   :  { %4053 = vmatmul.mubr.msk.bf16.vlgmr.msra.gmra.mrb[32].mxu1 %vm487_vm2, %v1608_v59  ;;  %v1959_v57 = vpop.permute.xlu1 %1958 }
 0xbe4   :  { %4063 = vmatpush3.bf16.msra.mxu1 %v1712_v2  ;;  %4064 = vmatprep.mubr.msk.bf16.mxu1 %vm4721_vm1, %v4720_v15  ;;  %v1964_v47 = vsel %vm487_vm2, %v1959_v57, 0 }
 0xbe5   :  { %4074 = vmatprep.subr.bf16.mxu1 %v4720_v15 }
 0xbe7   :  { %v1957_v6 = vpop.permute.xlu1 %1956 }
 0xbe8   :  { %4071 = vmatmul.mubr.msk.bf16.vlgmr.msra.gmra.mrb[40].mxu0 %vm487_vm2, %v1758_v49 }
 0xbe9   :  { %4081 = vmatpush3.bf16.xpose.msra.mxu0 %v1964_v47  ;;  %4082 = vmatprep.mubr.msk.bf16.mxu0 %vm4721_vm1, %v4720_v15 }
 0xbea   :  { %4092 = vmatprep.subr.bf16.mxu0 %v4720_v15 }
 0xbf0   :  { %4083 = vmatmul.mubr.msk.bf16.vlgmr.msra.gmra.mrb[44].mxu0 %vm487_vm2, %v1957_v6 }
 0xbf1   :  { %4094 = vmatprep.mubr.msk.bf16.mxu0 %vm4721_vm1, %v4720_v15 }
 0xcb3   :  { %v1700_v11 = vpop.f32.mrb[36].mxu0 }
 0xcb4   :  { %v4060_v52 = vpop.f32.mrb[37].mxu0 }
 0xcb5   :  { %v1703_v26 = vpop.f32.mrb[38].mxu0 }
 0xcb6   :  { %v1652_v4 = vpop.f32.mrb[32].mxu1  ;;  %v4061_v1 = vpop.f32.mrb[39].mxu0 }
 0xcb7   :  { %v1706_v29 = vpack.c.bf16 %v1700_v11, %v1652_v4  ;;  %v4054_v21 = vpop.f32.mrb[33].mxu1 }
 0xcb8   :  { %v1655_v24 = vpop.f32.mrb[34].mxu1 }
 0xcb9   :  { %v4055_v30 = vpop.f32.mrb[35].mxu1  ;;  %4065 = vmatmul.mubr.msk.bf16.vlgmr.msra.gmra.mrb[36].mxu1 %vm487_vm2, %v1706_v29 }
 0xcba   :  { %4075 = vmatpush3.bf16.xpose.msra.mxu1 %v1914_v34  ;;  %4076 = vmatprep.mubr.msk.bf16.mxu1 %vm4721_vm1, %v4720_v15 }
 0xcbb   :  { %v1801_v32 = vpop.f32.mrb[40].mxu0  ;;  %4086 = vmatprep.subr.bf16.mxu1 %v4720_v15 }
 0xcbc   :  { %1823 = vperm.xlu1 %4344, %v1801_v32   ;;  %1810 = vperm.xlu0 %4343, %v1801_v32   ;;  %v4072_v40 = vpop.f32.mrb[41].mxu0 }
 0xcbd   :  { %v1804_v5 = vpop.f32.mrb[42].mxu0 }
 0xcbe   :  { %v4073_v41 = vpop.f32.mrb[43].mxu0 }
 0xcc0   :  { %4345 = vset.pattern.permute.xlu1 %v4727_v16  ;;  %4346 = vset.pattern.permute.xlu0 %v4729_v18 }
 0xcc1   :  { %1835 = vperm.xlu1 %4345, %v1801_v32   ;;  %1847 = vperm.xlu0 %4346, %v1801_v32  }
 0xcc2   :  { %4077 = vmatmul.mubr.msk.bf16.vlgmr.msra.gmra.mrb[40].mxu1 %vm487_vm2, %v1907_v8 }
 0xcc3   :  { %v5382_v42 = vpop.f32.mrb[44].mxu0  ;;  %4088 = vmatprep.mubr.msk.bf16.mxu1 %vm4721_vm1, %v4720_v15 }
 0xcc4   :  { %v4084_v43 = vpop.f32.mrb[45].mxu0 }
 0xcc5   :  { %4347 = vset.pattern.permute.xlu1 %v4726_v14  ;;  %4349 = vset.pattern.permute.xlu0 %v4731_v20  ;;  %v2003_v23 = vpop.f32.mrb[46].mxu0 }
 0xcc6   :  { %1859 = vperm.xlu1 %4347, %v1801_v32   ;;  %1883 = vperm.xlu0 %4349, %v1801_v32   ;;  %v4085_v44 = vpop.f32.mrb[47].mxu0 }
 0xcca   :  { %4348 = vset.pattern.permute.xlu1 %v4730_v19  ;;  %4351 = vset.pattern.permute.xlu0 %v4724_v61 }
 0xccb   :  { %1871 = vperm.xlu1 %4348, %v1801_v32   ;;  %1827 = vperm.xlu0 %4351, %v1804_v5  }
 0xccf   :  { %4350 = vset.pattern.permute.xlu1 %v4725_v62  ;;  %4354 = vset.pattern.permute.xlu0 %v4726_v14 }
 0xcd0   :  { %1863 = vperm.xlu0 %4354, %v1804_v5   ;;  %1815 = vperm.xlu1 %4350, %v1804_v5  }
 0xcd4   :  { %4358 = vset.pattern.permute.xlu0 %v4728_v17  ;;  %4352 = vset.pattern.permute.xlu1 %v4727_v16 }
 0xcd5   :  { %1899 = vperm.xlu0 %4358, %v1804_v5   ;;  %1839 = vperm.xlu1 %4352, %v1804_v5  }
 0xcd9   :  { %4353 = vset.pattern.permute.xlu1 %v4729_v18 }
 0xcda   :  { %1851 = vperm.xlu1 %4353, %v1804_v5  }
 0xcde   :  { %4355 = vset.pattern.permute.xlu1 %v4730_v19 }
 0xcdf   :  { %1875 = vperm.xlu1 %4355, %v1804_v5  }
 0xce3   :  { %4356 = vset.pattern.permute.xlu1 %v4731_v20 }
 0xce4   :  { %1887 = vperm.xlu1 %4356, %v1804_v5  }
 0xce8   :  { %4357 = vset.pattern.permute.xlu1 %v4728_v17 }
 0xce9   :  { %1895 = vperm.xlu1 %4357, %v1801_v32  }
 0xd3b   :  { %v1824_v61 = vpop.permute.xlu1 %1823  ;;  %v1811_v62 = vpop.permute.xlu0 %1810 }
 0xd3c   :  { %v1830_v14 = vmul.f32 %v5088_v38, %v1824_v61  ;;  %v1818_v16 = vmul.f32 %v5085_v37, %v1811_v62 }
 0xd3e   :  { %v1832_v46 = vadd.f32 %v1830_v14, %v1818_v16 }
 0xd40   :  { %v1836_v31 = vpop.permute.xlu1 %1835  ;;  %v1848_v45 = vpop.permute.xlu0 %1847 }
 0xd41   :  { %v1842_v18 = vmul.f32 %v5091_v39, %v1836_v31  ;;  %v1854_v19 = vmul.f32 %v5097_v48, %v1848_v45 }
 0xd43   :  { %v1844_v55 = vadd.f32 %v1842_v18, %v1832_v46 }
 0xd45   :  { %v1856_v0 = vadd.f32 %v1854_v19, %v1844_v55  ;;  %v1860_v20 = vpop.permute.xlu1 %1859  ;;  %v1884_v51 = vpop.permute.xlu0 %1883 }
 0xd46   :  { %v1866_v63 = vmul.f32 %v5101_v58, %v1860_v20  ;;  %v1890_v61 = vmul.f32 %v5111_v10, %v1884_v51 }
 0xd48   :  { %v1868_v17 = vadd.f32 %v1866_v63, %v1856_v0 }
 0xd4a   :  { %v1872_v7 = vpop.permute.xlu1 %1871  ;;  %v1828_v54 = vpop.permute.xlu0 %1827 }
 0xd4b   :  { %v1831_v49 = vmul.f32 %v5088_v38, %v1828_v54  ;;  %v1878_v32 = vmul.f32 %v5104_v60, %v1872_v7 }
 0xd4d   :  { %v1880_v43 = vadd.f32 %v1878_v32, %v1868_v17 }
 0xd4f   :  { %v1816_v9 = vpop.permute.xlu1 %1815  ;;  %v1864_v6 = vpop.permute.xlu0 %1863  ;;  %v1892_v62 = vadd.f32 %v1890_v61, %v1880_v43 }
 0xd50   :  { %v1819_v25 = vmul.f32 %v5085_v37, %v1816_v9  ;;  %v1867_v52 = vmul.f32 %v5101_v58, %v1864_v6 }
 0xd52   :  { %v1833_v59 = vadd.f32 %v1831_v49, %v1819_v25 }
 0xd54   :  { %v1840_v53 = vpop.permute.xlu1 %1839  ;;  %v1900_v1 = vpop.permute.xlu0 %1899 }
 0xd55   :  { %v1843_v56 = vmul.f32 %v5091_v39, %v1840_v53  ;;  %v1903_v39 = vmul.f32 %v5117_v13, %v1900_v1 }
 0xd57   :  { %v1845_v57 = vadd.f32 %v1843_v56, %v1833_v59 }
 0xd59   :  { %v1852_v2 = vpop.permute.xlu1 %1851 }
 0xd5a   :  { %v1855_v47 = vmul.f32 %v5097_v48, %v1852_v2 }
 0xd5c   :  { %v1857_v11 = vadd.f32 %v1855_v47, %v1845_v57  ;;  %v2131_v47 = vld [vmem:[#allocation11 + $0xc] sm:$0xf] }
 0xd5d   :  { %v2136_v6 = vsel %vm765_vm12, %v2131_v47, 0 }
 0xd5e   :  { %v1876_v22 = vpop.permute.xlu1 %1875  ;;  %v1869_v26 = vadd.f32 %v1867_v52, %v1857_v11 }
 0xd5f   :  { %v1879_v4 = vmul.f32 %v5104_v60, %v1876_v22 }
 0xd61   :  { %v1881_v29 = vadd.f32 %v1879_v4, %v1869_v26 }
 0xd63   :  { %v1888_v37 = vpop.permute.xlu1 %1887 }
 0xd64   :  { %v1891_v38 = vmul.f32 %v5111_v10, %v1888_v37 }
 0xd66   :  { %v1893_v21 = vadd.f32 %v1891_v38, %v1881_v29 }
 0xd68   :  { %v1905_v24 = vadd.f32 %v1903_v39, %v1893_v21  ;;  %v1896_v5 = vpop.permute.xlu1 %1895 }
 0xd6a   :  { %v2001_v34 = vadd.f32 %v5382_v42, %v1905_v24 }
 0xd6c   :  { %v2007_v48 = vmul.f32 0.35355338, %v2001_v34  ;;  %v3791_v34 = vld [vmem:[%s5813_s13 + $0xc] ss:$0 sm:$0xff] }
 0xd6e   :  { %v2009_v30 = vadd.f32 %v2007_v48, %v5138_v27  ;;  %v1902_v27 = vmul.f32 %v5117_v13, %v1896_v5 }
 0xd70   :  { %v2013_v58 = vsel %vm487_vm2, %v2009_v30, -inf  ;;  %v1904_v14 = vadd.f32 %v1902_v27, %v1892_v62 }
 0xd71   :  { %2014 = vmax.xlane.f32.xlu0 %v2013_v58 }
 0xd8c   :  { %v1748_v40 = vpop.f32.mrb[36].mxu1 }
 0xd8d   :  { %v5416_v41 = vadd.f32 %v1748_v40, %v5292_v28  ;;  %v4066_v8 = vpop.f32.mrb[37].mxu1 }
 0xd8e   :  { %v1751_v23 = vpop.f32.mrb[38].mxu1 }
 0xd8f   :  { %v5419_v44 = vadd.f32 %v1751_v23, %v5294_v33  ;;  %v4067_v42 = vpop.f32.mrb[39].mxu1 }
 0xd95   :  { %v1950_v16 = vpop.f32.mrb[40].mxu1 }
 0xd96   :  { %v1951_v60 = vadd.f32 %v1950_v16, %v1904_v14  ;;  %v4078_v31 = vpop.f32.mrb[41].mxu1 }
 0xd97   :  { %v1953_v45 = vpop.f32.mrb[42].mxu1 }
 0xd98   :  { %v2006_v46 = vmul.f32 0.35355338, %v1951_v60  ;;  %v4079_v28 = vpop.f32.mrb[43].mxu1 }
 0xd99   :  { %v4363_v28 = vld [vmem:[#allocation14] sm:$0xff]  }
 0xd9a   :  { %v2008_v18 = vadd.f32 %v2006_v46, %v5123_v35 }
 0xd9c   :  { %v2010_v55 = vsel %vm487_vm2, %v2008_v18, -inf }
 0xd9d   :  { %2011 = vmax.xlane.f32.xlu1 %v2010_v55  ;;  %v173_v55 = vld [vmem:[#allocation2] sm:$0xff] }
 0xdfe   :  { %v2015_v33 = vpop.xlane.xlu0 %2014 }
 0xdff   :  { %v2017_v19 = vsub.f32 %v2009_v30, %v2015_v33  ;;  %v4449_v30 = vld [vmem:[%s5819_s25] sm:$0xff]  ;;  %v174_v33 = vld [vmem:[#allocation2 + $0x8] sm:$0xff] }
 0xe01   :  { %v2020_v0 = vmul.f32 1.442695, %v2017_v19  ;;  %v2296_v19 = vpack.c.bf16 %v174_v33, %v173_v55 }
 0xe03   :  { %4401 = vpow2.f32 %v2020_v0  ;;  %v4365_v0 = vld [vmem:[#allocation13] sm:$0xff]  }
 0xe0d   :  { %v4402_v10 = vpop.eup %4401 }
 0xe0e   :  { %v2025_v13 = vsel %vm487_vm2, %v4402_v10, 0.0 }
 0xe0f   :  { %2026 = vadd.xlane.f32.xlu0 %v2025_v13 }
 0xe25   :  { %2082 = vrot.lane.b32.xlu0 %v5156_v50, %s4741_s3 }
 0xe2a   :  { %v2012_v20 = vpop.xlane.xlu1 %2011 }
 0xe2b   :  { %v2016_v63 = vsub.f32 %v2008_v18, %v2012_v20  ;;  %v4364_v18 = vld [vmem:[#allocation14 + $0x8] sm:$0xff]  }
 0xe2d   :  { %v2018_v17 = vmul.f32 1.442695, %v2016_v63 }
 0xe2f   :  { %4403 = vpow2.f32 %v2018_v17 }
 0xe39   :  { %v4404_v7 = vpop.eup %4403 }
 0xe3a   :  { %v2022_v35 = vsel %vm487_vm2, %v4404_v7, 0.0 }
 0xe3b   :  { %2023 = vadd.xlane.f32.xlu1 %v2022_v35 }
 0xe4c   :  { %2034 = vrot.lane.b32.xlu1 %v5144_v36, %s4741_s3 }
 0xe9c   :  { %v2027_v51 = vpop.xlane.xlu0 %2026 }
 0xe9d   :  { %4405 = vrcp.f32 %v2027_v51 }
 0xea0   :  { %v2083_v9 = vpop.permute.xlu0 %2082 }
 0xea1   :  { %v2088_v54 = vsel %vm765_vm12, %v2083_v9, 0  ;;  %v3792_v9 = vld [vmem:[%s5813_s13 + $0x2] ss:$0 sm:$0xff] }
 0xea2   :  { %4093 = vmatpush3.bf16.msra.mxu0 %v2088_v54 }
 0xea3   :  { %4104 = vmatprep.subr.bf16.mxu0 %v4720_v15 }
 0xea7   :  { %v4406_v25 = vpop.eup %4405 }
 0xea8   :  { %v2031_v50 = vmul.f32 %v4406_v25, %v4402_v10  ;;  %v4366_v10 = vld [vmem:[#allocation13 + $0x8] sm:$0xff]  }
 0xeaa   :  { %v2033_v53 = vpack.c.bf16 %v2031_v50, %v2031_v50 }
 0xeac   :  { %4095 = vmatmul.mubr.msk.bf16.vlgmr.msra.gmra.mrb[48].mxu0 %vm487_vm2, %v2033_v53 }
 0xead   :  { %4108 = vmatprep.mubr.msk.bf16.mxu0 %vm4721_vm1, %v4720_v15  ;;  %4105 = vmatpush3.bf16.msra.mxu0 %v4365_v0 }
 0xeae   :  { %4106 = vmatprep.subr.bf16.mxu0 %v4720_v15 }
 0xeb1   :  { %4107 = vmatpush3.bf16.msra.mxu0 %v4366_v10 }
 0xeb2   :  { %4120 = vmatprep.subr.bf16.mxu0 %v4720_v15 }
 0xec8   :  { %v2024_v49 = vpop.xlane.xlu1 %2023 }
 0xec9   :  { %4407 = vrcp.f32 %v2024_v49  ;;  %v3793_v49 = vld [vmem:[%s5813_s13 + $0x3] ss:$0 sm:$0xff] }
 0xecc   :  { %v2035_v56 = vpop.permute.xlu1 %2034 }
 0xecd   :  { %v2040_v36 = vsel %vm765_vm12, %v2035_v56, 0 }
 0xece   :  { %4087 = vmatpush3.bf16.msra.mxu1 %v2040_v36 }
 0xecf   :  { %4098 = vmatprep.subr.bf16.mxu1 %v4720_v15 }
 0xed3   :  { %v4408_v59 = vpop.eup %4407 }
 0xed4   :  { %v2030_v2 = vmul.f32 %v4408_v59, %v4404_v7 }
 0xed6   :  { %v2032_v57 = vpack.c.bf16 %v2030_v2, %v2030_v2 }
 0xed8   :  { %4089 = vmatmul.mubr.msk.bf16.vlgmr.msra.gmra.mrb[44].mxu1 %vm487_vm2, %v2032_v57  ;;  %v3801_v57 = vld [vmem:[%s5813_s13 + $0xe] ss:$0 sm:$0xff] }
 0xed9   :  { %4100 = vmatprep.mubr.msk.bf16.mxu1 %vm4721_vm1, %v4720_v15  ;;  %4099 = vmatpush3.bf16.msra.mxu1 %v2136_v6 }
 0xeda   :  { %4112 = vmatprep.subr.bf16.mxu1 %v4720_v15 }
 0xf7f   :  { %v2124_v11 = vpop.f32.mrb[48].mxu0 }
 0xf80   :  { %v4096_v52 = vpop.f32.mrb[49].mxu0 }
 0xf81   :  { %v2127_v22 = vpop.f32.mrb[50].mxu0 }
 0xf82   :  { %v4097_v26 = vpop.f32.mrb[51].mxu0 }
 0xfab   :  { %v2076_v4 = vpop.f32.mrb[44].mxu1 }
 0xfac   :  { %v2130_v1 = vpack.c.bf16 %v2124_v11, %v2076_v4  ;;  %v4090_v37 = vpop.f32.mrb[45].mxu1 }
 0xfad   :  { %v2079_v29 = vpop.f32.mrb[46].mxu1 }
 0xfae   :  { %v4091_v38 = vpop.f32.mrb[47].mxu1  ;;  %4101 = vmatmul.mubr.msk.bf16.vlgmr.msra.gmra.mrb[48].mxu1 %vm487_vm2, %v2130_v1 }
 0xfaf   :  { %4116 = vmatprep.mubr.msk.bf16.mxu1 %vm4721_vm1, %v4720_v15  ;;  %4113 = vmatpush3.bf16.msra.mxu1 %v4363_v28  ;;  %v3794_v38 = vld [vmem:[%s5813_s13 + $0xd] ss:$0 sm:$0xff] }
 0xfb0   :  { %4114 = vmatprep.subr.bf16.mxu1 %v4720_v15 }
 0xfb3   :  { %4115 = vmatpush3.bf16.msra.mxu1 %v4364_v18 }
 0xfb4   :  { %4126 = vmatprep.subr.bf16.mxu1 %v4720_v15 }
 0xfb6   :  { %4117 = vmatmul.mubr.msk.bf16.vlgmr.msra.gmra.mrb[52].mxu1 %vm269_vm0, %v2296_v19 }
 0xfb7   :  { %4128 = vmatprep.mubr.msk.bf16.mxu1 %vm4721_vm1, %v4720_v15 }
0x1081   :  { %v2172_v39 = vpop.f32.mrb[48].mxu1 }
0x1082   :  { %v2179_v21 = vadd.f32 %v2172_v39, %v5416_v41  ;;  %v4102_v24 = vpop.f32.mrb[49].mxu1  ;;  %v4450_v41 = vld [vmem:[%s5819_s25 + $0x8] sm:$0xff] }
0x1083   :  { %v2175_v48 = vpop.f32.mrb[50].mxu1 }
0x1084   :  { %v2181_v58 = vadd.f32 %v4449_v30, %v2179_v21  ;;  %v2180_v32 = vadd.f32 %v2175_v48, %v5419_v44  ;;  %v4103_v40 = vpop.f32.mrb[51].mxu1 }
0x1085   :  { %v3752_v40 = vld.sshfl [vmem:[#allocation8] sm:$0x11 pattern:$0x75316420] }
0x1086   :  { %v5452_v5 = vadd.f32 %v3791_v34, %v2181_v58  ;;  %v2182_v8 = vadd.f32 %v4450_v41, %v2180_v32  ;;  %v252_v41 = vcombine.high %v3752_v40, %v3752_v40 }
0x1088   :  { %v5457_v43 = vadd.f32 %v3791_v34, %v2182_v8  ;;  %v2192_v23 = vsel %vm269_vm0, %v5452_v5, 0.0  ;;  %v259_v8 = vrot.slane %v3752_v40, %v5107_v3 }
0x1089   :  { %2193 = vadd.xlane.f32.xlu1 %v2192_v23  ;;  %v5486_v47 = vpop.f32.mrb[52].mxu1  ;;  %v266_v23 = vrot.slane %v252_v41, %v5107_v3 }
0x108a   :  { %v2195_v42 = vsel %vm269_vm0, %v5457_v43, 0.0  ;;  %v2362_v6 = vadd.f32 %v3801_v57, %v5486_v47  ;;  %v4118_v11 = vpop.f32.mrb[53].mxu1 }
0x108b   :  { %2196 = vadd.xlane.f32.xlu0 %v2195_v42  ;;  %v2353_v52 = vpop.f32.mrb[54].mxu1  ;;  %v5517_v42 = vrot.slane %v259_v8, %v5114_v12 }
0x108c   :  { %v5489_v22 = vpack.c.bf16 %v2362_v6, %v2362_v6  ;;  %v2363_v26 = vadd.f32 %v3801_v57, %v2353_v52  ;;  %v4119_v4 = vpop.f32.mrb[55].mxu1 }
0x108e   :  { %v5491_v1 = vpack.c.bf16 %v2363_v26, %v2363_v26  ;;  %v2385_v37 = vsel %vm487_vm2, %v5489_v22, 0 }
0x1090   :  { %v2431_v29 = vsel %vm487_vm2, %v5491_v1, 0 }
0x1091   :  { %4127 = vmatpush3.bf16.xpose.msra.mxu1 %v2431_v29 }
0x1092   :  { %4138 = vmatprep.subr.bf16.mxu1 %v4720_v15 }
0x1116   :  { %v2194_v61 = vpop.xlane.xlu1 %2193 }
0x1117   :  { %v2198_v44 = vmul.f32 0.03125, %v2194_v61 }
0x1118   :  { %v2197_v27 = vpop.xlane.xlu0 %2196 }
0x1119   :  { %v2200_v62 = vsub.f32 %v5452_v5, %v2198_v44  ;;  %v2199_v14 = vmul.f32 0.03125, %v2197_v27 }
0x111b   :  { %v2201_v16 = vsub.f32 %v5457_v43, %v2199_v14  ;;  %v2202_v60 = vmul.f32 %v2200_v62, %v2200_v62 }
0x111d   :  { %v2204_v31 = vsel %vm269_vm0, %v2202_v60, 0.0  ;;  %v2203_v45 = vmul.f32 %v2201_v16, %v2201_v16 }
0x111e   :  { %2205 = vadd.xlane.f32.xlu1 %v2204_v31 }
0x111f   :  { %v2207_v46 = vsel %vm269_vm0, %v2203_v45, 0.0 }
0x1120   :  { %2208 = vadd.xlane.f32.xlu0 %v2207_v46 }
0x11ab   :  { %v2206_v13 = vpop.xlane.xlu1 %2205 }
0x11ac   :  { %v2210_v20 = vmul.f32 0.03125, %v2206_v13 }
0x11ad   :  { %v2209_v63 = vpop.xlane.xlu0 %2208 }
0x11ae   :  { %v2212_v17 = vadd.f32 1e-05, %v2210_v20  ;;  %v2211_v7 = vmul.f32 0.03125, %v2209_v63 }
0x11b0   :  { %4409 = vrsqrt.f32 %v2212_v17  ;;  %v2213_v35 = vadd.f32 1e-05, %v2211_v7 }
0x11b2   :  { %4411 = vrsqrt.f32 %v2213_v35 }
0x11ba   :  { %v4410_v51 = vpop.eup %4409 }
0x11bb   :  { %v2216_v54 = vmul.f32 %v4410_v51, %v2200_v62  ;;  %v5520_v62 = vrot.slane %v266_v23, %v5114_v12  ;;  %v3802_v12 = vld [vmem:[%s5813_s13 + $0xf] ss:$0 sm:$0xff] }
0x11bc   :  { %v4412_v25 = vpop.eup %4411 }
0x11bd   :  { %v2222_v50 = vmul.f32 %v3792_v9, %v2216_v54  ;;  %v2217_v53 = vmul.f32 %v4412_v25, %v2201_v16 }
0x11bf   :  { %v2223_v56 = vmul.f32 %v3792_v9, %v2217_v53  ;;  %v2228_v36 = vadd.f32 %v3793_v49, %v2222_v50 }
0x11c1   :  { %v2229_v59 = vadd.f32 %v3793_v49, %v2223_v56 }
0x11c3   :  { %v2230_v2 = vpack.c.bf16 %v2229_v59, %v2228_v36 }
0x11c5   :  { %4109 = vmatmul.mubr.msk.bf16.vlgmr.msra.gmra.mrb[52].mxu0 %vm269_vm0, %v2230_v2 }
0x11c6   :  { %4122 = vmatprep.mubr.msk.bf16.mxu0 %vm4721_vm1, %v4720_v15  ;;  %4121 = vmatpush3.bf16.xpose.msra.mxu0 %v2385_v37 }
0x11c7   :  { %4132 = vmatprep.subr.bf16.mxu0 %v4720_v15 }
0x1298   :  { %v2289_v39 = vpop.f32.mrb[52].mxu0 }
0x1299   :  { %v2290_v21 = vadd.f32 %v3794_v38, %v2289_v39  ;;  %v4110_v24 = vpop.f32.mrb[53].mxu0 }
0x129a   :  { %v2292_v34 = vpop.f32.mrb[54].mxu0 }
0x129b   :  { %v5502_v48 = vpack.c.bf16 %v2290_v21, %v2290_v21  ;;  %v2293_v30 = vadd.f32 %v3794_v38, %v2292_v34  ;;  %v4111_v58 = vpop.f32.mrb[55].mxu0 }
0x129d   :  { %v5504_v32 = vpack.c.bf16 %v2293_v30, %v2293_v30  ;;  %4123 = vmatmul.mubr.msk.bf16.vlgmr.msra.gmra.mrb[56].mxu0 %vm487_vm2, %v5502_v48 }
0x129e   :  { %4134 = vmatprep.mubr.msk.bf16.mxu0 %vm4721_vm1, %v4720_v15 }
0x129f   :  { %4129 = vmatmul.mubr.msk.bf16.vlgmr.msra.gmra.mrb[56].mxu1 %vm487_vm2, %v5504_v32 }
0x12a0   :  { %4140 = vmatprep.mubr.msk.bf16.mxu1 %vm4721_vm1, %v4720_v15 }
0x1370   :  { %v2421_v61 = vpop.f32.mrb[56].mxu0 }
0x1371   :  { %v2473_v44 = vmul.f32 0.35355338, %v2421_v61  ;;  %v4124_v27 = vpop.f32.mrb[57].mxu0 }
0x1372   :  { %v2424_v14 = vpop.f32.mrb[58].mxu0  ;;  %v2467_v16 = vpop.f32.mrb[56].mxu1 }
0x1373   :  { %v2485_v60 = vadd.f32 %v5517_v42, %v2473_v44  ;;  %v2474_v31 = vmul.f32 0.35355338, %v2467_v16  ;;  %v4125_v45 = vpop.f32.mrb[59].mxu0  ;;  %v4130_v46 = vpop.f32.mrb[57].mxu1 }
0x1374   :  { %v2470_v28 = vpop.f32.mrb[58].mxu1 }
0x1375   :  { %v2486_v18 = vadd.f32 %v5520_v62, %v2474_v31  ;;  %v4131_v3 = vpop.f32.mrb[59].mxu1  ;;  %v2487_v55 = vsel %vm487_vm2, %v2485_v60, -inf }
0x1376   :  { %2488 = vmax.xlane.f32.xlu1 %v2487_v55 }
0x1377   :  { %v2490_v33 = vsel %vm487_vm2, %v2486_v18, -inf }
0x1378   :  { %2491 = vmax.xlane.f32.xlu0 %v2490_v33 }
0x1387   :  { %2370 = vrot.lane.b32.xlu1 %v3802_v12, %s4722_s5 }
0x1403   :  { %v2489_v19 = vpop.xlane.xlu1 %2488 }
0x1404   :  { %v2493_v0 = vsub.f32 %v2485_v60, %v2489_v19 }
0x1405   :  { %v2492_v10 = vpop.xlane.xlu0 %2491 }
0x1406   :  { %v2495_v13 = vmul.f32 1.442695, %v2493_v0  ;;  %v2494_v20 = vsub.f32 %v2486_v18, %v2492_v10 }
0x1407   :  { %v2371_v63 = vpop.permute.xlu1 %2370 }
0x1408   :  { %4413 = vpow2.f32 %v2495_v13  ;;  %v2497_v17 = vmul.f32 1.442695, %v2494_v20  ;;  %v2374_v7 = vadd.f32 %v2371_v63, %v2353_v52  ;;  %v2373_v50 = vadd.f32 %v2371_v63, %v5486_v47 }
0x140a   :  { %4415 = vpow2.f32 %v2497_v17  ;;  %v5530_v35 = vpack.c.bf16 %v2374_v7, %v2374_v7  ;;  %v5543_v53 = vpack.c.bf16 %v2373_v50, %v2373_v50 }
0x140c   :  { %2564 = vrot.lane.b32.xlu1 %v5530_v35, %s4723_s21 }
0x1410   :  { %2618 = vrot.lane.b32.xlu1 %v5489_v22, %s4733_s28 }
0x1412   :  { %v4414_v51 = vpop.eup %4413 }
0x1413   :  { %v2499_v9 = vsel %vm487_vm2, %v4414_v51, 0.0 }
0x1414   :  { %v4416_v54 = vpop.eup %4415  ;;  %2500 = vadd.xlane.f32.xlu0 %v2499_v9  ;;  %2670 = vrot.lane.b32.xlu1 %v5491_v1, %s4733_s28 }
0x1415   :  { %v2502_v25 = vsel %vm487_vm2, %v4416_v54, 0.0 }
0x1418   :  { %2503 = vadd.xlane.f32.xlu0 %v2502_v25  ;;  %2615 = vrot.lane.b32.xlu1 %v5502_v48, %s4733_s28 }
0x142e   :  { %2515 = vrot.lane.b32.xlu0 %v5543_v53, %s4723_s21 }
0x1432   :  { %2667 = vrot.lane.b32.xlu0 %v5504_v32, %s4733_s28 }
0x147e   :  { %v2565_v49 = vpop.permute.xlu1 %2564 }
0x147f   :  { %v2570_v56 = vsel %vm765_vm12, %v2565_v49, 0 }
0x1480   :  { %4139 = vmatpush3.bf16.msra.mxu1 %v2570_v56 }
0x1481   :  { %4150 = vmatprep.subr.bf16.mxu1 %v4720_v15 }
0x1482   :  { %v2619_v6 = vpop.permute.xlu1 %2618 }
0x1483   :  { %v2624_v29 = vsel %vm487_vm2, %v2619_v6, 0 }
0x1486   :  { %v2671_v37 = vpop.permute.xlu1 %2670 }
0x1487   :  { %v2676_v39 = vsel %vm487_vm2, %v2671_v37, 0 }
0x148a   :  { %v2616_v21 = vpop.permute.xlu1 %2615 }
0x14a1   :  { %v2501_v36 = vpop.xlane.xlu0 %2500 }
0x14a2   :  { %4417 = vrcp.f32 %v2501_v36 }
0x14a5   :  { %v2504_v59 = vpop.xlane.xlu0 %2503 }
0x14a6   :  { %4419 = vrcp.f32 %v2504_v59 }
0x14a9   :  { %v2516_v2 = vpop.permute.xlu0 %2515 }
0x14aa   :  { %v2521_v57 = vsel %vm765_vm12, %v2516_v2, 0 }
0x14ab   :  { %4133 = vmatpush3.bf16.msra.mxu0 %v2521_v57  ;;  %v2847_v57 = vld [vmem:[#allocation16 + $0x4] sm:$0xf] }
0x14ac   :  { %v4418_v47 = vpop.eup %4417  ;;  %4144 = vmatprep.subr.bf16.mxu0 %v4720_v15 }
0x14ad   :  { %v2506_v11 = vmul.f32 %v4418_v47, %v4414_v51  ;;  %v2668_v24 = vpop.permute.xlu0 %2667 }
0x14af   :  { %2509 = vst.msk [vmem:[#allocation18] sm:$0xff] %vm487_vm2, %v2506_v11  ;;  %v2512_v52 = vpack.c.bf16 %v2506_v11, %v2506_v11  ;;  %v2613_v11 = vld [vmem:[#allocation16] sm:$0xf] }
0x14b0   :  { %v4420_v26 = vpop.eup %4419 }
0x14b1   :  { %v2508_v4 = vmul.f32 %v4420_v26, %v4416_v54  ;;  %4135 = vmatmul.mubr.msk.bf16.vlgmr.msra.gmra.mrb[60].mxu0 %vm487_vm2, %v2512_v52 }
0x14b2   :  { %4146 = vmatprep.mubr.msk.bf16.mxu0 %vm4721_vm1, %v4720_v15 }
0x14b3   :  { %2511 = vst.msk [vmem:[#allocation18 + $0x20] sm:$0xff] %vm487_vm2, %v2508_v4  ;;  %v2513_v38 = vpack.c.bf16 %v2508_v4, %v2508_v4  ;;  %v2852_v4 = vsel %vm765_vm12, %v2847_v57, 0 }
0x14b4   :  { %4145 = vmatpush3.bf16.xpose.msra.mxu0 %v2624_v29  ;;  %v2899_v29 = vsel %vm765_vm12, %v2613_v11, 0 }
0x14b5   :  { %4141 = vmatmul.mubr.msk.bf16.vlgmr.msra.gmra.mrb[60].mxu1 %vm487_vm2, %v2513_v38  ;;  %4156 = vmatprep.subr.bf16.mxu0 %v4720_v15 }
0x14b6   :  { %4151 = vmatpush3.bf16.xpose.msra.mxu1 %v2676_v39  ;;  %4152 = vmatprep.mubr.msk.bf16.mxu1 %vm4721_vm1, %v4720_v15 }
0x14b7   :  { %4162 = vmatprep.subr.bf16.mxu1 %v4720_v15 }
0x14bb   :  { %4147 = vmatmul.mubr.msk.bf16.vlgmr.msra.gmra.mrb[64].mxu0 %vm487_vm2, %v2616_v21 }
0x14bc   :  { %4158 = vmatprep.mubr.msk.bf16.mxu0 %vm4721_vm1, %v4720_v15 }
0x14bd   :  { %4153 = vmatmul.mubr.msk.bf16.vlgmr.msra.gmra.mrb[64].mxu1 %vm487_vm2, %v2668_v24 }
0x14be   :  { %4164 = vmatprep.mubr.msk.bf16.mxu1 %vm4721_vm1, %v4720_v15 }
0x1584   :  { %v5571_v34 = vpop.f32.mrb[60].mxu0 }
0x1585   :  { %v4136_v30 = vpop.f32.mrb[61].mxu0 }
0x1586   :  { %v2560_v58 = vpop.f32.mrb[62].mxu0 }
0x1587   :  { %v4137_v40 = vpop.f32.mrb[63].mxu0 }
0x1588   :  { %v5573_v41 = vpop.f32.mrb[60].mxu1 }
0x1589   :  { %v2612_v8 = vpack.c.bf16 %v5573_v41, %v5571_v34  ;;  %v4142_v23 = vpop.f32.mrb[61].mxu1 }
0x158a   :  { %v2609_v61 = vpop.f32.mrb[62].mxu1 }
0x158b   :  { %v4143_v44 = vpop.f32.mrb[63].mxu1 }
0x158e   :  { %v2660_v27 = vpop.f32.mrb[64].mxu0 }
0x158f   :  { %v2718_v14 = vmul.f32 0.35355338, %v2660_v27  ;;  %v4148_v16 = vpop.f32.mrb[65].mxu0 }
0x1590   :  { %v2663_v60 = vpop.f32.mrb[66].mxu0  ;;  %v2712_v31 = vpop.f32.mrb[64].mxu1 }
0x1591   :  { %v2720_v45 = vadd.f32 %v2718_v14, %v5517_v42  ;;  %v2719_v46 = vmul.f32 0.35355338, %v2712_v31  ;;  %v4149_v28 = vpop.f32.mrb[67].mxu0  ;;  %v4154_v18 = vpop.f32.mrb[65].mxu1 }
0x1592   :  { %v2715_v3 = vpop.f32.mrb[66].mxu1 }
0x1593   :  { %v2721_v55 = vadd.f32 %v2719_v46, %v5520_v62  ;;  %v4155_v33 = vpop.f32.mrb[67].mxu1  ;;  %v2722_v12 = vsel %vm487_vm2, %v2720_v45, -inf }
0x1594   :  { %2723 = vmax.xlane.f32.xlu1 %v2722_v12 }
0x1595   :  { %v2725_v19 = vsel %vm487_vm2, %v2721_v55, -inf }
0x1596   :  { %2726 = vmax.xlane.f32.xlu0 %v2725_v19 }
0x1621   :  { %v2724_v0 = vpop.xlane.xlu1 %2723 }
0x1622   :  { %v2728_v10 = vsub.f32 %v2720_v45, %v2724_v0 }
0x1623   :  { %v2727_v13 = vpop.xlane.xlu0 %2726 }
0x1624   :  { %v2730_v20 = vmul.f32 1.442695, %v2728_v10  ;;  %v2729_v63 = vsub.f32 %v2721_v55, %v2727_v13 }
0x1626   :  { %4421 = vpow2.f32 %v2730_v20  ;;  %v2732_v17 = vmul.f32 1.442695, %v2729_v63 }
0x1628   :  { %4423 = vpow2.f32 %v2732_v17 }
0x1630   :  { %v4422_v7 = vpop.eup %4421 }
0x1631   :  { %v2734_v51 = vsel %vm487_vm2, %v4422_v7, 0.0 }
0x1632   :  { %v4424_v9 = vpop.eup %4423  ;;  %2735 = vadd.xlane.f32.xlu0 %v2734_v51 }
0x1633   :  { %v2737_v54 = vsel %vm487_vm2, %v4424_v9, 0.0 }
0x1634   :  { %2738 = vadd.xlane.f32.xlu1 %v2737_v54 }
0x1645   :  { %2798 = vrot.lane.b32.xlu1 %v5530_v35, %s4734_s1 }
0x1648   :  { %2750 = vrot.lane.b32.xlu0 %v5543_v53, %s4734_s1 }
0x1649   :  { %2944 = vrot.lane.b32.xlu1 %v5489_v22, %s4736_s6 }
0x164c   :  { %2994 = vrot.lane.b32.xlu0 %v5491_v1, %s4736_s6 }
0x164d   :  { %2942 = vrot.lane.b32.xlu1 %v5502_v48, %s4736_s6 }
0x1650   :  { %2992 = vrot.lane.b32.xlu0 %v5504_v32, %s4736_s6 }
0x16bf   :  { %v2736_v25 = vpop.xlane.xlu0 %2735 }
0x16c0   :  { %4425 = vrcp.f32 %v2736_v25 }
0x16c1   :  { %v2739_v50 = vpop.xlane.xlu1 %2738 }
0x16c2   :  { %4427 = vrcp.f32 %v2739_v50 }
0x16c3   :  { %v2751_v49 = vpop.permute.xlu0 %2750 }
0x16c4   :  { %v2756_v56 = vsel %vm765_vm12, %v2751_v49, 0 }
0x16c5   :  { %4157 = vmatpush3.bf16.msra.mxu0 %v2756_v56  ;;  %v2799_v36 = vpop.permute.xlu1 %2798 }
0x16c6   :  { %v2804_v59 = vsel %vm765_vm12, %v2799_v36, 0  ;;  %4168 = vmatprep.subr.bf16.mxu0 %v4720_v15 }
0x16c7   :  { %4163 = vmatpush3.bf16.msra.mxu1 %v2804_v59  ;;  %v2995_v38 = vpop.permute.xlu0 %2994 }
0x16c8   :  { %4174 = vmatprep.subr.bf16.mxu1 %v4720_v15  ;;  %v3000_v39 = vsel %vm487_vm2, %v2995_v38, 0 }
0x16c9   :  { %v2945_v30 = vpop.permute.xlu1 %2944 }
0x16ca   :  { %v4426_v2 = vpop.eup %4425  ;;  %v2950_v44 = vsel %vm487_vm2, %v2945_v30, 0 }
0x16cb   :  { %v2741_v47 = vmul.f32 %v4426_v2, %v4422_v7  ;;  %v2993_v21 = vpop.permute.xlu0 %2992 }
0x16cc   :  { %v4428_v6 = vpop.eup %4427 }
0x16cd   :  { %2745 = vst.msk [vmem:[#allocation18 + $0x8] sm:$0xff] %vm487_vm2, %v2741_v47  ;;  %v2743_v52 = vmul.f32 %v4428_v6, %v4424_v9  ;;  %v2748_v26 = vpack.c.bf16 %v2741_v47, %v2741_v47  ;;  %v2943_v60 = vpop.permute.xlu1 %2942 }
0x16cf   :  { %2747 = vst.msk [vmem:[#allocation18 + $0x28] sm:$0xff] %vm487_vm2, %v2743_v52  ;;  %4159 = vmatmul.mubr.msk.bf16.vlgmr.msra.gmra.mrb[68].mxu0 %vm487_vm2, %v2748_v26  ;;  %v2749_v37 = vpack.c.bf16 %v2743_v52, %v2743_v52 }
0x16d0   :  { %4169 = vmatpush3.bf16.msra.mxu0 %v2852_v4  ;;  %4170 = vmatprep.mubr.msk.bf16.mxu0 %vm4721_vm1, %v4720_v15 }
0x16d1   :  { %4165 = vmatmul.mubr.msk.bf16.vlgmr.msra.gmra.mrb[68].mxu1 %vm487_vm2, %v2749_v37  ;;  %4180 = vmatprep.subr.bf16.mxu0 %v4720_v15 }
0x16d2   :  { %4175 = vmatpush3.bf16.msra.mxu1 %v2899_v29  ;;  %4176 = vmatprep.mubr.msk.bf16.mxu1 %vm4721_vm1, %v4720_v15 }
0x16d3   :  { %4186 = vmatprep.subr.bf16.mxu1 %v4720_v15 }
0x16d9   :  { %4177 = vmatmul.mubr.msk.bf16.vlgmr.msra.gmra.mrb[72].mxu1 %vm487_vm2, %v2612_v8 }
0x16da   :  { %4188 = vmatprep.mubr.msk.bf16.mxu1 %vm4721_vm1, %v4720_v15 }
0x16db   :  { %4187 = vmatpush3.bf16.xpose.msra.mxu1 %v3000_v39 }
0x16dc   :  { %4198 = vmatprep.subr.bf16.mxu1 %v4720_v15 }
0x16e2   :  { %4189 = vmatmul.mubr.msk.bf16.vlgmr.msra.gmra.mrb[76].mxu1 %vm487_vm2, %v2993_v21 }
0x16e3   :  { %4200 = vmatprep.mubr.msk.bf16.mxu1 %vm4721_vm1, %v4720_v15 }
0x17a2   :  { %v2792_v24 = vpop.f32.mrb[68].mxu0 }
0x17a3   :  { %v4160_v58 = vpop.f32.mrb[69].mxu0 }
0x17a4   :  { %v2795_v34 = vpop.f32.mrb[70].mxu0  ;;  %v2840_v40 = vpop.f32.mrb[68].mxu1 }
0x17a5   :  { %v2846_v41 = vpack.c.bf16 %v2840_v40, %v2792_v24  ;;  %v4161_v8 = vpop.f32.mrb[71].mxu0  ;;  %v4166_v23 = vpop.f32.mrb[69].mxu1  ;;  %v3171_v40 = vld [vmem:[#allocation16 + $0x8] sm:$0xf] }
0x17a6   :  { %v2843_v61 = vpop.f32.mrb[70].mxu1  ;;  %v3176_v23 = vsel %vm765_vm12, %v3171_v40, 0 }
0x17a7   :  { %v4167_v27 = vpop.f32.mrb[71].mxu1  ;;  %4171 = vmatmul.mubr.msk.bf16.vlgmr.msra.gmra.mrb[72].mxu0 %vm487_vm2, %v2846_v41 }
0x17a8   :  { %4181 = vmatpush3.bf16.xpose.msra.mxu0 %v2950_v44  ;;  %4182 = vmatprep.mubr.msk.bf16.mxu0 %vm4721_vm1, %v4720_v15 }
0x17a9   :  { %4192 = vmatprep.subr.bf16.mxu0 %v4720_v15 }
0x17ac   :  { %v2935_v14 = vpop.f32.mrb[72].mxu1 }
0x17ad   :  { %v4178_v16 = vpop.f32.mrb[73].mxu1 }
0x17ae   :  { %v2938_v31 = vpop.f32.mrb[74].mxu1 }
0x17af   :  { %v4179_v45 = vpop.f32.mrb[75].mxu1  ;;  %4183 = vmatmul.mubr.msk.bf16.vlgmr.msra.gmra.mrb[76].mxu0 %vm487_vm2, %v2943_v60 }
0x17b0   :  { %4194 = vmatprep.mubr.msk.bf16.mxu0 %vm4721_vm1, %v4720_v15 }
0x17b5   :  { %v3036_v46 = vpop.f32.mrb[76].mxu1 }
0x17b6   :  { %v3043_v28 = vmul.f32 0.35355338, %v3036_v46  ;;  %v4190_v18 = vpop.f32.mrb[77].mxu1 }
0x17b7   :  { %v3039_v3 = vpop.f32.mrb[78].mxu1 }
0x17b8   :  { %v3045_v55 = vadd.f32 %v3043_v28, %v5520_v62  ;;  %v4191_v33 = vpop.f32.mrb[79].mxu1 }
0x17ba   :  { %v3049_v12 = vsel %vm487_vm2, %v3045_v55, -inf }
0x17bb   :  { %3050 = vmax.xlane.f32.xlu0 %v3049_v12 }
0x1848   :  { %v3051_v19 = vpop.xlane.xlu0 %3050 }
0x1849   :  { %v3053_v0 = vsub.f32 %v3045_v55, %v3051_v19 }
0x184b   :  { %v3056_v10 = vmul.f32 1.442695, %v3053_v0 }
0x184d   :  { %4429 = vpow2.f32 %v3056_v10 }
0x1857   :  { %v4430_v59 = vpop.eup %4429 }
0x1858   :  { %v3061_v2 = vsel %vm487_vm2, %v4430_v59, 0.0 }
0x187a   :  { %v2888_v13 = vpop.f32.mrb[72].mxu0 }
0x187b   :  { %v5632_v20 = vadd.f32 %v2935_v14, %v2888_v13  ;;  %v4172_v63 = vpop.f32.mrb[73].mxu0 }
0x187c   :  { %v2891_v17 = vpop.f32.mrb[74].mxu0 }
0x187d   :  { %v5634_v7 = vadd.f32 %v2938_v31, %v2891_v17  ;;  %v4173_v51 = vpop.f32.mrb[75].mxu0 }
0x1882   :  { %v2986_v9 = vpop.f32.mrb[76].mxu0 }
0x1883   :  { %v3042_v54 = vmul.f32 0.35355338, %v2986_v9  ;;  %v4184_v25 = vpop.f32.mrb[77].mxu0 }
0x1884   :  { %v2989_v50 = vpop.f32.mrb[78].mxu0 }
0x1885   :  { %v3044_v49 = vadd.f32 %v3042_v54, %v5517_v42  ;;  %v4185_v56 = vpop.f32.mrb[79].mxu0 }
0x1887   :  { %v3046_v36 = vsel %vm487_vm2, %v3044_v49, -inf }
0x1888   :  { %3047 = vmax.xlane.f32.xlu1 %v3046_v36 }
0x188c   :  { %3062 = vadd.xlane.f32.xlu1 %v3061_v2 }
0x189d   :  { %3122 = vrot.lane.b32.xlu1 %v5530_v35, %s4737_s26 }
0x18a1   :  { %3223 = vrot.lane.b32.xlu1 %v5489_v22, %s4739_s2 }
0x18a5   :  { %3221 = vrot.lane.b32.xlu1 %v5502_v48, %s4739_s2 }
0x1915   :  { %v3048_v57 = vpop.xlane.xlu1 %3047 }
0x1916   :  { %v3052_v47 = vsub.f32 %v3044_v49, %v3048_v57 }
0x1918   :  { %v3054_v6 = vmul.f32 1.442695, %v3052_v47 }
0x1919   :  { %v3063_v11 = vpop.xlane.xlu1 %3062 }
0x191a   :  { %4431 = vpow2.f32 %v3054_v6 }
0x191b   :  { %4433 = vrcp.f32 %v3063_v11 }
0x191d   :  { %v3123_v52 = vpop.permute.xlu1 %3122 }
0x191e   :  { %v3128_v26 = vsel %vm765_vm12, %v3123_v52, 0 }
0x191f   :  { %4199 = vmatpush3.bf16.msra.mxu1 %v3128_v26 }
0x1920   :  { %4210 = vmatprep.subr.bf16.mxu1 %v4720_v15 }
0x1921   :  { %v3224_v38 = vpop.permute.xlu1 %3223 }
0x1922   :  { %v3229_v39 = vsel %vm487_vm2, %v3224_v38, 0  ;;  %v3450_v38 = vld [vmem:[#allocation16 + $0xc] sm:$0xf] }
0x1924   :  { %v4432_v4 = vpop.eup %4431 }
0x1925   :  { %v4434_v37 = vpop.eup %4433  ;;  %v3058_v29 = vsel %vm487_vm2, %v4432_v4, 0.0  ;;  %v3222_v21 = vpop.permute.xlu1 %3221 }
0x1926   :  { %v3067_v22 = vmul.f32 %v4434_v37, %v4430_v59  ;;  %3059 = vadd.xlane.f32.xlu0 %v3058_v29 }
0x1928   :  { %3071 = vst.msk [vmem:[#allocation18 + $0x30] sm:$0xff] %vm487_vm2, %v3067_v22  ;;  %v3073_v48 = vpack.c.bf16 %v3067_v22, %v3067_v22 }
0x192a   :  { %4201 = vmatmul.mubr.msk.bf16.vlgmr.msra.gmra.mrb[80].mxu1 %vm487_vm2, %v3073_v48  ;;  %v3455_v48 = vsel %vm765_vm12, %v3450_v38, 0  ;;  %v3826_v38 = vld [vmem:[%s5814_s14] ss:$0 sm:$0xff] }
0x192b   :  { %4211 = vmatpush3.bf16.xpose.msra.mxu1 %v3229_v39  ;;  %4212 = vmatprep.mubr.msk.bf16.mxu1 %vm4721_vm1, %v4720_v15 }
0x192c   :  { %4222 = vmatprep.subr.bf16.mxu1 %v4720_v15 }
0x1932   :  { %4213 = vmatmul.mubr.msk.bf16.vlgmr.msra.gmra.mrb[84].mxu1 %vm487_vm2, %v3222_v21 }
0x1933   :  { %4224 = vmatprep.mubr.msk.bf16.mxu1 %vm4721_vm1, %v4720_v15 }
0x193c   :  { %3074 = vrot.lane.b32.xlu0 %v5543_v53, %s4737_s26 }
0x1940   :  { %3273 = vrot.lane.b32.xlu0 %v5491_v1, %s4739_s2 }
0x1944   :  { %3271 = vrot.lane.b32.xlu0 %v5504_v32, %s4739_s2 }
0x19b3   :  { %v3060_v24 = vpop.xlane.xlu0 %3059 }
0x19b4   :  { %4435 = vrcp.f32 %v3060_v24 }
0x19b7   :  { %v3075_v30 = vpop.permute.xlu0 %3074 }
0x19b8   :  { %v3080_v58 = vsel %vm765_vm12, %v3075_v30, 0 }
0x19b9   :  { %4193 = vmatpush3.bf16.msra.mxu0 %v3080_v58 }
0x19ba   :  { %4204 = vmatprep.subr.bf16.mxu0 %v4720_v15 }
0x19bb   :  { %v3274_v28 = vpop.permute.xlu0 %3273 }
0x19bc   :  { %v3279_v12 = vsel %vm487_vm2, %v3274_v28, 0 }
0x19be   :  { %v4436_v34 = vpop.eup %4435 }
0x19bf   :  { %v3065_v41 = vmul.f32 %v4436_v34, %v4432_v4 }
0x19c1   :  { %3069 = vst.msk [vmem:[#allocation18 + $0x10] sm:$0xff] %vm487_vm2, %v3065_v41  ;;  %v3072_v8 = vpack.c.bf16 %v3065_v41, %v3065_v41 }
0x19c3   :  { %4195 = vmatmul.mubr.msk.bf16.vlgmr.msra.gmra.mrb[80].mxu0 %vm487_vm2, %v3072_v8 }
0x19c4   :  { %4205 = vmatpush3.bf16.msra.mxu0 %v3176_v23  ;;  %4206 = vmatprep.mubr.msk.bf16.mxu0 %vm4721_vm1, %v4720_v15 }
0x19c5   :  { %4216 = vmatprep.subr.bf16.mxu0 %v4720_v15 }
0x19fd   :  { %v3164_v1 = vpop.f32.mrb[80].mxu1 }
0x19fe   :  { %v4202_v32 = vpop.f32.mrb[81].mxu1 }
0x19ff   :  { %v3167_v61 = vpop.f32.mrb[82].mxu1 }
0x1a00   :  { %v4203_v44 = vpop.f32.mrb[83].mxu1 }
0x1a05   :  { %v3265_v27 = vpop.f32.mrb[84].mxu1 }
0x1a06   :  { %v3321_v14 = vmul.f32 0.35355338, %v3265_v27  ;;  %v4214_v16 = vpop.f32.mrb[85].mxu1 }
0x1a07   :  { %v3268_v60 = vpop.f32.mrb[86].mxu1 }
0x1a08   :  { %v3323_v31 = vadd.f32 %v3321_v14, %v5517_v42  ;;  %v4215_v45 = vpop.f32.mrb[87].mxu1  ;;  %v3272_v42 = vpop.permute.xlu0 %3271  ;;  %v3823_v60 = vld [vmem:[%s5813_s13 + $0x10] ss:$0 sm:$0xff] }
0x1a0a   :  { %v3325_v46 = vsel %vm487_vm2, %v3323_v31, -inf }
0x1a0b   :  { %3326 = vmax.xlane.f32.xlu1 %v3325_v46 }
0x1a96   :  { %v3116_v18 = vpop.f32.mrb[80].mxu0 }
0x1a97   :  { %v3170_v3 = vpack.c.bf16 %v3164_v1, %v3116_v18  ;;  %v4196_v55 = vpop.f32.mrb[81].mxu0 }
0x1a98   :  { %v3119_v33 = vpop.f32.mrb[82].mxu0  ;;  %v3327_v0 = vpop.xlane.xlu1 %3326 }
0x1a99   :  { %v4197_v19 = vpop.f32.mrb[83].mxu0  ;;  %4207 = vmatmul.mubr.msk.bf16.vlgmr.msra.gmra.mrb[84].mxu0 %vm487_vm2, %v3170_v3  ;;  %v3331_v10 = vsub.f32 %v3323_v31, %v3327_v0 }
0x1a9a   :  { %4217 = vmatpush3.bf16.xpose.msra.mxu0 %v3279_v12  ;;  %4218 = vmatprep.mubr.msk.bf16.mxu0 %vm4721_vm1, %v4720_v15 }
0x1a9b   :  { %4228 = vmatprep.subr.bf16.mxu0 %v4720_v15  ;;  %v3333_v13 = vmul.f32 1.442695, %v3331_v10 }
0x1a9d   :  { %4437 = vpow2.f32 %v3333_v13 }
0x1aa1   :  { %4219 = vmatmul.mubr.msk.bf16.vlgmr.msra.gmra.mrb[88].mxu0 %vm487_vm2, %v3272_v42 }
0x1aa2   :  { %4230 = vmatprep.mubr.msk.bf16.mxu0 %vm4721_vm1, %v4720_v15 }
0x1aa7   :  { %v4438_v47 = vpop.eup %4437 }
0x1b6c   :  { %v3212_v63 = vpop.f32.mrb[84].mxu0 }
0x1b6d   :  { %v5682_v17 = vadd.f32 %v3212_v63, %v5632_v20  ;;  %v4208_v51 = vpop.f32.mrb[85].mxu0  ;;  %v3337_v20 = vsel %vm487_vm2, %v4438_v47, 0.0 }
0x1b6e   :  { %v3215_v9 = vpop.f32.mrb[86].mxu0 }
0x1b6f   :  { %v5685_v54 = vadd.f32 %v3215_v9, %v5634_v7  ;;  %v4209_v25 = vpop.f32.mrb[87].mxu0  ;;  %v4367_v9 = vld [vmem:[%s5811_s11] sm:$0xff]  }
0x1b70   :  { %v4369_v25 = vld [vmem:[%s5812_s12] sm:$0xff]  }
0x1b74   :  { %v3315_v50 = vpop.f32.mrb[88].mxu0 }
0x1b75   :  { %v3322_v49 = vmul.f32 0.35355338, %v3315_v50  ;;  %v4220_v56 = vpop.f32.mrb[89].mxu0  ;;  %v4370_v50 = vld [vmem:[%s5812_s12 + $0x8] sm:$0xff]  }
0x1b76   :  { %v3318_v36 = vpop.f32.mrb[90].mxu0 }
0x1b77   :  { %v3324_v59 = vadd.f32 %v3322_v49, %v5520_v62  ;;  %v4221_v2 = vpop.f32.mrb[91].mxu0 }
0x1b79   :  { %v3328_v57 = vsel %vm487_vm2, %v3324_v59, -inf }
0x1b7a   :  { %3329 = vmax.xlane.f32.xlu0 %v3328_v57 }
0x1b7e   :  { %3338 = vadd.xlane.f32.xlu0 %v3337_v20  ;;  %v3824_v20 = vld [vmem:[%s5813_s13 + $0x4] ss:$0 sm:$0xff] }
0x1b94   :  { %3353 = vrot.lane.b32.xlu0 %v5543_v53, %s4740_s22 }
0x1c07   :  { %v3330_v7 = vpop.xlane.xlu0 %3329 }
0x1c08   :  { %v3332_v6 = vsub.f32 %v3324_v59, %v3330_v7 }
0x1c0a   :  { %v3335_v11 = vmul.f32 1.442695, %v3332_v6 }
0x1c0b   :  { %v3339_v52 = vpop.xlane.xlu0 %3338 }
0x1c0c   :  { %4439 = vpow2.f32 %v3335_v11 }
0x1c0d   :  { %4441 = vrcp.f32 %v3339_v52 }
0x1c0f   :  { %v3354_v26 = vpop.permute.xlu0 %3353 }
0x1c10   :  { %v3359_v62 = vsel %vm765_vm12, %v3354_v26, 0  ;;  %v3825_v26 = vld [vmem:[%s5813_s13 + $0x5] ss:$0 sm:$0xff] }
0x1c11   :  { %4223 = vmatpush3.bf16.msra.mxu1 %v3359_v62 }
0x1c12   :  { %4234 = vmatprep.subr.bf16.mxu1 %v4720_v15 }
0x1c16   :  { %v4440_v4 = vpop.eup %4439 }
0x1c17   :  { %v4442_v37 = vpop.eup %4441  ;;  %v3340_v29 = vsel %vm487_vm2, %v4440_v4, 0.0 }
0x1c18   :  { %v3344_v22 = vmul.f32 %v4442_v37, %v4438_v47  ;;  %3341 = vadd.xlane.f32.xlu1 %v3340_v29 }
0x1c1a   :  { %3348 = vst.msk [vmem:[#allocation18 + $0x18] sm:$0xff] %vm487_vm2, %v3344_v22  ;;  %v3351_v53 = vpack.c.bf16 %v3344_v22, %v3344_v22  ;;  %v4371_v22 = vld [vmem:[%s5812_s12 + $0x10] sm:$0xff]  }
0x1c1c   :  { %4225 = vmatmul.mubr.msk.bf16.vlgmr.msra.gmra.mrb[88].mxu1 %vm487_vm2, %v3351_v53  ;;  %v4372_v53 = vld [vmem:[%s5812_s12 + $0x18] sm:$0xff]   ;;  %s4649_s12 = scalar_lea.vmem %s3724_s29, 1024 }
0x1c1d   :  { %4236 = vmatprep.mubr.msk.bf16.mxu1 %vm4721_vm1, %v4720_v15  ;;  %4235 = vmatpush3.bf16.msra.mxu1 %v3455_v48  ;;  %p4650_p2 = scmp.ne.s32.totalorder %s3724_s29, %s4649_s12  ;;  %p4655_p4 = scmp.lt.s32.totalorder %s4649_s12, %s4649_s12 }
0x1c1e   :  { %4248 = vmatprep.subr.bf16.mxu1 %v4720_v15 }
0x1c1f   :  { %p4656_p5 = por %p4655_p4, %p4654_p3 }
0x1c21   :  { %p4657_p6 = pnand %p4656_p5, %p4650_p2 }
0x1c29   :  { %3401 = vrot.lane.b32.xlu1 %v5530_v35, %s4740_s22 }
0x1ca5   :  { %v3342_v39 = vpop.xlane.xlu1 %3341 }
0x1ca6   :  { %4443 = vrcp.f32 %v3342_v39 }
0x1ca9   :  { %v3402_v21 = vpop.permute.xlu1 %3401 }
0x1caa   :  { %v3407_v24 = vsel %vm765_vm12, %v3402_v21, 0 }
0x1cab   :  { %4229 = vmatpush3.bf16.msra.mxu0 %v3407_v24 }
0x1cac   :  { %4240 = vmatprep.subr.bf16.mxu0 %v4720_v15 }
0x1cb0   :  { %v4444_v30 = vpop.eup %4443 }
0x1cb1   :  { %v3346_v58 = vmul.f32 %v4444_v30, %v4440_v4 }
0x1cb3   :  { %3350 = vst.msk [vmem:[#allocation18 + $0x38] sm:$0xff] %vm487_vm2, %v3346_v58  ;;  %v3352_v34 = vpack.c.bf16 %v3346_v58, %v3346_v58 }
0x1cb5   :  { %4231 = vmatmul.mubr.msk.bf16.vlgmr.msra.gmra.mrb[92].mxu0 %vm487_vm2, %v3352_v34 }
0x1cb6   :  { %4244 = vmatprep.mubr.msk.bf16.mxu0 %vm4721_vm1, %v4720_v15  ;;  %4241 = vmatpush3.bf16.msra.mxu0 %v4367_v9 }
0x1cb7   :  { %4242 = vmatprep.subr.bf16.mxu0 %v4720_v15 }
0x1cef   :  { %v3395_v35 = vpop.f32.mrb[88].mxu1 }
0x1cf0   :  { %v4226_v40 = vpop.f32.mrb[89].mxu1 }
0x1cf1   :  { %v3398_v41 = vpop.f32.mrb[90].mxu1 }
0x1cf2   :  { %v4227_v8 = vpop.f32.mrb[91].mxu1 }
0x1d88   :  { %v3443_v23 = vpop.f32.mrb[92].mxu0 }
0x1d89   :  { %v3449_v1 = vpack.c.bf16 %v3443_v23, %v3395_v35  ;;  %v4232_v32 = vpop.f32.mrb[93].mxu0 }
0x1d8a   :  { %v3446_v61 = vpop.f32.mrb[94].mxu0 }
0x1d8b   :  { %v4233_v44 = vpop.f32.mrb[95].mxu0  ;;  %4237 = vmatmul.mubr.msk.bf16.vlgmr.msra.gmra.mrb[92].mxu1 %vm487_vm2, %v3449_v1 }
0x1d8c   :  { %4256 = vmatprep.mubr.msk.bf16.mxu1 %vm4721_vm1, %v4720_v15  ;;  %4249 = vmatpush3.bf16.msra.mxu1 %v4369_v25 }
0x1d8d   :  { %4250 = vmatprep.subr.bf16.mxu1 %v4720_v15 }
0x1d90   :  { %4251 = vmatpush3.bf16.msra.mxu1 %v4370_v50 }
0x1d91   :  { %4252 = vmatprep.subr.bf16.mxu1 %v4720_v15 }
0x1d94   :  { %4253 = vmatpush3.bf16.msra.mxu1 %v4371_v22 }
0x1d95   :  { %4254 = vmatprep.subr.bf16.mxu1 %v4720_v15 }
0x1d98   :  { %4255 = vmatpush3.bf16.msra.mxu1 %v4372_v53 }
0x1e5e   :  { %v3491_v27 = vpop.f32.mrb[92].mxu1 }
0x1e5f   :  { %v3498_v14 = vadd.f32 %v3491_v27, %v5682_v17  ;;  %v4238_v16 = vpop.f32.mrb[93].mxu1 }
0x1e60   :  { %v3494_v31 = vpop.f32.mrb[94].mxu1 }
0x1e61   :  { %v3500_v45 = vadd.f32 %v3498_v14, %v5452_v5  ;;  %v3499_v46 = vadd.f32 %v3494_v31, %v5685_v54  ;;  %v4239_v28 = vpop.f32.mrb[95].mxu1  ;;  %v4368_v54 = vld [vmem:[%s5811_s11 + $0x8] sm:$0xff]  }
0x1e62   :  { %4243 = vmatpush3.bf16.msra.mxu0 %v4368_v54 }
0x1e63   :  { %v5718_v18 = vadd.f32 %v3823_v60, %v3500_v45  ;;  %v3501_v3 = vadd.f32 %v3499_v46, %v5457_v43 }
0x1e65   :  { %v5721_v55 = vadd.f32 %v3823_v60, %v3501_v3  ;;  %v3511_v33 = vsel %vm269_vm0, %v5718_v18, 0.0 }
0x1e66   :  { %3512 = vadd.xlane.f32.xlu1 %v3511_v33 }
0x1e67   :  { %v3514_v12 = vsel %vm269_vm0, %v5721_v55, 0.0 }
0x1e68   :  { %3515 = vadd.xlane.f32.xlu0 %v3514_v12 }
0x1ef3   :  { %v3513_v19 = vpop.xlane.xlu1 %3512 }
0x1ef4   :  { %v3517_v42 = vmul.f32 0.03125, %v3513_v19 }
0x1ef5   :  { %v3516_v5 = vpop.xlane.xlu0 %3515 }
0x1ef6   :  { %v3519_v0 = vsub.f32 %v5718_v18, %v3517_v42  ;;  %v3518_v10 = vmul.f32 0.03125, %v3516_v5 }
0x1ef8   :  { %v3520_v13 = vsub.f32 %v5721_v55, %v3518_v10  ;;  %v3521_v63 = vmul.f32 %v3519_v0, %v3519_v0 }
0x1efa   :  { %v3523_v43 = vsel %vm269_vm0, %v3521_v63, 0.0  ;;  %v3522_v17 = vmul.f32 %v3520_v13, %v3520_v13 }
0x1efb   :  { %3524 = vadd.xlane.f32.xlu0 %v3523_v43 }
0x1efc   :  { %v3526_v51 = vsel %vm269_vm0, %v3522_v17, 0.0 }
0x1efd   :  { %3527 = vadd.xlane.f32.xlu1 %v3526_v51 }
0x1f88   :  { %v3525_v49 = vpop.xlane.xlu0 %3524 }
0x1f89   :  { %v3529_v56 = vmul.f32 0.03125, %v3525_v49 }
0x1f8a   :  { %v3528_v36 = vpop.xlane.xlu1 %3527 }
0x1f8b   :  { %v3531_v59 = vadd.f32 1e-05, %v3529_v56  ;;  %v3530_v2 = vmul.f32 0.03125, %v3528_v36 }
0x1f8d   :  { %4445 = vrsqrt.f32 %v3531_v59  ;;  %v3532_v57 = vadd.f32 1e-05, %v3530_v2 }
0x1f8f   :  { %4447 = vrsqrt.f32 %v3532_v57 }
0x1f97   :  { %v4446_v47 = vpop.eup %4445 }
0x1f98   :  { %v3535_v7 = vmul.f32 %v4446_v47, %v3519_v0 }
0x1f99   :  { %v4448_v6 = vpop.eup %4447 }
0x1f9a   :  { %v3541_v11 = vmul.f32 %v3824_v20, %v3535_v7  ;;  %v3536_v52 = vmul.f32 %v4448_v6, %v3520_v13 }
0x1f9c   :  { %v3542_v62 = vmul.f32 %v3824_v20, %v3536_v52  ;;  %v3547_v4 = vadd.f32 %v3825_v26, %v3541_v11 }
0x1f9e   :  { %v3548_v37 = vadd.f32 %v3825_v26, %v3542_v62 }
0x1fa0   :  { %v3549_v29 = vpack.c.bf16 %v3548_v37, %v3547_v4 }
0x1fa2   :  { %4245 = vmatmul.mubr.msk.bf16.vlgmr.msra.gmra.mrb[96].mxu0 %vm269_vm0, %v3549_v29 }
0x2075   :  { %v3610_v48 = vpop.f32.mrb[96].mxu0 }
0x2076   :  { %v3611_v39 = vadd.f32 %v3826_v38, %v3610_v48  ;;  %v4246_v21 = vpop.f32.mrb[97].mxu0 }
0x2077   :  { %v3613_v24 = vpop.f32.mrb[98].mxu0 }
0x2078   :  { %v3614_v30 = vadd.f32 %v3826_v38, %v3613_v24  ;;  %v4247_v58 = vpop.f32.mrb[99].mxu0  ;;  %v3617_v34 = vmax.f32 %v3611_v39, 0.0 }
0x207a   :  { %v3618_v35 = vmax.f32 %v3614_v30, 0.0 }
0x207c   :  { %v3619_v40 = vpack.c.bf16 %v3618_v35, %v3617_v34 }
0x207e   :  { %4257 = vmatmul.mubr.msk.bf16.vlgmr.msra.gmra.mrb[96].mxu1 %vm3657_vm13, %v3619_v40 }
0x207f   :  { %4660 = shalt.err (!%p4657_p6)
}
0x2080   :  { %s4661_s7 = scalar_lea.hbm %s5816_s16, 1024 }
0x2081   :  { %p4662_p7 = scmp.ne.s32.totalorder %s5816_s16, %s4661_s7  ;;  %p4665_p8 = scmp.lt.u32.totalorder %s4661_s7, %s5816_s16 }
0x2083   :  { %p4667_p9 = pnand %p4665_p8, %p4662_p7 }
0x2085   :  { %4670 = shalt.err (!%p4667_p9)
}
0x2086   :  { %3729 = dma.vmem_to_hbm [thread:$0]  %s3724_s29, 1024, %s5816_s16, [#allocation19], %s4714_s9, %s4714_s9, %s4715_s18  }
0x2087   :  { %v3830_v15 = vld [vmem:[%s5813_s13 + $0x11] ss:$0 sm:$0xff]  ;;  %s4743_s30 = smov [#allocation17]  }
0x2088   :  { %s3711_s19 = sshll.u32 %s4743_s30, 4  ;;  %s3712_s19 = int_to_ptr.vmem [resolvable:$true] %s3711_s19 }
0x2089   :  { %s4671_s16 = scalar_lea.vmem %s3712_s19, 256  ;;  %p4676_p11 = scmp.lt.s32.totalorder %s3712_s19, %s3712_s19 }
0x208a   :  { %p4672_p10 = scmp.ne.s32.totalorder %s3712_s19, %s4671_s16  ;;  %p4677_p12 = scmp.lt.s32.totalorder %s4671_s16, %s4671_s16 }
0x208c   :  { %p4678_p13 = por %p4677_p12, %p4676_p11 }
0x208e   :  { %p4679_p0 = pnand %p4678_p13, %p4672_p10 }
0x2151   :  { %v3695_v41 = vpop.f32.mrb[96].mxu1 }
0x2152   :  { %v3696_v8 = vadd.f32 %v3830_v15, %v3695_v41  ;;  %v4258_v23 = vpop.f32.mrb[97].mxu1 }
0x2153   :  { %v3698_v1 = vpop.f32.mrb[98].mxu1 }
0x2154   :  { %v3702_v32 = vadd.f32 %v3696_v8, %v5718_v18  ;;  %v3699_v61 = vadd.f32 %v3830_v15, %v3698_v1  ;;  %v4259_v44 = vpop.f32.mrb[99].mxu1 }
0x2156   :  { %3704 = vst.msk [vmem:[#allocation17] sm:$0xff] %vm269_vm0, %v3702_v32  ;;  %v3703_v27 = vadd.f32 %v3699_v61, %v5721_v55 }
0x2158   :  { %3705 = vst.msk [vmem:[#allocation17 + $0x8] sm:$0xff] %vm269_vm0, %v3703_v27 }
0x2159   :  { %4682 = shalt.err (!%p4679_p0)
}
0x215a   :  { %s4683_s27 = scalar_lea.hbm %s5815_s15, 256 }
0x215b   :  { %p4684_p1 = scmp.ne.s32.totalorder %s5815_s15, %s4683_s27  ;;  %p4687_p2 = scmp.lt.u32.totalorder %s4683_s27, %s5815_s15 }
0x215d   :  { %p4689_p3 = pnand %p4687_p2, %p4684_p1 }
0x215f   :  { %4692 = shalt.err (!%p4689_p3)
}
0x2160   :  { %3717 = dma.vmem_to_hbm [thread:$0]  %s3712_s19, 256, %s5815_s15, [#allocation4], %s4714_s9, %s4714_s9, %s4715_s18  }
0x2161   :  { %4703 = dma.done.wait [#allocation4], 256  }
0x2162   :  { %4704 = vsyncadd [#allocation4], 4294967040 }
0x2163   :  { %4705 = dma.done.wait [#allocation19], 1024  }
0x2164   :  { %4706 = vsyncadd [#allocation19], 4294966272 }
0x2165   :  { %3736 = vsyncpa [#allocation3], 1 }
0x2166   :  { %3737 = vsyncpa [#allocation6], 1 }
0x2167   :  { %3738 = vsyncpa [#allocation9], 1 }
0x2168   :  { %3739 = vsyncpa [#allocation12], 1 }
0x2169   :  { %3740 = vsyncpa [#allocation15], 1 }
0x216a   :  { %3741 = vsyncpa [#allocation4], 1 }
0x216b   :  { %3742 = vsyncpa [#allocation19], 1 }

</bundles_post_ra>
